<compile_context>
chip_gen: v7x
topology: tpu7x:2x2x1
jax: 0.10.0
libtpu: 0.0.40
codegen_flags: <defaults>
</compile_context>

<pallas_src>
import jax
import jax.numpy as jnp
from jax.experimental import pallas as pl
from jax.experimental.pallas import tpu as pltpu

_LANE = 128  # TPU vreg lane width


def _qmlp_kernel(obs_ref, act_ref, w1p_ref, b1_ref, w2_ref, b2_ref,
                 w3t_ref, b3_ref, o_ref, xpad_ref):
    obs_dim = obs_ref.shape[-1]
    act_dim = act_ref.shape[-1]

    # ---- fused concat: build the padded layer-1 LHS in VMEM ----------------
    # Layout (all offsets lane-tile aligned -> only simple masked stores):
    #   lanes [0, obs_dim)         = obs
    #   lanes [obs_dim, 128)       = 0
    #   lanes [128, 128+act_dim)   = act
    #   lanes [128+act_dim, 256)   = 0
    # W1 was zero-padded to the same layout in the wrapper, so this is exactly
    # obs@W1_obs + act@W1_act in a single matmul.  The zero-fill store sits on
    # the vst slot and overlaps with MXU work.
    xpad_ref[...] = jnp.zeros_like(xpad_ref)
    xpad_ref[:, :obs_dim] = obs_ref[...]
    xpad_ref[:, _LANE:_LANE + act_dim] = act_ref[...]

    # ---- layer 1: relu(x @ W1 + b1), f32 accumulation / f32 elementwise ----
    h1 = jnp.dot(xpad_ref[...], w1p_ref[...],
                 preferred_element_type=jnp.float32)
    h1 = jnp.maximum(h1 + b1_ref[...], 0.0)

    # ---- layer 2: relu(h1 @ W2 + b2) ---------------------------------------
    h2 = jnp.dot(h1.astype(w2_ref.dtype), w2_ref[...],
                 preferred_element_type=jnp.float32)
    h2 = jnp.maximum(h2 + b2_ref[...], 0.0)

    # ---- output head: VPU mul + cross-lane reduce (no (H2,1) MXU matmul) ---
    q = jnp.sum(h2 * w3t_ref[...], axis=-1) + b3_ref[0, 0]       # (block_b,)

    # Lane-dense store: the batch sits on the lane axis of this output tile.
    o_ref[0, 0, :] = q.astype(o_ref.dtype)


def _pick_block_b(B, *, cap=2048, split_threshold=1024):
    """Batch tile choice.

    * As large as possible (per-grid-step fixed cost ~0.35us dominates at
      these tiny per-row byte counts), capped at 2048 rows.
    * 128-aligned whenever possible so the lane-dense output store is a fully
      unmasked vst (falls back to 8-alignment only if B forces it).
    * Batches >= split_threshold get split into two 128-aligned blocks so the
      "parallel" grid axis can occupy both v7x TensorCores; the extra grid
      step is noise on single-TC v5e/v6e once blocks are >= 512 rows.
    """
    if B <= cap:
        if B >= split_threshold and B % 256 == 0:
            return B // 2
        return B
    # B > cap: largest divisor of B <= cap, preferring 128- then 8-alignment.
    for align in (128, 8):
        d = (cap // align) * align
        while d >= align:
            if B % d == 0:
                return d
            d -= align
    return B  # no aligned divisor found: fall back to one full-batch block


def mlp_q_function(obs, act, params, *, block_b=None,
                   compute_dtype=jnp.bfloat16):
    """Pallas implementation of MLPQFunction.forward.

    obs: (B, obs_dim), act: (B, act_dim).
    params (torch.nn.Linear layout, transposed weights):
        w1 (obs_dim+act_dim, H1), b1 (1, H1),
        w2 (H1, H2),              b2 (1, H2),
        w3 (H2, 1),               b3 (1, 1).
    compute_dtype: dtype of the MXU matmul inputs (bf16 by default;
        accumulation and all elementwise math stay f32).
    Returns q of shape (B,), matching torch.squeeze(q, -1).
    """
    obs = jnp.asarray(obs)
    act = jnp.asarray(act)
    B, obs_dim = obs.shape
    _, act_dim = act.shape
    assert obs_dim <= _LANE and act_dim <= _LANE, (obs_dim, act_dim)

    w1, b1 = params["w1"], params["b1"]
    w2, b2 = params["w2"], params["b2"]
    w3, b3 = params["w3"], params["b3"]
    H1 = w1.shape[1]
    H2 = w2.shape[1]

    # Zero-pad W1 to the lane-tile-aligned fused-concat layout used in-kernel:
    # rows [0,obs_dim) <- W1_obs, rows [128,128+act_dim) <- W1_act, rest zero.
    k_pad = 2 * _LANE
    w1p = jnp.zeros((k_pad, H1), jnp.float32)
    w1p = w1p.at[:obs_dim, :].set(jnp.asarray(w1[:obs_dim, :], jnp.float32))
    w1p = w1p.at[_LANE:_LANE + act_dim, :].set(
        jnp.asarray(w1[obs_dim:, :], jnp.float32))

    # Matmul inputs in compute_dtype (bf16 halves the B-scaled HBM traffic and
    # the padded input-tile footprint; MXU-native on v5e/v6e/v7x).  Biases and
    # the output head stay f32 so all VPU math is f32 (v5e-safe).
    obs_c = obs.astype(compute_dtype)
    act_c = act.astype(compute_dtype)
    w1p_c = w1p.astype(compute_dtype)
    w2_c = jnp.asarray(w2, compute_dtype)
    b1f = jnp.asarray(b1, jnp.float32).reshape(1, H1)
    b2f = jnp.asarray(b2, jnp.float32).reshape(1, H2)
    w3t = jnp.asarray(w3, jnp.float32).reshape(1, H2)   # head as a (1,H2) row
    b3s = jnp.asarray(b3, jnp.float32).reshape(1, 1)    # scalar, lives in SMEM

    if block_b is None:
        block_b = _pick_block_b(B)
    assert B % block_b == 0, (B, block_b)
    assert block_b == B or block_b % 8 == 0, block_b    # sublane constraint
    num_blocks = B // block_b

    out = pl.pallas_call(
        _qmlp_kernel,
        out_shape=jax.ShapeDtypeStruct((num_blocks, 1, block_b), jnp.float32),
        grid_spec=pltpu.PrefetchScalarGridSpec(
            num_scalar_prefetch=0,
            grid=(num_blocks,),
            in_specs=[
                # batch tiles (block == full array on the feature/lane dim)
                pl.BlockSpec((block_b, obs_dim), lambda i: (i, 0)),
                pl.BlockSpec((block_b, act_dim), lambda i: (i, 0)),
                # weights / biases: full arrays, same block every grid step
                pl.BlockSpec((k_pad, H1), lambda i: (0, 0)),
                pl.BlockSpec((1, H1), lambda i: (0, 0)),
                pl.BlockSpec((H1, H2), lambda i: (0, 0)),
                pl.BlockSpec((1, H2), lambda i: (0, 0)),
                pl.BlockSpec((1, H2), lambda i: (0, 0)),
                # b3: scalar in SMEM (no padded VMEM slab / extra DMA)
                pl.BlockSpec(memory_space=pltpu.MemorySpace.SMEM),
            ],
            # Lane-dense output: batch on the lane axis of each (1,1,block_b)
            # tile -> unmasked vst when block_b is a multiple of 128.
            out_specs=pl.BlockSpec((1, 1, block_b), lambda i: (i, 0, 0)),
            scratch_shapes=[
                # padded layer-1 LHS (fused concat buffer)
                pltpu.VMEM((block_b, k_pad), compute_dtype),
            ],
        ),
        compiler_params=pltpu.CompilerParams(
            # "parallel" lets the batch-block axis shard across both v7x
            # TensorCores; it is a no-op on single-TC v5e/v6e.
            dimension_semantics=("parallel",),
        ),
    )(obs_c, act_c, w1p_c, b1f, w2_c, b2f, w3t, b3s)

    # Blocks are contiguous slices of the batch, so a reshape restores (B,).
    return out.reshape(B)


def init_params(key, obs_dim, act_dim, hidden_sizes):
    """Deterministic init mimicking nn.Linear default (U[-1/sqrt(fan_in), +])."""
    sizes = [obs_dim + act_dim] + list(hidden_sizes) + [1]
    params = {}
    for j in range(len(sizes) - 1):
        fan_in, fan_out = sizes[j], sizes[j + 1]
        key, kw, kb = jax.random.split(key, 3)
        bound = 1.0 / jnp.sqrt(jnp.float32(fan_in))
        params[f"w{j+1}"] = jax.random.uniform(
            kw, (fan_in, fan_out), jnp.float32, -bound, bound)
        params[f"b{j+1}"] = jax.random.uniform(
            kb, (1, fan_out), jnp.float32, -bound, bound)
    return params


def reference_forward(obs, act, params):
    """Pure-JAX f32 reference (concat + full W1) for correctness checking."""
    x = jnp.concatenate([obs, act], axis=-1)
    h = jnp.maximum(x @ params["w1"] + params["b1"], 0.0)
    h = jnp.maximum(h @ params["w2"] + params["b2"], 0.0)
    q = h @ params["w3"] + params["b3"]
    return jnp.squeeze(q, axis=-1)


if __name__ == "__main__":
    key = jax.random.PRNGKey(0)
    k_obs, k_act, k_param = jax.random.split(key, 3)

    # SAC-like shapes (HalfCheetah dims); batch 1024 -> block_b=512, grid=(2,):
    # exercises multi-block indexing, software pipelining, and (on v7x) the
    # sharding of the parallel batch axis over both TensorCores.
    batch = 1024
    obs_dim = 17
    act_dim = 6
    hidden_sizes = (64, 64)

    obs = jax.random.normal(k_obs, (batch, obs_dim), jnp.float32)
    act = jax.random.normal(k_act, (batch, act_dim), jnp.float32)
    params = init_params(k_param, obs_dim, act_dim, hidden_sizes)

    q_ref = reference_forward(obs, act, params)

    # Exact-math path: f32 matmul inputs, tight tolerance.
    q32 = jax.block_until_ready(
        mlp_q_function(obs, act, params, compute_dtype=jnp.float32))
    assert q32.shape == (batch,), q32.shape
    assert jnp.allclose(q32, q_ref, atol=1e-4, rtol=1e-4), (
        float(jnp.max(jnp.abs(q32 - q_ref))))

    # Optimized default path: bf16 matmul inputs, f32 accumulation -> looser
    # tolerance (bf16 mantissa), still against the f32 reference.
    qbf = jax.block_until_ready(mlp_q_function(obs, act, params))
    assert qbf.shape == (batch,), qbf.shape
    assert jnp.allclose(qbf, q_ref, atol=5e-2, rtol=5e-2), (
        float(jnp.max(jnp.abs(qbf - q_ref))))

    print("KERNEL_OK")
</pallas_src>

<mosaic_0001>
module attributes {stable_mosaic.version = 11 : i64} {
  func.func @_qmlp_kernel(%arg0: i32, %arg1: memref<512x17xf32, #tpu.memory_space<vmem>>, %arg2: memref<512x6xf32, #tpu.memory_space<vmem>>, %arg3: memref<256x64xf32, #tpu.memory_space<vmem>>, %arg4: memref<1x64xf32, #tpu.memory_space<vmem>>, %arg5: memref<64x64xf32, #tpu.memory_space<vmem>>, %arg6: memref<1x64xf32, #tpu.memory_space<vmem>>, %arg7: memref<1x64xf32, #tpu.memory_space<vmem>>, %arg8: memref<1x1xf32, #tpu.memory_space<smem>>, %arg9: memref<1x1x512xf32, #tpu.memory_space<vmem>>, %arg10: memref<512x256xf32, #tpu.memory_space<vmem>>) attributes {dimension_semantics = [#tpu.dimension_semantics<parallel>], iteration_bounds = array<i64: 2>, scalar_prefetch = 0 : i64, scratch_operands = 1 : i64, tpu.core_type = #tpu.core_type<tc>, window_params = [{transform_indices = @transform_0, window_bounds = array<i64: 512, 17>}, {transform_indices = @transform_1, window_bounds = array<i64: 512, 6>}, {pipeline_mode = #tpu.pipeline_mode<synchronous>, transform_indices = @transform_2, window_bounds = array<i64: 256, 64>}, {pipeline_mode = #tpu.pipeline_mode<synchronous>, transform_indices = @transform_3, window_bounds = array<i64: 1, 64>}, {pipeline_mode = #tpu.pipeline_mode<synchronous>, transform_indices = @transform_4, window_bounds = array<i64: 64, 64>}, {pipeline_mode = #tpu.pipeline_mode<synchronous>, transform_indices = @transform_5, window_bounds = array<i64: 1, 64>}, {pipeline_mode = #tpu.pipeline_mode<synchronous>, transform_indices = @transform_6, window_bounds = array<i64: 1, 64>}, {transform_indices = @transform_7, window_bounds = array<i64: 1, 1>}, {transform_indices = @transform_8, window_bounds = array<i64: 1, 1, 512>}]} {
    %cst = arith.constant 0.000000e+00 : f32
    %0 = vector.broadcast %cst : f32 to vector<512x256xf32>
    %c0 = arith.constant 0 : index
    %c0_0 = arith.constant 0 : index
    %1 = vector.load %arg10[%c0, %c0_0] : memref<512x256xf32, #tpu.memory_space<vmem>>, vector<512x256xf32>
    tpu.vector_store %arg10[%c0, %c0_0], %0 {strides = array<i32>} : memref<512x256xf32, #tpu.memory_space<vmem>>, vector<512x256xf32>,
    %c0_1 = arith.constant 0 : index
    %c0_2 = arith.constant 0 : index
    %2 = vector.load %arg1[%c0_1, %c0_2] : memref<512x17xf32, #tpu.memory_space<vmem>>, vector<512x17xf32>
    %c0_3 = arith.constant 0 : index
    %c0_4 = arith.constant 0 : index
    %3 = vector.load %arg10[%c0_3, %c0_4] : memref<512x256xf32, #tpu.memory_space<vmem>>, vector<512x17xf32>
    tpu.vector_store %arg10[%c0_3, %c0_4], %2 {strides = array<i32>} : memref<512x256xf32, #tpu.memory_space<vmem>>, vector<512x17xf32>,
    %c0_5 = arith.constant 0 : index
    %c0_6 = arith.constant 0 : index
    %4 = vector.load %arg2[%c0_5, %c0_6] : memref<512x6xf32, #tpu.memory_space<vmem>>, vector<512x6xf32>
    %c0_7 = arith.constant 0 : index
    %c128 = arith.constant 128 : index
    %5 = vector.load %arg10[%c0_7, %c128] : memref<512x256xf32, #tpu.memory_space<vmem>>, vector<512x6xf32>
    tpu.vector_store %arg10[%c0_7, %c128], %4 {strides = array<i32>} : memref<512x256xf32, #tpu.memory_space<vmem>>, vector<512x6xf32>,
    %c0_8 = arith.constant 0 : index
    %c0_9 = arith.constant 0 : index
    %6 = vector.load %arg10[%c0_8, %c0_9] : memref<512x256xf32, #tpu.memory_space<vmem>>, vector<512x256xf32>
    %c0_10 = arith.constant 0 : index
    %c0_11 = arith.constant 0 : index
    %7 = vector.load %arg3[%c0_10, %c0_11] : memref<256x64xf32, #tpu.memory_space<vmem>>, vector<256x64xf32>
    %cst_12 = arith.constant dense<0.000000e+00> : vector<512x64xf32>
    %8 = tpu.matmul %6, %7, %cst_12 {dimension_numbers = #tpu.dot_dimension_numbers<[1], [0], [0], [1], [0, 0, 1, 1], [], []>} : vector<512x256xf32>, vector<256x64xf32>, vector<512x64xf32> -> vector<512x64xf32>
    %c0_13 = arith.constant 0 : index
    %c0_14 = arith.constant 0 : index
    %9 = vector.load %arg4[%c0_13, %c0_14] : memref<1x64xf32, #tpu.memory_space<vmem>>, vector<1x64xf32>
    %10 = vector.broadcast %9 : vector<1x64xf32> to vector<512x64xf32>
    %11 = arith.addf %8, %10 : vector<512x64xf32>
    %cst_15 = arith.constant 0.000000e+00 : f32
    %12 = vector.broadcast %cst_15 : f32 to vector<512x64xf32>
    %13 = arith.maximumf %11, %12 : vector<512x64xf32>
    %c0_16 = arith.constant 0 : index
    %c0_17 = arith.constant 0 : index
    %14 = vector.load %arg5[%c0_16, %c0_17] : memref<64x64xf32, #tpu.memory_space<vmem>>, vector<64x64xf32>
    %cst_18 = arith.constant dense<0.000000e+00> : vector<512x64xf32>
    %15 = tpu.matmul %13, %14, %cst_18 {dimension_numbers = #tpu.dot_dimension_numbers<[1], [0], [0], [1], [0, 0, 1, 1], [], []>} : vector<512x64xf32>, vector<64x64xf32>, vector<512x64xf32> -> vector<512x64xf32>
    %c0_19 = arith.constant 0 : index
    %c0_20 = arith.constant 0 : index
    %16 = vector.load %arg6[%c0_19, %c0_20] : memref<1x64xf32, #tpu.memory_space<vmem>>, vector<1x64xf32>
    %17 = vector.broadcast %16 : vector<1x64xf32> to vector<512x64xf32>
    %18 = arith.addf %15, %17 : vector<512x64xf32>
    %cst_21 = arith.constant 0.000000e+00 : f32
    %19 = vector.broadcast %cst_21 : f32 to vector<512x64xf32>
    %20 = arith.maximumf %18, %19 : vector<512x64xf32>
    %c0_22 = arith.constant 0 : index
    %c0_23 = arith.constant 0 : index
    %21 = vector.load %arg7[%c0_22, %c0_23] : memref<1x64xf32, #tpu.memory_space<vmem>>, vector<1x64xf32>
    %22 = vector.broadcast %21 : vector<1x64xf32> to vector<512x64xf32>
    %23 = arith.mulf %20, %22 : vector<512x64xf32>
    %cst_24 = arith.constant dense<0.000000e+00> : vector<512xf32>
    %24 = vector.multi_reduction <add>, %23, %cst_24 [1] : vector<512x64xf32> to vector<512xf32>
    %c0_25 = arith.constant 0 : index
    %c0_26 = arith.constant 0 : index
    %25 = memref.load %arg8[%c0_25, %c0_26] : memref<1x1xf32, #tpu.memory_space<smem>>
    %26 = vector.broadcast %25 : f32 to vector<512xf32>
    %27 = arith.addf %24, %26 : vector<512xf32>
    %c0_27 = arith.constant 0 : index
    %c0_28 = arith.constant 0 : index
    %c0_29 = arith.constant 0 : index
    %28 = vector.load %arg9[%c0_27, %c0_28, %c0_29] : memref<1x1x512xf32, #tpu.memory_space<vmem>>, vector<1x1x512xf32>
    %29 = vector.shape_cast %28 : vector<1x1x512xf32> to vector<512xf32>
    %30 = vector.shape_cast %27 : vector<512xf32> to vector<1x1x512xf32>
    tpu.vector_store %arg9[%c0_27, %c0_28, %c0_29], %30 {strides = array<i32>} : memref<1x1x512xf32, #tpu.memory_space<vmem>>, vector<1x1x512xf32>,
    return
  }
  func.func @transform_0(%arg0: i32) -> (i32, i32) {
    %c0_i32 = arith.constant 0 : i32
    %c0_i32_0 = arith.constant 0 : i32
    return %arg0, %c0_i32 : i32, i32
  }
  func.func @transform_1(%arg0: i32) -> (i32, i32) {
    %c0_i32 = arith.constant 0 : i32
    %c0_i32_0 = arith.constant 0 : i32
    return %arg0, %c0_i32 : i32, i32
  }
  func.func @transform_2(%arg0: i32) -> (i32, i32) {
    %c0_i32 = arith.constant 0 : i32
    %c0_i32_0 = arith.constant 0 : i32
    %c0_i32_1 = arith.constant 0 : i32
    return %c0_i32, %c0_i32_0 : i32, i32
  }
  func.func @transform_3(%arg0: i32) -> (i32, i32) {
    %c0_i32 = arith.constant 0 : i32
    %c0_i32_0 = arith.constant 0 : i32
    %c0_i32_1 = arith.constant 0 : i32
    return %c0_i32, %c0_i32_0 : i32, i32
  }
  func.func @transform_4(%arg0: i32) -> (i32, i32) {
    %c0_i32 = arith.constant 0 : i32
    %c0_i32_0 = arith.constant 0 : i32
    %c0_i32_1 = arith.constant 0 : i32
    return %c0_i32, %c0_i32_0 : i32, i32
  }
  func.func @transform_5(%arg0: i32) -> (i32, i32) {
    %c0_i32 = arith.constant 0 : i32
    %c0_i32_0 = arith.constant 0 : i32
    %c0_i32_1 = arith.constant 0 : i32
    return %c0_i32, %c0_i32_0 : i32, i32
  }
  func.func @transform_6(%arg0: i32) -> (i32, i32) {
    %c0_i32 = arith.constant 0 : i32
    %c0_i32_0 = arith.constant 0 : i32
    %c0_i32_1 = arith.constant 0 : i32
    return %c0_i32, %c0_i32_0 : i32, i32
  }
  func.func @transform_7(%arg0: i32) -> (i32, i32) {
    %c0_i32 = arith.constant 0 : i32
    %c0_i32_0 = arith.constant 0 : i32
    %c0_i32_1 = arith.constant 0 : i32
    return %c0_i32, %c0_i32_0 : i32, i32
  }
  func.func @transform_8(%arg0: i32) -> (i32, i32, i32) {
    %c0_i32 = arith.constant 0 : i32
    %c0_i32_0 = arith.constant 0 : i32
    %c0_i32_1 = arith.constant 0 : i32
    return %arg0, %c0_i32, %c0_i32_0 : i32, i32, i32
  }
}

</mosaic_0001>

<bundles_post_ra>
// kernel: tpu_custom_call.1
= control target key start
LH: loop header
LB: loop body
LE: loop exit
PB: predicated region body
PF: predicated region fallthrough
CT: control target
= control target key end

     0   :  { %s11958_s0 = inlined_call_operand.vmem [shape: f32[1024,17], index: 0, kind: input, shape index: {}]   ;;  %s11959_s1 = inlined_call_operand.vmem [shape: f32[1024,6], index: 1, kind: input, shape index: {}]   ;;  %s11960_s2 = inlined_call_operand.vmem [shape: f32[256,64], index: 2, kind: input, shape index: {}]   ;;  %s11961_s3 = inlined_call_operand.vmem [shape: f32[1,64], index: 3, kind: input, shape index: {}]   ;;  %s11962_s4 = inlined_call_operand.vmem [shape: f32[64,64], index: 4, kind: input, shape index: {}]   ;;  %s11963_s5 = inlined_call_operand.vmem [shape: f32[1,64], index: 5, kind: input, shape index: {}]   ;;  %s11964_s6 = inlined_call_operand.vmem [shape: f32[1,64], index: 6, kind: input, shape index: {}]   ;;  %s11965_s7 = inlined_call_operand.<no memory space> [shape: f32[1,1], index: 7, kind: input, shape index: {}]   ;;  %s11966_s8 = inlined_call_operand.hbm [shape: f32[2,1,512], index: 8, kind: output, shape index: {}]  }
   0x1   :  { %13 = sst [smem:[#allocation3]] %s11965_s7 }
   0x2   :  { %14 = vsyncpa [#allocation5], 0 }
   0x3   :  { %16 = vsyncpa [#allocation5 + $0x1], 0  ;;  %s8749_s29 = smov 0   ;;  %s8751_s30 = smov 0  }
   0x4   :  { %s8753_s9 = smov 0   ;;  %s8755_s10 = smov 0  }
   0x5 LB: > { %s8220_s7 = sadd.s32 4294967295, %s8694_s10   ;;  %s8221_s11 = sadd.s32 4294967294, %s8694_s10   ;;  %s8694_s10 = sphi %s8755_s10, %s12151_s10   ;;  %s8690_s9 = sphi %s8753_s9, %s12150_s9   ;;  %s8686_s30 = sphi %s8751_s30, %s12149_s30   ;;  %s8682_s29 = sphi %s8749_s29, %s12148_s29  }
   0x6   : > { %s8772_s12 = sadd.s32 1, %s8694_s10   ;;  %s207_s13 = sadd.s32 1, %s8690_s9 }
   0x7   : > { %s204_s14 = ssub.s32 %s8694_s10, %s8772_s12  ;;  %p217_p0 = scmp.ne.s32.totalorder %s8690_s9, %s8686_s30 }
   0x8   : > { %p205_p1 = scmp.eq.s32.totalorder %s204_s14, 0  ;;  %p218_p2 = scmp.eq.s32.totalorder %s8220_s7, 1 }
   0x9   : > { %p223_p3 = scmp.ne.s32.totalorder %s8686_s30, %s8682_s29  ;;  %p224_p4 = scmp.eq.s32.totalorder %s8221_s11, 1 }
   0xa   : > { %s8782_s15 = scalar_select %p205_p1, %s8690_s9, %s207_s13  }
   0xb   : > { %p8784_p5 = por %p218_p2, %p217_p0  ;;  %p8788_p6 = por %p224_p4, %p223_p3 }
   0xc   : > { %p8224_p7 = scmp.ge.s32.totalorder %s8694_s10, 1  ;;  %p278_p8 = scmp.lt.s32.totalorder %s8694_s10, 3 }
   0xe   : > { %p279_p9 = pnand %p8224_p7, %p278_p8 }
  0x10   : > { %282 = sbr.rel (%p279_p9) target bundleno = 1471 (0x5bf), region = 52 }
  0x17   : > { %v843_v0 = vld [vmem:[%s11960_s2] sm:$0xff]  ;;  %v844_v1 = vld [vmem:[%s11960_s2 + $0x8] sm:$0xff]  ;;  %v8803_v2 = vld [vmem:[%s11960_s2 + $0x10] sm:$0xff]  ;;  %s8805_s24 = sshll.u32 %s8220_s7, 6  ;;  %v8696_v3 = vmov 0.0|0.0   ;;  %v8697_v6 = vmov 0.0  }
  0x18   : > { %8487 = vmatprep.subr.bf16.mxu0 %v8696_v3  ;;  %v8808_v4 = vpack.c.bf16 %v844_v1, %v843_v0  ;;  %v8813_v5 = vld [vmem:[%s11960_s2 + $0x18] sm:$0xff]  ;;  %p318_p10 = scmp.lt.s32.totalorder %s8805_s24, 127  ;;  %330 = vst [vmem:[#allocation2 + $0x8] sm:$0xff] %v8697_v6  ;;  %329 = vst [vmem:[#allocation2] sm:$0xff] %v8697_v6  ;;  %8551 = vmatprep.subr.bf16.mxu1 %v8696_v3  ;;  %v847_v8 = vld [vmem:[%s11960_s2 + $0x20] sm:$0xff]  ;;  %vm650_vm0 = vcmask 48128   ;;  %s11916_s25 = scalar_lea.hbm %s11966_s8, %s8805_s24 }
  0x19   : > { %331 = vst [vmem:[#allocation2 + $0x10] sm:$0xff] %v8697_v6  ;;  %332 = vst [vmem:[#allocation2 + $0x18] sm:$0xff] %v8697_v6  ;;  %v8491_v7 = vpack.c.bf16 %v8813_v5, %v8803_v2  ;;  %v848_v9 = vld [vmem:[%s11960_s2 + $0x28] sm:$0xff]  ;;  %v849_v11 = vld [vmem:[%s11960_s2 + $0x30] sm:$0xff]  ;;  %vm521_vm1 = vcmask 138240   ;;  %vm1346_vm2 = vcmask 523264  }
  0x1a   : > { %333 = vst [vmem:[#allocation2 + $0x20] sm:$0xff] %v8697_v6  ;;  %334 = vst [vmem:[#allocation2 + $0x28] sm:$0xff] %v8697_v6  ;;  %8489 = vmatpush1.bf16.msra.mxu0 %v8808_v4  ;;  %s319_s27 = scalar_select %p318_p10, %s8805_s24, 127  ;;  %8567 = vmatpush1.bf16.msra.mxu1 %v8808_v4  ;;  %v8494_v10 = vpack.c.bf16 %v848_v9, %v847_v8  ;;  %v850_v12 = vld [vmem:[%s11960_s2 + $0x38] sm:$0xff]  ;;  %v851_v13 = vld [vmem:[%s11960_s2 + $0x40] sm:$0xff]  ;;  %vm7768_vm3 = vcmask 130112  }
  0x1b   : > { %335 = vst [vmem:[#allocation2 + $0x30] sm:$0xff] %v8697_v6  ;;  %336 = vst [vmem:[#allocation2 + $0x38] sm:$0xff] %v8697_v6  ;;  %8490 = vmatprep.subr.bf16.mxu0 %v8696_v3  ;;  %8552 = vmatprep.subr.bf16.mxu1 %v8696_v3  ;;  %v852_v14 = vld [vmem:[%s11960_s2 + $0x48] sm:$0xff]  ;;  %v8497_v16 = vpack.c.bf16 %v850_v12, %v849_v11  ;;  %v853_v26 = vld [vmem:[%s11960_s2 + $0x50] sm:$0xff]  ;;  %s2251_s23 = sld [smem:[#allocation3]]  ;;  %vm7775_vm4 = vcmask 195712  }
  0x1c   : > { %337 = vst [vmem:[#allocation2 + $0x40] sm:$0xff] %v8697_v6  ;;  %338 = vst [vmem:[#allocation2 + $0x48] sm:$0xff] %v8697_v6  ;;  %s8227_s14 = sshll.u32 %s319_s27, 3  ;;  %v854_v27 = vld [vmem:[%s11960_s2 + $0x58] sm:$0xff]  ;;  %v8500_v31 = vpack.c.bf16 %v852_v14, %v851_v13  ;;  %v855_v45 = vld [vmem:[%s11960_s2 + $0x60] sm:$0xff]  ;;  %vm7782_vm5 = vcmask 261312  }
  0x1d   : > { %339 = vst [vmem:[#allocation2 + $0x50] sm:$0xff] %v8697_v6  ;;  %340 = vst [vmem:[#allocation2 + $0x58] sm:$0xff] %v8697_v6  ;;  %s8963_s20 = scalar_lea.vmem %s11959_s1, %s8227_s14  ;;  %s8975_s28 = scalar_lea.vmem %s11958_s0, %s8227_s14  ;;  %v8503_v44 = vpack.c.bf16 %v854_v27, %v853_v26  ;;  %v856_v46 = vld [vmem:[%s11960_s2 + $0x68] sm:$0xff]  ;;  %v857_v48 = vld [vmem:[%s11960_s2 + $0x70] sm:$0xff]  ;;  %vm7789_vm6 = vcmask 326912   ;;  %vm7796_vm7 = vcmask 392512  }
  0x1e   : > { %341 = vst [vmem:[#allocation2 + $0x60] sm:$0xff] %v8697_v6  ;;  %342 = vst [vmem:[#allocation2 + $0x68] sm:$0xff] %v8697_v6  ;;  %8492 = vmatpush1.bf16.msra.mxu0 %v8491_v7  ;;  %8568 = vmatpush1.bf16.msra.mxu1 %v8491_v7  ;;  %v586_v15 = vld [vmem:[%s8963_s20] sm:$0xff]  ;;  %v587_v18 = vld [vmem:[%s8963_s20 + $0x8] sm:$0xff]  ;;  %v8506_v47 = vpack.c.bf16 %v856_v46, %v855_v45  ;;  %vm7803_vm8 = vcmask 458112   ;;  %vm7810_vm9 = vcmask 523712  }
  0x1f   : > { %343 = vst [vmem:[#allocation2 + $0x70] sm:$0xff] %v8697_v6  ;;  %344 = vst [vmem:[#allocation2 + $0x78] sm:$0xff] %v8697_v6  ;;  %8493 = vmatprep.subr.bf16.mxu0 %v8696_v3  ;;  %8553 = vmatprep.subr.bf16.mxu1 %v8696_v3  ;;  %v457_v17 = vld [vmem:[%s8975_s28] sm:$0xff]  ;;  %v458_v19 = vld [vmem:[%s8975_s28 + $0x8] sm:$0xff]  ;;  %vm7817_vm10 = vcmask 589312   ;;  %vm7824_vm11 = vcmask 654912  }
  0x20   : > { %345 = vst [vmem:[#allocation2 + $0x80] sm:$0xff] %v8697_v6  ;;  %346 = vst [vmem:[#allocation2 + $0x88] sm:$0xff] %v8697_v6  ;;  %v588_v20 = vld [vmem:[%s8963_s20 + $0x10] sm:$0xff]  ;;  %v589_v22 = vld [vmem:[%s8963_s20 + $0x18] sm:$0xff]  ;;  %vm7831_vm12 = vcmask 720512   ;;  %vm7838_vm13 = vcmask 786112  }
  0x21   : > { %347 = vst [vmem:[#allocation2 + $0x90] sm:$0xff] %v8697_v6  ;;  %348 = vst [vmem:[#allocation2 + $0x98] sm:$0xff] %v8697_v6  ;;  %v459_v21 = vld [vmem:[%s8975_s28 + $0x10] sm:$0xff]  ;;  %v460_v23 = vld [vmem:[%s8975_s28 + $0x18] sm:$0xff]  ;;  %vm7845_vm14 = vcmask 851712   ;;  %vm7852_vm15 = vcmask 917312  }
  0x22   : > { %349 = vst [vmem:[#allocation2 + $0xa0] sm:$0xff] %v8697_v6  ;;  %350 = vst [vmem:[#allocation2 + $0xa8] sm:$0xff] %v8697_v6  ;;  %8495 = vmatpush1.bf16.msra.mxu0 %v8494_v10  ;;  %8569 = vmatpush1.bf16.msra.mxu1 %v8494_v10  ;;  %v590_v24 = vld [vmem:[%s8963_s20 + $0x20] sm:$0xff]  ;;  %v591_v28 = vld [vmem:[%s8963_s20 + $0x28] sm:$0xff]  ;;  %s314_s18 = sand.u32 1, %s8686_s30  }
  0x23   : > { %351 = vst [vmem:[#allocation2 + $0xb0] sm:$0xff] %v8697_v6  ;;  %352 = vst [vmem:[#allocation2 + $0xb8] sm:$0xff] %v8697_v6  ;;  %8496 = vmatprep.subr.bf16.mxu0 %v8696_v3  ;;  %8554 = vmatprep.subr.bf16.mxu1 %v8696_v3  ;;  %v461_v25 = vld [vmem:[%s8975_s28 + $0x20] sm:$0xff]  ;;  %v462_v29 = vld [vmem:[%s8975_s28 + $0x28] sm:$0xff]  ;;  %s8225_s14 = sshll.u32 %s314_s18, 2  ;;  %s8136_s26 = scalar_lea.sflag [#allocation5], %s314_s18 }
  0x24   : > { %353 = vst [vmem:[#allocation2 + $0xc0] sm:$0xff] %v8697_v6  ;;  %354 = vst [vmem:[#allocation2 + $0xc8] sm:$0xff] %v8697_v6  ;;  %v592_v30 = vld [vmem:[%s8963_s20 + $0x30] sm:$0xff]  ;;  %v593_v33 = vld [vmem:[%s8963_s20 + $0x38] sm:$0xff]  ;;  %s316_s19 = scalar_lea.vmem [#allocation4], %s8225_s14 }
  0x25   : > { %355 = vst [vmem:[#allocation2 + $0xd0] sm:$0xff] %v8697_v6  ;;  %356 = vst [vmem:[#allocation2 + $0xd8] sm:$0xff] %v8697_v6  ;;  %v463_v32 = vld [vmem:[%s8975_s28 + $0x30] sm:$0xff]  ;;  %v464_v34 = vld [vmem:[%s8975_s28 + $0x38] sm:$0xff]  ;;  %s8150_s21 = sshll.u32 %s316_s19, 4  ;;  %s11918_s21 = int_to_ptr.vmem [resolvable:$true] %s8150_s21 }
  0x26   : > { %357 = vst [vmem:[#allocation2 + $0xe0] sm:$0xff] %v8697_v6  ;;  %358 = vst [vmem:[#allocation2 + $0xe8] sm:$0xff] %v8697_v6  ;;  %8498 = vmatpush1.bf16.msra.mxu0 %v8497_v16  ;;  %8570 = vmatpush1.bf16.msra.mxu1 %v8497_v16  ;;  %v594_v35 = vld [vmem:[%s8963_s20 + $0x40] sm:$0xff]  ;;  %v595_v37 = vld [vmem:[%s8963_s20 + $0x48] sm:$0xff]  ;;  %s8632_s27 = scalar_lea.vmem %s11918_s21, 64 }
  0x27   : > { %359 = vst [vmem:[#allocation2 + $0xf0] sm:$0xff] %v8697_v6  ;;  %360 = vst [vmem:[#allocation2 + $0xf8] sm:$0xff] %v8697_v6  ;;  %8499 = vmatprep.subr.bf16.mxu0 %v8696_v3  ;;  %v465_v36 = vld [vmem:[%s8975_s28 + $0x40] sm:$0xff]  ;;  %8555 = vmatprep.subr.bf16.mxu1 %v8696_v3  ;;  %v466_v38 = vld [vmem:[%s8975_s28 + $0x48] sm:$0xff]  ;;  %p8633_p11 = scmp.ne.s32.totalorder %s11918_s21, %s8632_s27 }
  0x28   : > { %361 = vst [vmem:[#allocation2 + $0x100] sm:$0xff] %v8697_v6  ;;  %362 = vst [vmem:[#allocation2 + $0x108] sm:$0xff] %v8697_v6  ;;  %v596_v39 = vld [vmem:[%s8963_s20 + $0x50] sm:$0xff]  ;;  %v597_v42 = vld [vmem:[%s8963_s20 + $0x58] sm:$0xff] }
  0x29   : > { %363 = vst [vmem:[#allocation2 + $0x110] sm:$0xff] %v8697_v6  ;;  %364 = vst [vmem:[#allocation2 + $0x118] sm:$0xff] %v8697_v6  ;;  %v467_v40 = vld [vmem:[%s8975_s28 + $0x50] sm:$0xff]  ;;  %v468_v43 = vld [vmem:[%s8975_s28 + $0x58] sm:$0xff]  ;;  %p8634_p12 = pnand %p8633_p11, %p8784_p5 }
  0x2a   : > { %365 = vst [vmem:[#allocation2 + $0x120] sm:$0xff] %v8697_v6  ;;  %366 = vst [vmem:[#allocation2 + $0x128] sm:$0xff] %v8697_v6  ;;  %8501 = vmatpush1.bf16.msra.mxu0 %v8500_v31  ;;  %8571 = vmatpush1.bf16.msra.mxu1 %v8500_v31  ;;  %v858_v49 = vld [vmem:[%s11960_s2 + $0x78] sm:$0xff]  ;;  %v859_v50 = vld [vmem:[%s11960_s2 + $0x80] sm:$0xff] }
  0x2b   : > { %367 = vst [vmem:[#allocation2 + $0x130] sm:$0xff] %v8697_v6  ;;  %368 = vst [vmem:[#allocation2 + $0x138] sm:$0xff] %v8697_v6  ;;  %8502 = vmatprep.subr.bf16.mxu0 %v8696_v3  ;;  %8556 = vmatprep.subr.bf16.mxu1 %v8696_v3  ;;  %v860_v51 = vld [vmem:[%s11960_s2 + $0x88] sm:$0xff]  ;;  %v598_v52 = vld [vmem:[%s8963_s20 + $0x60] sm:$0xff]  ;;  %v8509_v53 = vpack.c.bf16 %v858_v49, %v857_v48  ;;  %p8635_p13 = pneg %p8634_p12 }
  0x2c   : > { %369 = vst [vmem:[#allocation2 + $0x140] sm:$0xff] %v8697_v6  ;;  %370 = vst [vmem:[#allocation2 + $0x148] sm:$0xff] %v8697_v6  ;;  %v469_v54 = vld [vmem:[%s8975_s28 + $0x60] sm:$0xff]  ;;  %v599_v55 = vld [vmem:[%s8963_s20 + $0x68] sm:$0xff]  ;;  %v8512_v5 = vpack.c.bf16 %v860_v51, %v859_v50 }
  0x2d   : > { %371 = vst [vmem:[#allocation2 + $0x150] sm:$0xff] %v8697_v6  ;;  %372 = vst [vmem:[#allocation2 + $0x158] sm:$0xff] %v8697_v6  ;;  %v470_v56 = vld [vmem:[%s8975_s28 + $0x68] sm:$0xff]  ;;  %v600_v57 = vld [vmem:[%s8963_s20 + $0x70] sm:$0xff] }
  0x2e   : > { %373 = vst [vmem:[#allocation2 + $0x160] sm:$0xff] %v8697_v6  ;;  %374 = vst [vmem:[#allocation2 + $0x168] sm:$0xff] %v8697_v6  ;;  %8504 = vmatpush1.bf16.msra.mxu0 %v8503_v44  ;;  %8572 = vmatpush1.bf16.msra.mxu1 %v8503_v44  ;;  %v471_v58 = vld [vmem:[%s8975_s28 + $0x70] sm:$0xff]  ;;  %v601_v59 = vld [vmem:[%s8963_s20 + $0x78] sm:$0xff] }
  0x2f   : > { %375 = vst [vmem:[#allocation2 + $0x170] sm:$0xff] %v8697_v6  ;;  %376 = vst [vmem:[#allocation2 + $0x178] sm:$0xff] %v8697_v6  ;;  %8505 = vmatprep.subr.bf16.mxu0 %v8696_v3  ;;  %8557 = vmatprep.subr.bf16.mxu1 %v8696_v3  ;;  %v472_v60 = vld [vmem:[%s8975_s28 + $0x78] sm:$0xff]  ;;  %v602_v61 = vld [vmem:[%s8963_s20 + $0x80] sm:$0xff] }
  0x30   : > { %377 = vst [vmem:[#allocation2 + $0x180] sm:$0xff] %v8697_v6  ;;  %378 = vst [vmem:[#allocation2 + $0x188] sm:$0xff] %v8697_v6  ;;  %v473_v62 = vld [vmem:[%s8975_s28 + $0x80] sm:$0xff]  ;;  %v861_v63 = vld [vmem:[%s11960_s2 + $0x90] sm:$0xff] }
  0x31   : > { %379 = vst [vmem:[#allocation2 + $0x190] sm:$0xff] %v8697_v6  ;;  %380 = vst [vmem:[#allocation2 + $0x198] sm:$0xff] %v8697_v6  ;;  %v862_v0 = vld [vmem:[%s11960_s2 + $0x98] sm:$0xff]  ;;  %v603_v1 = vld [vmem:[%s8963_s20 + $0x88] sm:$0xff] }
  0x32   : > { %381 = vst [vmem:[#allocation2 + $0x1a0] sm:$0xff] %v8697_v6  ;;  %382 = vst [vmem:[#allocation2 + $0x1a8] sm:$0xff] %v8697_v6  ;;  %8507 = vmatpush1.bf16.msra.mxu0 %v8506_v47  ;;  %8573 = vmatpush1.bf16.msra.mxu1 %v8506_v47  ;;  %v474_v2 = vld [vmem:[%s8975_s28 + $0x88] sm:$0xff]  ;;  %v604_v4 = vld [vmem:[%s8963_s20 + $0x90] sm:$0xff] }
  0x33   : > { %383 = vst [vmem:[#allocation2 + $0x1b0] sm:$0xff] %v8697_v6  ;;  %384 = vst [vmem:[#allocation2 + $0x1b8] sm:$0xff] %v8697_v6  ;;  %8508 = vmatprep.subr.bf16.mxu0 %v8696_v3  ;;  %8558 = vmatprep.subr.bf16.mxu1 %v8696_v3  ;;  %v605_v7 = vld [vmem:[%s8963_s20 + $0x98] sm:$0xff]  ;;  %v606_v9 = vld [vmem:[%s8963_s20 + $0xa0] sm:$0xff] }
  0x34   : > { %385 = vst [vmem:[#allocation2 + $0x1c0] sm:$0xff] %v8697_v6  ;;  %386 = vst [vmem:[#allocation2 + $0x1c8] sm:$0xff] %v8697_v6  ;;  %v476_v8 = vld [vmem:[%s8975_s28 + $0x98] sm:$0xff]  ;;  %v477_v10 = vld [vmem:[%s8975_s28 + $0xa0] sm:$0xff] }
  0x35   : > { %387 = vst [vmem:[#allocation2 + $0x1d0] sm:$0xff] %v8697_v6  ;;  %388 = vst [vmem:[#allocation2 + $0x1d8] sm:$0xff] %v8697_v6  ;;  %v607_v11 = vld [vmem:[%s8963_s20 + $0xa8] sm:$0xff]  ;;  %v608_v13 = vld [vmem:[%s8963_s20 + $0xb0] sm:$0xff] }
  0x36   : > { %389 = vst [vmem:[#allocation2 + $0x1e0] sm:$0xff] %v8697_v6  ;;  %390 = vst [vmem:[#allocation2 + $0x1e8] sm:$0xff] %v8697_v6  ;;  %8510 = vmatpush1.bf16.msra.mxu0 %v8509_v53  ;;  %8574 = vmatpush1.bf16.msra.mxu1 %v8509_v53  ;;  %v478_v12 = vld [vmem:[%s8975_s28 + $0xa8] sm:$0xff]  ;;  %v479_v14 = vld [vmem:[%s8975_s28 + $0xb0] sm:$0xff] }
  0x37   : > { %391 = vst [vmem:[#allocation2 + $0x1f0] sm:$0xff] %v8697_v6  ;;  %392 = vst [vmem:[#allocation2 + $0x1f8] sm:$0xff] %v8697_v6  ;;  %8511 = vmatprep.subr.bf16.mxu0 %v8696_v3  ;;  %8559 = vmatprep.subr.bf16.mxu1 %v8696_v3  ;;  %v480_v16 = vld [vmem:[%s8975_s28 + $0xb8] sm:$0xff]  ;;  %v481_v27 = vld [vmem:[%s8975_s28 + $0xc0] sm:$0xff] }
  0x38   : > { %393 = vst [vmem:[#allocation2 + $0x200] sm:$0xff] %v8697_v6  ;;  %394 = vst [vmem:[#allocation2 + $0x208] sm:$0xff] %v8697_v6  ;;  %v483_v31 = vld [vmem:[%s8975_s28 + $0xd0] sm:$0xff]  ;;  %v871_v44 = vld [vmem:[%s11960_s2 + $0xe0] sm:$0xff] }
  0x39   : > { %395 = vst [vmem:[#allocation2 + $0x210] sm:$0xff] %v8697_v6  ;;  %396 = vst [vmem:[#allocation2 + $0x218] sm:$0xff] %v8697_v6  ;;  %v872_v45 = vld [vmem:[%s11960_s2 + $0xe8] sm:$0xff]  ;;  %v617_v46 = vld [vmem:[%s8963_s20 + $0xf8] sm:$0xff] }
  0x3a   : > { %397 = vst [vmem:[#allocation2 + $0x220] sm:$0xff] %v8697_v6  ;;  %398 = vst [vmem:[#allocation2 + $0x228] sm:$0xff] %v8697_v6  ;;  %8513 = vmatpush1.bf16.msra.mxu0 %v8512_v5  ;;  %8575 = vmatpush1.bf16.msra.mxu1 %v8512_v5  ;;  %v8530_v47 = vpack.c.bf16 %v872_v45, %v871_v44  ;;  %v488_v48 = vld [vmem:[%s8975_s28 + $0xf8] sm:$0xff]  ;;  %v873_v49 = vld [vmem:[%s11960_s2 + $0xf0] sm:$0xff] }
  0x3b   : > { %399 = vst [vmem:[#allocation2 + $0x230] sm:$0xff] %v8697_v6  ;;  %400 = vst [vmem:[#allocation2 + $0x238] sm:$0xff] %v8697_v6  ;;  %8514 = vmatprep.subr.bf16.mxu0 %v8696_v3  ;;  %8560 = vmatprep.subr.bf16.mxu1 %v8696_v3  ;;  %v874_v50 = vld [vmem:[%s11960_s2 + $0xf8] sm:$0xff]  ;;  %v618_v51 = vld [vmem:[%s8963_s20 + $0x100] sm:$0xff] }
  0x3c   : > { %401 = vst [vmem:[#allocation2 + $0x240] sm:$0xff] %v8697_v6  ;;  %402 = vst [vmem:[#allocation2 + $0x248] sm:$0xff] %v8697_v6  ;;  %v8533_v53 = vpack.c.bf16 %v874_v50, %v873_v49  ;;  %v629_v44 = vld [vmem:[%s8963_s20 + $0x158] sm:$0xff]  ;;  %v509_v45 = vld [vmem:[%s8975_s28 + $0x1a0] sm:$0xff] }
  0x3d   : > { %403 = vst [vmem:[#allocation2 + $0x250] sm:$0xff] %v8697_v6  ;;  %404 = vst [vmem:[#allocation2 + $0x258] sm:$0xff] %v8697_v6  ;;  %v639_v50 = vld [vmem:[%s8963_s20 + $0x1a8] sm:$0xff] }
  0x3e   : > { %405 = vst [vmem:[#allocation2 + $0x260] sm:$0xff] %v8697_v6  ;;  %406 = vst [vmem:[#allocation2 + $0x268] sm:$0xff] %v8697_v6 }
  0x3f   : > { %407 = vst [vmem:[#allocation2 + $0x270] sm:$0xff] %v8697_v6  ;;  %408 = vst [vmem:[#allocation2 + $0x278] sm:$0xff] %v8697_v6 }
  0x40   : > { %409 = vst [vmem:[#allocation2 + $0x280] sm:$0xff] %v8697_v6  ;;  %410 = vst [vmem:[#allocation2 + $0x288] sm:$0xff] %v8697_v6 }
  0x41   : > { %411 = vst [vmem:[#allocation2 + $0x290] sm:$0xff] %v8697_v6  ;;  %412 = vst [vmem:[#allocation2 + $0x298] sm:$0xff] %v8697_v6 }
  0x42   : > { %413 = vst [vmem:[#allocation2 + $0x2a0] sm:$0xff] %v8697_v6  ;;  %414 = vst [vmem:[#allocation2 + $0x2a8] sm:$0xff] %v8697_v6 }
  0x43   : > { %415 = vst [vmem:[#allocation2 + $0x2b0] sm:$0xff] %v8697_v6  ;;  %416 = vst [vmem:[#allocation2 + $0x2b8] sm:$0xff] %v8697_v6 }
  0x44   : > { %417 = vst [vmem:[#allocation2 + $0x2c0] sm:$0xff] %v8697_v6  ;;  %418 = vst [vmem:[#allocation2 + $0x2c8] sm:$0xff] %v8697_v6 }
  0x45   : > { %419 = vst [vmem:[#allocation2 + $0x2d0] sm:$0xff] %v8697_v6  ;;  %420 = vst [vmem:[#allocation2 + $0x2d8] sm:$0xff] %v8697_v6 }
  0x46   : > { %421 = vst [vmem:[#allocation2 + $0x2e0] sm:$0xff] %v8697_v6  ;;  %422 = vst [vmem:[#allocation2 + $0x2e8] sm:$0xff] %v8697_v6 }
  0x47   : > { %423 = vst [vmem:[#allocation2 + $0x2f0] sm:$0xff] %v8697_v6  ;;  %424 = vst [vmem:[#allocation2 + $0x2f8] sm:$0xff] %v8697_v6 }
  0x48   : > { %425 = vst [vmem:[#allocation2 + $0x300] sm:$0xff] %v8697_v6  ;;  %426 = vst [vmem:[#allocation2 + $0x308] sm:$0xff] %v8697_v6 }
  0x49   : > { %427 = vst [vmem:[#allocation2 + $0x310] sm:$0xff] %v8697_v6  ;;  %428 = vst [vmem:[#allocation2 + $0x318] sm:$0xff] %v8697_v6 }
  0x4a   : > { %429 = vst [vmem:[#allocation2 + $0x320] sm:$0xff] %v8697_v6  ;;  %430 = vst [vmem:[#allocation2 + $0x328] sm:$0xff] %v8697_v6 }
  0x4b   : > { %431 = vst [vmem:[#allocation2 + $0x330] sm:$0xff] %v8697_v6  ;;  %432 = vst [vmem:[#allocation2 + $0x338] sm:$0xff] %v8697_v6 }
  0x4c   : > { %433 = vst [vmem:[#allocation2 + $0x340] sm:$0xff] %v8697_v6  ;;  %434 = vst [vmem:[#allocation2 + $0x348] sm:$0xff] %v8697_v6 }
  0x4d   : > { %435 = vst [vmem:[#allocation2 + $0x350] sm:$0xff] %v8697_v6  ;;  %436 = vst [vmem:[#allocation2 + $0x358] sm:$0xff] %v8697_v6 }
  0x4e   : > { %437 = vst [vmem:[#allocation2 + $0x360] sm:$0xff] %v8697_v6  ;;  %438 = vst [vmem:[#allocation2 + $0x368] sm:$0xff] %v8697_v6 }
  0x4f   : > { %439 = vst [vmem:[#allocation2 + $0x370] sm:$0xff] %v8697_v6  ;;  %440 = vst [vmem:[#allocation2 + $0x378] sm:$0xff] %v8697_v6 }
  0x50   : > { %441 = vst [vmem:[#allocation2 + $0x380] sm:$0xff] %v8697_v6  ;;  %442 = vst [vmem:[#allocation2 + $0x388] sm:$0xff] %v8697_v6 }
  0x51   : > { %443 = vst [vmem:[#allocation2 + $0x390] sm:$0xff] %v8697_v6  ;;  %444 = vst [vmem:[#allocation2 + $0x398] sm:$0xff] %v8697_v6 }
  0x52   : > { %445 = vst [vmem:[#allocation2 + $0x3a0] sm:$0xff] %v8697_v6  ;;  %446 = vst [vmem:[#allocation2 + $0x3a8] sm:$0xff] %v8697_v6 }
  0x53   : > { %447 = vst [vmem:[#allocation2 + $0x3b0] sm:$0xff] %v8697_v6  ;;  %448 = vst [vmem:[#allocation2 + $0x3b8] sm:$0xff] %v8697_v6 }
  0x54   : > { %449 = vst [vmem:[#allocation2 + $0x3c0] sm:$0xff] %v8697_v6  ;;  %450 = vst [vmem:[#allocation2 + $0x3c8] sm:$0xff] %v8697_v6 }
  0x55   : > { %451 = vst [vmem:[#allocation2 + $0x3d0] sm:$0xff] %v8697_v6  ;;  %452 = vst [vmem:[#allocation2 + $0x3d8] sm:$0xff] %v8697_v6 }
  0x56   : > { %453 = vst [vmem:[#allocation2 + $0x3e0] sm:$0xff] %v8697_v6  ;;  %454 = vst [vmem:[#allocation2 + $0x3e8] sm:$0xff] %v8697_v6 }
  0x57   : > { %455 = vst [vmem:[#allocation2 + $0x3f0] sm:$0xff] %v8697_v6  ;;  %456 = vst [vmem:[#allocation2 + $0x3f8] sm:$0xff] %v8697_v6  ;;  %v475_v6 = vld [vmem:[%s8975_s28 + $0x90] sm:$0xff] }
  0x58   : > { %651 = vst.msk [vmem:[#allocation2 + $0x8] sm:$0xff] %vm650_vm0, %v586_v15  ;;  %652 = vst.msk [vmem:[#allocation2 + $0x18] sm:$0xff] %vm650_vm0, %v587_v18  ;;  %v609_v15 = vld [vmem:[%s8963_s20 + $0xb8] sm:$0xff]  ;;  %v863_v18 = vld [vmem:[%s11960_s2 + $0xa0] sm:$0xff] }
  0x59   : > { %522 = vst.msk [vmem:[#allocation2] sm:$0xff] %vm521_vm1, %v457_v17  ;;  %523 = vst.msk [vmem:[#allocation2 + $0x10] sm:$0xff] %vm521_vm1, %v458_v19  ;;  %v8515_v17 = vpack.c.bf16 %v862_v0, %v861_v63  ;;  %v864_v19 = vld [vmem:[%s11960_s2 + $0xa8] sm:$0xff] }
  0x5a   : > { %653 = vst.msk [vmem:[#allocation2 + $0x28] sm:$0xff] %vm650_vm0, %v588_v20  ;;  %654 = vst.msk [vmem:[#allocation2 + $0x38] sm:$0xff] %vm650_vm0, %v589_v22  ;;  %v8518_v20 = vpack.c.bf16 %v864_v19, %v863_v18  ;;  %v866_v22 = vld [vmem:[%s11960_s2 + $0xb8] sm:$0xff]  ;;  %v635_v19 = vld [vmem:[%s8963_s20 + $0x188] sm:$0xff] }
  0x5b   : > { %524 = vst.msk [vmem:[#allocation2 + $0x20] sm:$0xff] %vm521_vm1, %v459_v21  ;;  %525 = vst.msk [vmem:[#allocation2 + $0x30] sm:$0xff] %vm521_vm1, %v460_v23  ;;  %8516 = vmatpush1.bf16.msra.mxu0 %v8515_v17  ;;  %v865_v21 = vld [vmem:[%s11960_s2 + $0xb0] sm:$0xff]  ;;  %8576 = vmatpush1.bf16.msra.mxu1 %v8515_v17  ;;  %v867_v23 = vld [vmem:[%s11960_s2 + $0xc0] sm:$0xff] }
  0x5c   : > { %655 = vst.msk [vmem:[#allocation2 + $0x48] sm:$0xff] %vm650_vm0, %v590_v24  ;;  %656 = vst.msk [vmem:[#allocation2 + $0x58] sm:$0xff] %vm650_vm0, %v591_v28  ;;  %8517 = vmatprep.subr.bf16.mxu0 %v8696_v3  ;;  %8561 = vmatprep.subr.bf16.mxu1 %v8696_v3  ;;  %v868_v24 = vld [vmem:[%s11960_s2 + $0xc8] sm:$0xff]  ;;  %v8521_v26 = vpack.c.bf16 %v866_v22, %v865_v21  ;;  %v496_v17 = vld [vmem:[%s8975_s28 + $0x138] sm:$0xff] }
  0x5d   : > { %526 = vst.msk [vmem:[#allocation2 + $0x40] sm:$0xff] %vm521_vm1, %v461_v25  ;;  %527 = vst.msk [vmem:[#allocation2 + $0x50] sm:$0xff] %vm521_vm1, %v462_v29  ;;  %v610_v25 = vld [vmem:[%s8963_s20 + $0xc0] sm:$0xff]  ;;  %v611_v28 = vld [vmem:[%s8963_s20 + $0xc8] sm:$0xff] }
  0x5e   : > { %657 = vst.msk [vmem:[#allocation2 + $0x68] sm:$0xff] %vm650_vm0, %v592_v30  ;;  %658 = vst.msk [vmem:[#allocation2 + $0x78] sm:$0xff] %vm650_vm0, %v593_v33  ;;  %v482_v29 = vld [vmem:[%s8975_s28 + $0xc8] sm:$0xff]  ;;  %v612_v30 = vld [vmem:[%s8963_s20 + $0xd0] sm:$0xff] }
  0x5f   : > { %528 = vst.msk [vmem:[#allocation2 + $0x60] sm:$0xff] %vm521_vm1, %v463_v32  ;;  %529 = vst.msk [vmem:[#allocation2 + $0x70] sm:$0xff] %vm521_vm1, %v464_v34  ;;  %v716_v41 = vld [vmem:[#allocation2 + $0x8] sm:$0xff]  ;;  %8519 = vmatpush1.bf16.msra.mxu0 %v8518_v20  ;;  %v613_v32 = vld [vmem:[%s8963_s20 + $0xd8] sm:$0xff]  ;;  %8577 = vmatpush1.bf16.msra.mxu1 %v8518_v20 }
  0x60   : > { %659 = vst.msk [vmem:[#allocation2 + $0x88] sm:$0xff] %vm650_vm0, %v594_v35  ;;  %660 = vst.msk [vmem:[#allocation2 + $0x98] sm:$0xff] %vm650_vm0, %v595_v37  ;;  %946 = vmatprep.mubr.f32.mxu0 %v716_v41  ;;  %8520 = vmatprep.subr.bf16.mxu0 %v8696_v3  ;;  %v484_v33 = vld [vmem:[%s8975_s28 + $0xd8] sm:$0xff]  ;;  %v614_v34 = vld [vmem:[%s8963_s20 + $0xe0] sm:$0xff] }
  0x61   : > { %530 = vst.msk [vmem:[#allocation2 + $0x80] sm:$0xff] %vm521_vm1, %v465_v36  ;;  %531 = vst.msk [vmem:[#allocation2 + $0x90] sm:$0xff] %vm521_vm1, %v466_v38  ;;  %v485_v35 = vld [vmem:[%s8975_s28 + $0xe0] sm:$0xff]  ;;  %8562 = vmatprep.subr.bf16.mxu1 %v8696_v3  ;;  %v615_v36 = vld [vmem:[%s8963_s20 + $0xe8] sm:$0xff]  ;;  %v8524_v38 = vpack.c.bf16 %v868_v24, %v867_v23 }
  0x62   : > { %661 = vst.msk [vmem:[#allocation2 + $0xa8] sm:$0xff] %vm650_vm0, %v596_v39  ;;  %662 = vst.msk [vmem:[#allocation2 + $0xb8] sm:$0xff] %vm650_vm0, %v597_v42  ;;  %v486_v37 = vld [vmem:[%s8975_s28 + $0xe8] sm:$0xff]  ;;  %v869_v39 = vld [vmem:[%s11960_s2 + $0xd0] sm:$0xff] }
  0x63   : > { %532 = vst.msk [vmem:[#allocation2 + $0xa0] sm:$0xff] %vm521_vm1, %v467_v40  ;;  %533 = vst.msk [vmem:[#allocation2 + $0xb0] sm:$0xff] %vm521_vm1, %v468_v43  ;;  %8522 = vmatpush1.bf16.msra.mxu0 %v8521_v26  ;;  %v870_v40 = vld [vmem:[%s11960_s2 + $0xd8] sm:$0xff]  ;;  %v616_v41 = vld [vmem:[%s8963_s20 + $0xf0] sm:$0xff]  ;;  %8578 = vmatpush1.bf16.msra.mxu1 %v8521_v26 }
  0x64   : > { %663 = vst.msk [vmem:[#allocation2 + $0xc8] sm:$0xff] %vm650_vm0, %v598_v52  ;;  %664 = vst.msk [vmem:[#allocation2 + $0xd8] sm:$0xff] %vm650_vm0, %v599_v55  ;;  %8523 = vmatprep.subr.bf16.mxu0 %v8696_v3  ;;  %v487_v42 = vld [vmem:[%s8975_s28 + $0xf0] sm:$0xff]  ;;  %8563 = vmatprep.subr.bf16.mxu1 %v8696_v3  ;;  %v8527_v43 = vpack.c.bf16 %v870_v40, %v869_v39  ;;  %v489_v52 = vld [vmem:[%s8975_s28 + $0x100] sm:$0xff] }
  0x65   : > { %534 = vst.msk [vmem:[#allocation2 + $0xc0] sm:$0xff] %vm521_vm1, %v469_v54  ;;  %535 = vst.msk [vmem:[#allocation2 + $0xd0] sm:$0xff] %vm521_vm1, %v470_v56  ;;  %v619_v54 = vld [vmem:[%s8963_s20 + $0x108] sm:$0xff]  ;;  %v715_v56 = vld [vmem:[#allocation2] sm:$0xff] }
  0x66   : > { %665 = vst.msk [vmem:[#allocation2 + $0xe8] sm:$0xff] %vm650_vm0, %v600_v57  ;;  %666 = vst.msk [vmem:[#allocation2 + $0xf8] sm:$0xff] %vm650_vm0, %v601_v59  ;;  %v490_v55 = vld [vmem:[%s8975_s28 + $0x108] sm:$0xff]  ;;  %v718_v57 = vld [vmem:[#allocation2 + $0x18] sm:$0xff] }
  0x67   : > { %536 = vst.msk [vmem:[#allocation2 + $0xe0] sm:$0xff] %vm521_vm1, %v471_v58  ;;  %537 = vst.msk [vmem:[#allocation2 + $0xf0] sm:$0xff] %vm521_vm1, %v472_v60  ;;  %8525 = vmatpush1.bf16.msra.mxu0 %v8524_v38  ;;  %8579 = vmatpush1.bf16.msra.mxu1 %v8524_v38  ;;  %v620_v58 = vld [vmem:[%s8963_s20 + $0x110] sm:$0xff]  ;;  %v719_v63 = vld [vmem:[#allocation2 + $0x20] sm:$0xff] }
  0x68   : > { %667 = vst.msk [vmem:[#allocation2 + $0x108] sm:$0xff] %vm650_vm0, %v602_v61  ;;  %668 = vst.msk [vmem:[#allocation2 + $0x118] sm:$0xff] %vm650_vm0, %v603_v1  ;;  %8526 = vmatprep.subr.bf16.mxu0 %v8696_v3  ;;  %8564 = vmatprep.subr.bf16.mxu1 %v8696_v3  ;;  %v491_v59 = vld [vmem:[%s8975_s28 + $0x110] sm:$0xff]  ;;  %v720_v61 = vld [vmem:[#allocation2 + $0x28] sm:$0xff] }
  0x69   : > { %538 = vst.msk [vmem:[#allocation2 + $0x100] sm:$0xff] %vm521_vm1, %v473_v62  ;;  %539 = vst.msk [vmem:[#allocation2 + $0x110] sm:$0xff] %vm521_vm1, %v474_v2  ;;  %v717_v60 = vld [vmem:[#allocation2 + $0x10] sm:$0xff]  ;;  %v492_v62 = vld [vmem:[%s8975_s28 + $0x118] sm:$0xff] }
  0x6a   : > { %669 = vst.msk [vmem:[#allocation2 + $0x128] sm:$0xff] %vm650_vm0, %v604_v4  ;;  %670 = vst.msk [vmem:[#allocation2 + $0x138] sm:$0xff] %vm650_vm0, %v605_v7  ;;  %v722_v0 = vld [vmem:[#allocation2 + $0x38] sm:$0xff]  ;;  %v622_v1 = vld [vmem:[%s8963_s20 + $0x120] sm:$0xff] }
  0x6b   : > { %540 = vst.msk [vmem:[#allocation2 + $0x120] sm:$0xff] %vm521_vm1, %v475_v6  ;;  %541 = vst.msk [vmem:[#allocation2 + $0x130] sm:$0xff] %vm521_vm1, %v476_v8  ;;  %8528 = vmatpush1.bf16.msra.mxu0 %v8527_v43  ;;  %8580 = vmatpush1.bf16.msra.mxu1 %v8527_v43  ;;  %v493_v2 = vld [vmem:[%s8975_s28 + $0x120] sm:$0xff]  ;;  %v721_v4 = vld [vmem:[#allocation2 + $0x30] sm:$0xff] }
  0x6c   : > { %671 = vst.msk [vmem:[#allocation2 + $0x148] sm:$0xff] %vm650_vm0, %v606_v9  ;;  %672 = vst.msk [vmem:[#allocation2 + $0x158] sm:$0xff] %vm650_vm0, %v607_v11  ;;  %8529 = vmatprep.subr.bf16.mxu0 %v8696_v3  ;;  %8565 = vmatprep.subr.bf16.mxu1 %v8696_v3  ;;  %v724_v5 = vld [vmem:[#allocation2 + $0x48] sm:$0xff]  ;;  %v723_v8 = vld [vmem:[#allocation2 + $0x40] sm:$0xff] }
  0x6d   : > { %542 = vst.msk [vmem:[#allocation2 + $0x140] sm:$0xff] %vm521_vm1, %v477_v10  ;;  %543 = vst.msk [vmem:[#allocation2 + $0x150] sm:$0xff] %vm521_vm1, %v478_v12  ;;  %v623_v6 = vld [vmem:[%s8963_s20 + $0x128] sm:$0xff]  ;;  %v726_v9 = vld [vmem:[#allocation2 + $0x58] sm:$0xff] }
  0x6e   : > { %673 = vst.msk [vmem:[#allocation2 + $0x168] sm:$0xff] %vm650_vm0, %v608_v13  ;;  %674 = vst.msk [vmem:[#allocation2 + $0x178] sm:$0xff] %vm650_vm0, %v609_v15  ;;  %v494_v7 = vld [vmem:[%s8975_s28 + $0x128] sm:$0xff]  ;;  %v624_v10 = vld [vmem:[%s8963_s20 + $0x130] sm:$0xff] }
  0x6f   : > { %544 = vst.msk [vmem:[#allocation2 + $0x160] sm:$0xff] %vm521_vm1, %v479_v14  ;;  %545 = vst.msk [vmem:[#allocation2 + $0x170] sm:$0xff] %vm521_vm1, %v480_v16  ;;  %8531 = vmatpush1.bf16.msra.mxu0 %v8530_v47  ;;  %8581 = vmatpush1.bf16.msra.mxu1 %v8530_v47  ;;  %v495_v11 = vld [vmem:[%s8975_s28 + $0x130] sm:$0xff]  ;;  %v634_v13 = vld [vmem:[%s8963_s20 + $0x180] sm:$0xff] }
  0x70   : > { %675 = vst.msk [vmem:[#allocation2 + $0x188] sm:$0xff] %vm650_vm0, %v610_v25  ;;  %676 = vst.msk [vmem:[#allocation2 + $0x198] sm:$0xff] %vm650_vm0, %v611_v28  ;;  %8532 = vmatprep.subr.bf16.mxu0 %v8696_v3  ;;  %8566 = vmatprep.subr.bf16.mxu1 %v8696_v3  ;;  %v621_v3 = vld [vmem:[%s8963_s20 + $0x118] sm:$0xff]  ;;  %v725_v12 = vld [vmem:[#allocation2 + $0x50] sm:$0xff] }
  0x71   : > { %546 = vst.msk [vmem:[#allocation2 + $0x180] sm:$0xff] %vm521_vm1, %v481_v27  ;;  %547 = vst.msk [vmem:[#allocation2 + $0x190] sm:$0xff] %vm521_vm1, %v482_v29  ;;  %v728_v14 = vld [vmem:[#allocation2 + $0x68] sm:$0xff]  ;;  %v625_v15 = vld [vmem:[%s8963_s20 + $0x138] sm:$0xff] }
  0x72   : > { %677 = vst.msk [vmem:[#allocation2 + $0x1a8] sm:$0xff] %vm650_vm0, %v612_v30  ;;  %678 = vst.msk [vmem:[#allocation2 + $0x1b8] sm:$0xff] %vm650_vm0, %v613_v32  ;;  %v505_v16 = vld [vmem:[%s8975_s28 + $0x180] sm:$0xff]  ;;  %v730_v20 = vld [vmem:[#allocation2 + $0x78] sm:$0xff] }
  0x73   : > { %548 = vst.msk [vmem:[#allocation2 + $0x1a0] sm:$0xff] %vm521_vm1, %v483_v31  ;;  %549 = vst.msk [vmem:[#allocation2 + $0x1b0] sm:$0xff] %vm521_vm1, %v484_v33  ;;  %8534 = vmatpush1.bf16.msra.mxu0 %v8533_v53  ;;  %8582 = vmatpush1.bf16.msra.mxu1 %v8533_v53  ;;  %v727_v18 = vld [vmem:[#allocation2 + $0x60] sm:$0xff]  ;;  %v506_v22 = vld [vmem:[%s8975_s28 + $0x188] sm:$0xff] }
  0x74   : > { %679 = vst.msk [vmem:[#allocation2 + $0x1c8] sm:$0xff] %vm650_vm0, %v614_v34  ;;  %680 = vst.msk [vmem:[#allocation2 + $0x1d8] sm:$0xff] %vm650_vm0, %v615_v36  ;;  %v626_v21 = vld [vmem:[%s8963_s20 + $0x140] sm:$0xff]  ;;  %v729_v24 = vld [vmem:[#allocation2 + $0x70] sm:$0xff] }
  0x75   : > { %550 = vst.msk [vmem:[#allocation2 + $0x1c0] sm:$0xff] %vm521_vm1, %v485_v35  ;;  %551 = vst.msk [vmem:[#allocation2 + $0x1d0] sm:$0xff] %vm521_vm1, %v486_v37  ;;  %v497_v23 = vld [vmem:[%s8975_s28 + $0x140] sm:$0xff]  ;;  %v636_v26 = vld [vmem:[%s8963_s20 + $0x190] sm:$0xff] }
  0x76   : > { %681 = vst.msk [vmem:[#allocation2 + $0x1e8] sm:$0xff] %vm650_vm0, %v616_v41  ;;  %682 = vst.msk [vmem:[#allocation2 + $0x1f8] sm:$0xff] %vm650_vm0, %v617_v46  ;;  %947 = vmatmul.mubr.f32.vlgmr.msra.gmra.mrb[0].mxu0 %v715_v56  ;;  %v732_v27 = vld [vmem:[#allocation2 + $0x88] sm:$0xff]  ;;  %v507_v30 = vld [vmem:[%s8975_s28 + $0x190] sm:$0xff] }
  0x77   : > { %552 = vst.msk [vmem:[#allocation2 + $0x1e0] sm:$0xff] %vm521_vm1, %v487_v42  ;;  %553 = vst.msk [vmem:[#allocation2 + $0x1f0] sm:$0xff] %vm521_vm1, %v488_v48  ;;  %951 = vmatprep.mubr.f32.mxu0 %v718_v57  ;;  %v627_v29 = vld [vmem:[%s8963_s20 + $0x148] sm:$0xff]  ;;  %v731_v32 = vld [vmem:[#allocation2 + $0x80] sm:$0xff] }
  0x78   : > { %683 = vst.msk [vmem:[#allocation2 + $0x208] sm:$0xff] %vm650_vm0, %v618_v51  ;;  %684 = vst.msk [vmem:[#allocation2 + $0x218] sm:$0xff] %vm650_vm0, %v619_v54  ;;  %v498_v31 = vld [vmem:[%s8975_s28 + $0x148] sm:$0xff]  ;;  %v637_v34 = vld [vmem:[%s8963_s20 + $0x198] sm:$0xff] }
  0x79   : > { %554 = vst.msk [vmem:[#allocation2 + $0x200] sm:$0xff] %vm521_vm1, %v489_v52  ;;  %555 = vst.msk [vmem:[#allocation2 + $0x210] sm:$0xff] %vm521_vm1, %v490_v55  ;;  %v734_v35 = vld [vmem:[#allocation2 + $0x98] sm:$0xff]  ;;  %v628_v37 = vld [vmem:[%s8963_s20 + $0x150] sm:$0xff] }
  0x7a   : > { %685 = vst.msk [vmem:[#allocation2 + $0x228] sm:$0xff] %vm650_vm0, %v620_v58  ;;  %686 = vst.msk [vmem:[#allocation2 + $0x238] sm:$0xff] %vm650_vm0, %v621_v3  ;;  %952 = vmatmul.mubr.f32.gmra.mrb[2].mxu0 %v717_v60  ;;  %v508_v38 = vld [vmem:[%s8975_s28 + $0x198] sm:$0xff]  ;;  %v499_v39 = vld [vmem:[%s8975_s28 + $0x150] sm:$0xff] }
  0x7b   : > { %556 = vst.msk [vmem:[#allocation2 + $0x220] sm:$0xff] %vm521_vm1, %v491_v59  ;;  %557 = vst.msk [vmem:[#allocation2 + $0x230] sm:$0xff] %vm521_vm1, %v492_v62  ;;  %956 = vmatprep.mubr.f32.mxu0 %v720_v61  ;;  %v733_v40 = vld [vmem:[#allocation2 + $0x90] sm:$0xff]  ;;  %v638_v42 = vld [vmem:[%s8963_s20 + $0x1a0] sm:$0xff] }
  0x7c   : > { %687 = vst.msk [vmem:[#allocation2 + $0x248] sm:$0xff] %vm650_vm0, %v622_v1  ;;  %688 = vst.msk [vmem:[#allocation2 + $0x258] sm:$0xff] %vm650_vm0, %v623_v6  ;;  %v736_v43 = vld [vmem:[#allocation2 + $0xa8] sm:$0xff]  ;;  %v500_v47 = vld [vmem:[%s8975_s28 + $0x158] sm:$0xff] }
  0x7d   : > { %558 = vst.msk [vmem:[#allocation2 + $0x240] sm:$0xff] %vm521_vm1, %v493_v2  ;;  %559 = vst.msk [vmem:[#allocation2 + $0x250] sm:$0xff] %vm521_vm1, %v494_v7  ;;  %v735_v48 = vld [vmem:[#allocation2 + $0xa0] sm:$0xff]  ;;  %v738_v51 = vld [vmem:[#allocation2 + $0xb8] sm:$0xff] }
  0x7e   : > { %957 = vmatmul.mubr.f32.gmra.mrb[4].mxu0 %v719_v63  ;;  %689 = vst.msk [vmem:[#allocation2 + $0x268] sm:$0xff] %vm650_vm0, %v624_v10  ;;  %699 = vst.msk [vmem:[#allocation2 + $0x308] sm:$0xff] %vm650_vm0, %v634_v13  ;;  %v630_v52 = vld [vmem:[%s8963_s20 + $0x160] sm:$0xff]  ;;  %v510_v53 = vld [vmem:[%s8975_s28 + $0x1a8] sm:$0xff] }
  0x7f   : > { %961 = vmatprep.mubr.f32.mxu0 %v722_v0  ;;  %560 = vst.msk [vmem:[#allocation2 + $0x260] sm:$0xff] %vm521_vm1, %v495_v11  ;;  %570 = vst.msk [vmem:[#allocation2 + $0x300] sm:$0xff] %vm521_vm1, %v505_v16  ;;  %v501_v55 = vld [vmem:[%s8975_s28 + $0x160] sm:$0xff]  ;;  %v1332_v57 = vld [vmem:[%s11962_s4 + $0x8] sm:$0xff] }
  0x80   : > { %690 = vst.msk [vmem:[#allocation2 + $0x278] sm:$0xff] %vm650_vm0, %v625_v15  ;;  %700 = vst.msk [vmem:[#allocation2 + $0x318] sm:$0xff] %vm650_vm0, %v635_v19  ;;  %v1331_v56 = vld [vmem:[%s11962_s4] sm:$0xff]  ;;  %v737_v58 = vld [vmem:[#allocation2 + $0xb0] sm:$0xff] }
  0x81   : > { %561 = vst.msk [vmem:[#allocation2 + $0x270] sm:$0xff] %vm521_vm1, %v496_v17  ;;  %571 = vst.msk [vmem:[#allocation2 + $0x310] sm:$0xff] %vm521_vm1, %v506_v22  ;;  %v8535_v59 = vpack.c.bf16 %v1332_v57, %v1331_v56  ;;  %v640_v61 = vld [vmem:[%s8963_s20 + $0x1b0] sm:$0xff]  ;;  %v740_v3 = vld [vmem:[#allocation2 + $0xc8] sm:$0xff] }
  0x82   : > { %962 = vmatmul.mubr.f32.gmra.mrb[6].mxu0 %v721_v4  ;;  %691 = vst.msk [vmem:[#allocation2 + $0x288] sm:$0xff] %vm650_vm0, %v626_v21  ;;  %701 = vst.msk [vmem:[#allocation2 + $0x328] sm:$0xff] %vm650_vm0, %v636_v26  ;;  %v631_v63 = vld [vmem:[%s8963_s20 + $0x168] sm:$0xff]  ;;  %v511_v0 = vld [vmem:[%s8975_s28 + $0x1b0] sm:$0xff] }
  0x83   : > { %966 = vmatprep.mubr.f32.mxu0 %v724_v5  ;;  %562 = vst.msk [vmem:[#allocation2 + $0x280] sm:$0xff] %vm521_vm1, %v497_v23  ;;  %572 = vst.msk [vmem:[#allocation2 + $0x320] sm:$0xff] %vm521_vm1, %v507_v30  ;;  %8536 = vmatprep.subr.bf16.mxu1 %v8535_v59  ;;  %v502_v1 = vld [vmem:[%s8975_s28 + $0x168] sm:$0xff]  ;;  %v739_v2 = vld [vmem:[#allocation2 + $0xc0] sm:$0xff] }
  0x84   : > { %692 = vst.msk [vmem:[#allocation2 + $0x298] sm:$0xff] %vm650_vm0, %v627_v29  ;;  %702 = vst.msk [vmem:[#allocation2 + $0x338] sm:$0xff] %vm650_vm0, %v637_v34  ;;  %v641_v5 = vld [vmem:[%s8963_s20 + $0x1b8] sm:$0xff]  ;;  %v503_v10 = vld [vmem:[%s8975_s28 + $0x170] sm:$0xff] }
  0x85   : > { %v812_v25 = vld [vmem:[#allocation2 + $0x308] sm:$0xff]  ;;  %563 = vst.msk [vmem:[#allocation2 + $0x290] sm:$0xff] %vm521_vm1, %v498_v31  ;;  %573 = vst.msk [vmem:[#allocation2 + $0x330] sm:$0xff] %vm521_vm1, %v508_v38  ;;  %v742_v6 = vld [vmem:[#allocation2 + $0xd8] sm:$0xff] }
  0x86   : > { %967 = vmatmul.mubr.f32.gmra.mrb[8].mxu0 %v723_v8  ;;  %1186 = vmatprep.mubr.f32.mxu1 %v812_v25  ;;  %v811_v28 = vld [vmem:[#allocation2 + $0x300] sm:$0xff]  ;;  %693 = vst.msk [vmem:[#allocation2 + $0x2a8] sm:$0xff] %vm650_vm0, %v628_v37  ;;  %703 = vst.msk [vmem:[#allocation2 + $0x348] sm:$0xff] %vm650_vm0, %v638_v42  ;;  %v632_v8 = vld [vmem:[%s8963_s20 + $0x170] sm:$0xff] }
  0x87   : > { %971 = vmatprep.mubr.f32.mxu0 %v726_v9  ;;  %1187 = vmatmul.mubr.f32.vlgmr.msra.gmra.mrb[0].mxu1 %v811_v28  ;;  %v814_v33 = vld [vmem:[#allocation2 + $0x318] sm:$0xff]  ;;  %564 = vst.msk [vmem:[#allocation2 + $0x2a0] sm:$0xff] %vm521_vm1, %v499_v39  ;;  %574 = vst.msk [vmem:[#allocation2 + $0x340] sm:$0xff] %vm521_vm1, %v509_v45  ;;  %v741_v11 = vld [vmem:[#allocation2 + $0xd0] sm:$0xff] }
  0x88   : > { %1191 = vmatprep.mubr.f32.mxu1 %v814_v33  ;;  %v813_v36 = vld [vmem:[#allocation2 + $0x310] sm:$0xff]  ;;  %694 = vst.msk [vmem:[#allocation2 + $0x2b8] sm:$0xff] %vm650_vm0, %v629_v44  ;;  %704 = vst.msk [vmem:[#allocation2 + $0x358] sm:$0xff] %vm650_vm0, %v639_v50  ;;  %8538 = vmatpush3.bf16.msra.mxu1 %v8535_v59  ;;  %v512_v9 = vld [vmem:[%s8975_s28 + $0x1b8] sm:$0xff] }
  0x89   : > { %v816_v41 = vld [vmem:[#allocation2 + $0x328] sm:$0xff]  ;;  %565 = vst.msk [vmem:[#allocation2 + $0x2b0] sm:$0xff] %vm521_vm1, %v500_v47  ;;  %575 = vst.msk [vmem:[#allocation2 + $0x350] sm:$0xff] %vm521_vm1, %v510_v53  ;;  %v642_v13 = vld [vmem:[%s8963_s20 + $0x1c0] sm:$0xff] }
  0x8a   : > { %972 = vmatmul.mubr.f32.gmra.mrb[10].mxu0 %v725_v12  ;;  %v815_v46 = vld [vmem:[#allocation2 + $0x320] sm:$0xff]  ;;  %695 = vst.msk [vmem:[#allocation2 + $0x2c8] sm:$0xff] %vm650_vm0, %v630_v52  ;;  %705 = vst.msk [vmem:[#allocation2 + $0x368] sm:$0xff] %vm650_vm0, %v640_v61  ;;  %v633_v15 = vld [vmem:[%s8963_s20 + $0x178] sm:$0xff] }
  0x8b   : > { %976 = vmatprep.mubr.f32.mxu0 %v728_v14  ;;  %1192 = vmatmul.mubr.f32.gmra.mrb[2].mxu1 %v813_v36  ;;  %v818_v49 = vld [vmem:[#allocation2 + $0x338] sm:$0xff]  ;;  %566 = vst.msk [vmem:[#allocation2 + $0x2c0] sm:$0xff] %vm521_vm1, %v501_v55  ;;  %576 = vst.msk [vmem:[#allocation2 + $0x360] sm:$0xff] %vm521_vm1, %v511_v0  ;;  %v744_v14 = vld [vmem:[#allocation2 + $0xe8] sm:$0xff] }
  0x8c   : > { %1196 = vmatprep.mubr.f32.mxu1 %v816_v41  ;;  %v817_v54 = vld [vmem:[#allocation2 + $0x330] sm:$0xff]  ;;  %696 = vst.msk [vmem:[#allocation2 + $0x2d8] sm:$0xff] %vm650_vm0, %v631_v63  ;;  %706 = vst.msk [vmem:[#allocation2 + $0x378] sm:$0xff] %vm650_vm0, %v641_v5  ;;  %v513_v16 = vld [vmem:[%s8975_s28 + $0x1c0] sm:$0xff] }
  0x8d   : > { %v820_v60 = vld [vmem:[#allocation2 + $0x348] sm:$0xff]  ;;  %567 = vst.msk [vmem:[#allocation2 + $0x2d0] sm:$0xff] %vm521_vm1, %v502_v1  ;;  %577 = vst.msk [vmem:[#allocation2 + $0x370] sm:$0xff] %vm521_vm1, %v512_v9  ;;  %v743_v19 = vld [vmem:[#allocation2 + $0xe0] sm:$0xff] }
  0x8e   : > { %977 = vmatmul.mubr.f32.gmra.mrb[12].mxu0 %v727_v18  ;;  %v819_v62 = vld [vmem:[#allocation2 + $0x340] sm:$0xff]  ;;  %697 = vst.msk [vmem:[#allocation2 + $0x2e8] sm:$0xff] %vm650_vm0, %v632_v8  ;;  %707 = vst.msk [vmem:[#allocation2 + $0x388] sm:$0xff] %vm650_vm0, %v642_v13  ;;  %v504_v18 = vld [vmem:[%s8975_s28 + $0x178] sm:$0xff] }
  0x8f   : > { %981 = vmatprep.mubr.f32.mxu0 %v730_v20  ;;  %1197 = vmatmul.mubr.f32.gmra.mrb[4].mxu1 %v815_v46  ;;  %v822_v4 = vld [vmem:[#allocation2 + $0x358] sm:$0xff]  ;;  %568 = vst.msk [vmem:[#allocation2 + $0x2e0] sm:$0xff] %vm521_vm1, %v503_v10  ;;  %578 = vst.msk [vmem:[#allocation2 + $0x380] sm:$0xff] %vm521_vm1, %v513_v16  ;;  %v643_v21 = vld [vmem:[%s8963_s20 + $0x1c8] sm:$0xff] }
  0x90   : > { %1201 = vmatprep.mubr.f32.mxu1 %v818_v49  ;;  %v821_v7 = vld [vmem:[#allocation2 + $0x350] sm:$0xff]  ;;  %698 = vst.msk [vmem:[#allocation2 + $0x2f8] sm:$0xff] %vm650_vm0, %v633_v15  ;;  %v746_v22 = vld [vmem:[#allocation2 + $0xf8] sm:$0xff]  ;;  %708 = vst.msk [vmem:[#allocation2 + $0x398] sm:$0xff] %vm650_vm0, %v643_v21 }
  0x91   : > { %v824_v12 = vld [vmem:[#allocation2 + $0x368] sm:$0xff]  ;;  %569 = vst.msk [vmem:[#allocation2 + $0x2f0] sm:$0xff] %vm521_vm1, %v504_v18  ;;  %v1333_v25 = vld [vmem:[%s11962_s4 + $0x10] sm:$0xff]  ;;  %v1334_v26 = vld [vmem:[%s11962_s4 + $0x18] sm:$0xff] }
  0x92   : > { %982 = vmatmul.mubr.f32.gmra.mrb[14].mxu0 %v729_v24  ;;  %v823_v17 = vld [vmem:[#allocation2 + $0x360] sm:$0xff]  ;;  %v514_v23 = vld [vmem:[%s8975_s28 + $0x1c8] sm:$0xff]  ;;  %v8539_v28 = vpack.c.bf16 %v1334_v26, %v1333_v25  ;;  %v644_v30 = vld [vmem:[%s8963_s20 + $0x1d0] sm:$0xff] }
  0x93   : > { %986 = vmatprep.mubr.f32.mxu0 %v732_v27  ;;  %1202 = vmatmul.mubr.f32.gmra.mrb[6].mxu1 %v817_v54  ;;  %v826_v20 = vld [vmem:[#allocation2 + $0x378] sm:$0xff]  ;;  %579 = vst.msk [vmem:[#allocation2 + $0x390] sm:$0xff] %vm521_vm1, %v514_v23  ;;  %v745_v27 = vld [vmem:[#allocation2 + $0xf0] sm:$0xff]  ;;  %v748_v31 = vld [vmem:[#allocation2 + $0x108] sm:$0xff] }
  0x94   : > { %1206 = vmatprep.mubr.f32.mxu1 %v820_v60  ;;  %v825_v24 = vld [vmem:[#allocation2 + $0x370] sm:$0xff]  ;;  %709 = vst.msk [vmem:[#allocation2 + $0x3a8] sm:$0xff] %vm650_vm0, %v644_v30  ;;  %v747_v34 = vld [vmem:[#allocation2 + $0x100] sm:$0xff]  ;;  %8540 = vmatprep.subr.bf16.mxu1 %v8539_v28  ;;  %v645_v36 = vld [vmem:[%s8963_s20 + $0x1d8] sm:$0xff] }
  0x95   : > { %v828_v29 = vld [vmem:[#allocation2 + $0x388] sm:$0xff]  ;;  %v515_v33 = vld [vmem:[%s8975_s28 + $0x1d0] sm:$0xff]  ;;  %8542 = vmatpush3.bf16.msra.mxu1 %v8539_v28  ;;  %v516_v37 = vld [vmem:[%s8975_s28 + $0x1d8] sm:$0xff]  ;;  %710 = vst.msk [vmem:[#allocation2 + $0x3b8] sm:$0xff] %vm650_vm0, %v645_v36 }
  0x96   : > { %987 = vmatmul.mubr.f32.gmra.mrb[16].mxu0 %v731_v32  ;;  %v827_v32 = vld [vmem:[#allocation2 + $0x380] sm:$0xff]  ;;  %580 = vst.msk [vmem:[#allocation2 + $0x3a0] sm:$0xff] %vm521_vm1, %v515_v33  ;;  %581 = vst.msk [vmem:[#allocation2 + $0x3b0] sm:$0xff] %vm521_vm1, %v516_v37  ;;  %v647_v45 = vld [vmem:[%s8963_s20 + $0x1e8] sm:$0xff] }
  0x97   : > { %991 = vmatprep.mubr.f32.mxu0 %v734_v35  ;;  %1207 = vmatmul.mubr.f32.gmra.mrb[8].mxu1 %v819_v62  ;;  %v750_v35 = vld [vmem:[#allocation2 + $0x118] sm:$0xff]  ;;  %v1335_v38 = vld [vmem:[%s11962_s4 + $0x20] sm:$0xff]  ;;  %712 = vst.msk [vmem:[#allocation2 + $0x3d8] sm:$0xff] %vm650_vm0, %v647_v45  ;;  %v518_v46 = vld [vmem:[%s8975_s28 + $0x1e8] sm:$0xff] }
  0x98   : > { %1211 = vmatprep.mubr.f32.mxu1 %v822_v4  ;;  %v830_v39 = vld [vmem:[#allocation2 + $0x398] sm:$0xff]  ;;  %v646_v41 = vld [vmem:[%s8963_s20 + $0x1e0] sm:$0xff]  ;;  %v648_v47 = vld [vmem:[%s8963_s20 + $0x1f0] sm:$0xff]  ;;  %583 = vst.msk [vmem:[#allocation2 + $0x3d0] sm:$0xff] %vm521_vm1, %v518_v46 }
  0x99   : > { %711 = vst.msk [vmem:[#allocation2 + $0x3c8] sm:$0xff] %vm650_vm0, %v646_v41  ;;  %v517_v44 = vld [vmem:[%s8975_s28 + $0x1e0] sm:$0xff]  ;;  %713 = vst.msk [vmem:[#allocation2 + $0x3e8] sm:$0xff] %vm650_vm0, %v648_v47  ;;  %v752_v50 = vld [vmem:[#allocation2 + $0x128] sm:$0xff] }
  0x9a   : > { %992 = vmatmul.mubr.f32.gmra.mrb[18].mxu0 %v733_v40  ;;  %v1336_v40 = vld [vmem:[%s11962_s4 + $0x28] sm:$0xff]  ;;  %v829_v42 = vld [vmem:[#allocation2 + $0x390] sm:$0xff]  ;;  %582 = vst.msk [vmem:[#allocation2 + $0x3c0] sm:$0xff] %vm521_vm1, %v517_v44  ;;  %v751_v53 = vld [vmem:[#allocation2 + $0x120] sm:$0xff] }
  0x9b   : > { %996 = vmatprep.mubr.f32.mxu0 %v736_v43  ;;  %1212 = vmatmul.mubr.f32.gmra.mrb[10].mxu1 %v821_v7  ;;  %v8543_v43 = vpack.c.bf16 %v1336_v40, %v1335_v38  ;;  %v832_v49 = vld [vmem:[#allocation2 + $0x3a8] sm:$0xff]  ;;  %v754_v54 = vld [vmem:[#allocation2 + $0x138] sm:$0xff]  ;;  %v753_v57 = vld [vmem:[#allocation2 + $0x130] sm:$0xff] }
  0x9c   : > { %1216 = vmatprep.mubr.f32.mxu1 %v824_v12  ;;  %v834_v52 = vld [vmem:[#allocation2 + $0x3b8] sm:$0xff]  ;;  %v519_v60 = vld [vmem:[%s8975_s28 + $0x1f0] sm:$0xff]  ;;  %v760_v5 = vld [vmem:[#allocation2 + $0x168] sm:$0xff] }
  0x9d   : > { %8544 = vmatprep.subr.bf16.mxu1 %v8543_v43  ;;  %v833_v55 = vld [vmem:[#allocation2 + $0x3b0] sm:$0xff]  ;;  %584 = vst.msk [vmem:[#allocation2 + $0x3e0] sm:$0xff] %vm521_vm1, %v519_v60  ;;  %v649_v62 = vld [vmem:[%s8963_s20 + $0x1f8] sm:$0xff]  ;;  %v759_v7 = vld [vmem:[#allocation2 + $0x160] sm:$0xff]  ;;  %s8700_s20 = smov [#allocation4]  }
  0x9e   : > { %997 = vmatmul.mubr.f32.gmra.mrb[20].mxu0 %v735_v48  ;;  %v749_v48 = vld [vmem:[#allocation2 + $0x110] sm:$0xff]  ;;  %8546 = vmatpush3.bf16.msra.mxu1 %v8543_v43  ;;  %v838_v61 = vld [vmem:[#allocation2 + $0x3d8] sm:$0xff]  ;;  %714 = vst.msk [vmem:[#allocation2 + $0x3f8] sm:$0xff] %vm650_vm0, %v649_v62  ;;  %v764_v15 = vld [vmem:[#allocation2 + $0x188] sm:$0xff]  ;;  %vm7859_vm0 = vcmask 982912   ;;  %s8636_s7 = sshll.u32 %s8700_s20, 4  ;;  %s8637_s7 = int_to_ptr.vmem [resolvable:$false] %s8636_s7 }
  0x9f   : > { %1001 = vmatprep.mubr.f32.mxu0 %v738_v51  ;;  %1217 = vmatmul.mubr.f32.gmra.mrb[12].mxu1 %v823_v17  ;;  %v831_v51 = vld [vmem:[#allocation2 + $0x3a0] sm:$0xff]  ;;  %v758_v63 = vld [vmem:[#allocation2 + $0x158] sm:$0xff]  ;;  %v837_v0 = vld [vmem:[#allocation2 + $0x3d0] sm:$0xff]  ;;  %p8639_p0 = scmp.lt.s32.totalorder %s11918_s21, %s8637_s7 }
  0xa0   : > { %1221 = vmatprep.mubr.f32.mxu1 %v826_v20  ;;  %v836_v56 = vld [vmem:[#allocation2 + $0x3c8] sm:$0xff]  ;;  %v520_v1 = vld [vmem:[%s8975_s28 + $0x1f8] sm:$0xff]  ;;  %v757_v4 = vld [vmem:[#allocation2 + $0x150] sm:$0xff]  ;;  %s8638_s28 = scalar_lea.vmem %s8637_s7, 128 }
  0xa1   : > { %v835_v59 = vld [vmem:[#allocation2 + $0x3c0] sm:$0xff]  ;;  %585 = vst.msk [vmem:[#allocation2 + $0x3f0] sm:$0xff] %vm521_vm1, %v520_v1  ;;  %v1337_v9 = vld [vmem:[%s11962_s4 + $0x30] sm:$0xff]  ;;  %v1338_v10 = vld [vmem:[%s11962_s4 + $0x38] sm:$0xff]  ;;  %vm7866_vm1 = vcmask 1048512   ;;  %p8640_p1 = scmp.lt.s32.totalorder %s8638_s28, %s8632_s27 }
  0xa2   : > { %1002 = vmatmul.mubr.f32.gmra.mrb[22].mxu0 %v737_v58  ;;  %v756_v58 = vld [vmem:[#allocation2 + $0x148] sm:$0xff]  ;;  %v8547_v13 = vpack.c.bf16 %v1338_v10, %v1337_v9  ;;  %v763_v16 = vld [vmem:[#allocation2 + $0x180] sm:$0xff]  ;;  %v766_v17 = vld [vmem:[#allocation2 + $0x198] sm:$0xff] }
  0xa3   : > { %1006 = vmatprep.mubr.f32.mxu0 %v740_v3  ;;  %1222 = vmatmul.mubr.f32.gmra.mrb[14].mxu1 %v825_v24  ;;  %v755_v3 = vld [vmem:[#allocation2 + $0x140] sm:$0xff]  ;;  %v765_v18 = vld [vmem:[#allocation2 + $0x190] sm:$0xff]  ;;  %v770_v21 = vld [vmem:[#allocation2 + $0x1b8] sm:$0xff]  ;;  %p8641_p2 = por %p8640_p1, %p8639_p0 }
  0xa4   : > { %1226 = vmatprep.mubr.f32.mxu1 %v828_v29  ;;  %8548 = vmatprep.subr.bf16.mxu1 %v8547_v13  ;;  %v767_v20 = vld [vmem:[#allocation2 + $0x1a0] sm:$0xff]  ;;  %v772_v23 = vld [vmem:[#allocation2 + $0x1c8] sm:$0xff]  ;;  %v774_v25 = vld [vmem:[#allocation2 + $0x1d8] sm:$0xff] }
  0xa5   : > { %v842_v8 = vld [vmem:[#allocation2 + $0x3f8] sm:$0xff]  ;;  %8550 = vmatpush3.bf16.msra.mxu1 %v8547_v13  ;;  %v771_v24 = vld [vmem:[#allocation2 + $0x1c0] sm:$0xff]  ;;  %v773_v26 = vld [vmem:[#allocation2 + $0x1d0] sm:$0xff]  ;;  %p8642_p3 = pnand %p8641_p2, %p8635_p13 }
  0xa6   : > { %1007 = vmatmul.mubr.f32.gmra.mrb[24].mxu0 %v739_v2  ;;  %v840_v2 = vld [vmem:[#allocation2 + $0x3e8] sm:$0xff]  ;;  %v775_v28 = vld [vmem:[#allocation2 + $0x1e0] sm:$0xff]  ;;  %v778_v29 = vld [vmem:[#allocation2 + $0x1f8] sm:$0xff] }
  0xa7   : > { %1011 = vmatprep.mubr.f32.mxu0 %v742_v6  ;;  %1227 = vmatmul.mubr.f32.gmra.mrb[16].mxu1 %v827_v32  ;;  %v839_v6 = vld [vmem:[#allocation2 + $0x3e0] sm:$0xff]  ;;  %v777_v30 = vld [vmem:[#allocation2 + $0x1f0] sm:$0xff]  ;;  %v782_v33 = vld [vmem:[#allocation2 + $0x218] sm:$0xff] }
  0xa8   : > { %1231 = vmatprep.mubr.f32.mxu1 %v830_v39  ;;  %v841_v12 = vld [vmem:[#allocation2 + $0x3f0] sm:$0xff]  ;;  %v779_v32 = vld [vmem:[#allocation2 + $0x200] sm:$0xff]  ;;  %v786_v37 = vld [vmem:[#allocation2 + $0x238] sm:$0xff] }
  0xa9   : > { %v783_v36 = vld [vmem:[#allocation2 + $0x220] sm:$0xff]  ;;  %v785_v38 = vld [vmem:[#allocation2 + $0x230] sm:$0xff]  ;;  %v788_v39 = vld [vmem:[#allocation2 + $0x248] sm:$0xff] }
  0xaa   : > { %1012 = vmatmul.mubr.f32.gmra.mrb[26].mxu0 %v741_v11  ;;  %v762_v11 = vld [vmem:[#allocation2 + $0x178] sm:$0xff]  ;;  %v787_v40 = vld [vmem:[#allocation2 + $0x240] sm:$0xff]  ;;  %v792_v43 = vld [vmem:[#allocation2 + $0x268] sm:$0xff] }
  0xab   : > { %1016 = vmatprep.mubr.f32.mxu0 %v744_v14  ;;  %1232 = vmatmul.mubr.f32.gmra.mrb[18].mxu1 %v829_v42  ;;  %v761_v14 = vld [vmem:[#allocation2 + $0x170] sm:$0xff]  ;;  %v790_v41 = vld [vmem:[#allocation2 + $0x258] sm:$0xff]  ;;  %v791_v44 = vld [vmem:[#allocation2 + $0x260] sm:$0xff] }
  0xac   : > { %1236 = vmatprep.mubr.f32.mxu1 %v832_v49  ;;  %v789_v42 = vld [vmem:[#allocation2 + $0x250] sm:$0xff]  ;;  %v794_v45 = vld [vmem:[#allocation2 + $0x278] sm:$0xff]  ;;  %v796_v47 = vld [vmem:[#allocation2 + $0x288] sm:$0xff] }
  0xad   : > { %v793_v46 = vld [vmem:[#allocation2 + $0x270] sm:$0xff]  ;;  %v798_v49 = vld [vmem:[#allocation2 + $0x298] sm:$0xff]  ;;  %v807_v60 = vld [vmem:[#allocation2 + $0x2e0] sm:$0xff] }
  0xae   : > { %1017 = vmatmul.mubr.f32.gmra.mrb[28].mxu0 %v743_v19  ;;  %v768_v19 = vld [vmem:[#allocation2 + $0x1a8] sm:$0xff]  ;;  %v9359_v62 = vld [vmem:[%s11961_s3] ss:$0 sm:$0xff] }
  0xaf   : > { %1021 = vmatprep.mubr.f32.mxu0 %v746_v22  ;;  %1237 = vmatmul.mubr.f32.gmra.mrb[20].mxu1 %v831_v51  ;;  %v769_v22 = vld [vmem:[#allocation2 + $0x1b0] sm:$0xff]  ;;  %v800_v51 = vld [vmem:[#allocation2 + $0x2a8] sm:$0xff] }
  0xb0   : > { %1241 = vmatprep.mubr.f32.mxu1 %v834_v52  ;;  %v799_v52 = vld [vmem:[#allocation2 + $0x2a0] sm:$0xff] }
  0xb2   : > { %1022 = vmatmul.mubr.f32.gmra.mrb[30].mxu0 %v745_v27  ;;  %v776_v27 = vld [vmem:[#allocation2 + $0x1e8] sm:$0xff] }
  0xb3   : > { %1026 = vmatprep.mubr.f32.mxu0 %v748_v31  ;;  %1242 = vmatmul.mubr.f32.gmra.mrb[22].mxu1 %v833_v55  ;;  %v780_v31 = vld [vmem:[#allocation2 + $0x208] sm:$0xff] }
  0xb4   : > { %1246 = vmatprep.mubr.f32.mxu1 %v836_v56  ;;  %v804_v55 = vld [vmem:[#allocation2 + $0x2c8] sm:$0xff]  ;;  %v803_v56 = vld [vmem:[#allocation2 + $0x2c0] sm:$0xff] }
  0xb6   : > { %1027 = vmatmul.mubr.f32.gmra.mrb[32].mxu0 %v747_v34  ;;  %v781_v34 = vld [vmem:[#allocation2 + $0x210] sm:$0xff] }
  0xb7   : > { %1031 = vmatprep.mubr.f32.mxu0 %v750_v35  ;;  %1247 = vmatmul.mubr.f32.gmra.mrb[24].mxu1 %v835_v59  ;;  %v784_v35 = vld [vmem:[#allocation2 + $0x228] sm:$0xff] }
  0xb8   : > { %1251 = vmatprep.mubr.f32.mxu1 %v838_v61  ;;  %v808_v59 = vld [vmem:[#allocation2 + $0x2e8] sm:$0xff]  ;;  %v810_v61 = vld [vmem:[#allocation2 + $0x2f8] sm:$0xff] }
  0xba   : > { %1032 = vmatmul.mubr.f32.gmra.mrb[34].mxu0 %v749_v48  ;;  %v795_v48 = vld [vmem:[#allocation2 + $0x280] sm:$0xff] }
  0xbb   : > { %1036 = vmatprep.mubr.f32.mxu0 %v752_v50  ;;  %1252 = vmatmul.mubr.f32.gmra.mrb[26].mxu1 %v837_v0  ;;  %v797_v50 = vld [vmem:[#allocation2 + $0x290] sm:$0xff] }
  0xbc   : > { %1256 = vmatprep.mubr.f32.mxu1 %v840_v2 }
  0xbe   : > { %1037 = vmatmul.mubr.f32.gmra.mrb[36].mxu0 %v751_v53  ;;  %v802_v53 = vld [vmem:[#allocation2 + $0x2b8] sm:$0xff] }
  0xbf   : > { %1041 = vmatprep.mubr.f32.mxu0 %v754_v54  ;;  %1257 = vmatmul.mubr.f32.gmra.mrb[28].mxu1 %v839_v6  ;;  %v801_v54 = vld [vmem:[#allocation2 + $0x2b0] sm:$0xff] }
  0xc0   : > { %1261 = vmatprep.mubr.f32.mxu1 %v842_v8 }
  0xc2   : > { %1042 = vmatmul.mubr.f32.gmra.mrb[38].mxu0 %v753_v57  ;;  %v806_v57 = vld [vmem:[#allocation2 + $0x2d8] sm:$0xff] }
  0xc3   : > { %1046 = vmatprep.mubr.f32.mxu0 %v756_v58  ;;  %1262 = vmatmul.mubr.f32.gmra.mrb[30].mxu1 %v841_v12  ;;  %v805_v58 = vld [vmem:[#allocation2 + $0x2d0] sm:$0xff] }
  0xc6   : > { %1047 = vmatmul.mubr.f32.gmra.mrb[40].mxu0 %v755_v3  ;;  %v809_v3 = vld [vmem:[#allocation2 + $0x2f0] sm:$0xff] }
  0xc7   : > { %1051 = vmatprep.mubr.f32.mxu0 %v758_v63 }
  0xca   : > { %1052 = vmatmul.mubr.f32.gmra.mrb[42].mxu0 %v757_v4 }
  0xcb   : > { %1056 = vmatprep.mubr.f32.mxu0 %v760_v5 }
  0xce   : > { %1057 = vmatmul.mubr.f32.gmra.mrb[44].mxu0 %v759_v7 }
  0xcf   : > { %1061 = vmatprep.mubr.f32.mxu0 %v762_v11 }
  0xd2   : > { %1062 = vmatmul.mubr.f32.gmra.mrb[46].mxu0 %v761_v14 }
  0xd3   : > { %1066 = vmatprep.mubr.f32.mxu0 %v764_v15 }
  0xd6   : > { %1067 = vmatmul.mubr.f32.gmra.mrb[48].mxu0 %v763_v16 }
  0xd7   : > { %1071 = vmatprep.mubr.f32.mxu0 %v766_v17 }
  0xda   : > { %1072 = vmatmul.mubr.f32.gmra.mrb[50].mxu0 %v765_v18 }
  0xdb   : > { %1076 = vmatprep.mubr.f32.mxu0 %v768_v19 }
  0xde   : > { %1077 = vmatmul.mubr.f32.gmra.mrb[52].mxu0 %v767_v20 }
  0xdf   : > { %1081 = vmatprep.mubr.f32.mxu0 %v770_v21 }
  0xe2   : > { %1082 = vmatmul.mubr.f32.gmra.mrb[54].mxu0 %v769_v22 }
  0xe3   : > { %1086 = vmatprep.mubr.f32.mxu0 %v772_v23 }
  0xe6   : > { %1087 = vmatmul.mubr.f32.gmra.mrb[56].mxu0 %v771_v24 }
  0xe7   : > { %1091 = vmatprep.mubr.f32.mxu0 %v774_v25 }
  0xea   : > { %1092 = vmatmul.mubr.f32.gmra.mrb[58].mxu0 %v773_v26 }
  0xeb   : > { %1096 = vmatprep.mubr.f32.mxu0 %v776_v27 }
  0xee   : > { %1097 = vmatmul.mubr.f32.gmra.mrb[60].mxu0 %v775_v28 }
  0xef   : > { %1101 = vmatprep.mubr.f32.mxu0 %v778_v29 }
  0xf2   : > { %1102 = vmatmul.mubr.f32.gmra.mrb[62].mxu0 %v777_v30 }
  0xf3   : > { %1106 = vmatprep.mubr.f32.mxu0 %v780_v31 }
  0xf6   : > { %1107 = vmatmul.mubr.f32.gmra.mrb[64].mxu0 %v779_v32 }
  0xf7   : > { %1111 = vmatprep.mubr.f32.mxu0 %v782_v33 }
  0xfa   : > { %1112 = vmatmul.mubr.f32.gmra.mrb[66].mxu0 %v781_v34 }
  0xfb   : > { %1116 = vmatprep.mubr.f32.mxu0 %v784_v35 }
  0xfe   : > { %1117 = vmatmul.mubr.f32.gmra.mrb[68].mxu0 %v783_v36 }
  0xff   : > { %1121 = vmatprep.mubr.f32.mxu0 %v786_v37 }
 0x102   : > { %1122 = vmatmul.mubr.f32.gmra.mrb[70].mxu0 %v785_v38 }
 0x103   : > { %1126 = vmatprep.mubr.f32.mxu0 %v788_v39 }
 0x106   : > { %1127 = vmatmul.mubr.f32.gmra.mrb[72].mxu0 %v787_v40 }
 0x107   : > { %1131 = vmatprep.mubr.f32.mxu0 %v790_v41 }
 0x10a   : > { %1132 = vmatmul.mubr.f32.gmra.mrb[74].mxu0 %v789_v42 }
 0x10b   : > { %1136 = vmatprep.mubr.f32.mxu0 %v792_v43 }
 0x10e   : > { %1137 = vmatmul.mubr.f32.gmra.mrb[76].mxu0 %v791_v44 }
 0x10f   : > { %1141 = vmatprep.mubr.f32.mxu0 %v794_v45 }
 0x112   : > { %1142 = vmatmul.mubr.f32.gmra.mrb[78].mxu0 %v793_v46 }
 0x113   : > { %1146 = vmatprep.mubr.f32.mxu0 %v796_v47 }
 0x116   : > { %1147 = vmatmul.mubr.f32.gmra.mrb[80].mxu0 %v795_v48 }
 0x117   : > { %1151 = vmatprep.mubr.f32.mxu0 %v798_v49 }
 0x11a   : > { %1152 = vmatmul.mubr.f32.gmra.mrb[82].mxu0 %v797_v50 }
 0x11b   : > { %1156 = vmatprep.mubr.f32.mxu0 %v800_v51 }
 0x11e   : > { %1157 = vmatmul.mubr.f32.gmra.mrb[84].mxu0 %v799_v52 }
 0x11f   : > { %1161 = vmatprep.mubr.f32.mxu0 %v802_v53 }
 0x122   : > { %1162 = vmatmul.mubr.f32.gmra.mrb[86].mxu0 %v801_v54 }
 0x123   : > { %1166 = vmatprep.mubr.f32.mxu0 %v804_v55 }
 0x126   : > { %1167 = vmatmul.mubr.f32.gmra.mrb[88].mxu0 %v803_v56 }
 0x127   : > { %1171 = vmatprep.mubr.f32.mxu0 %v806_v57 }
 0x12a   : > { %1172 = vmatmul.mubr.f32.gmra.mrb[90].mxu0 %v805_v58 }
 0x12b   : > { %1176 = vmatprep.mubr.f32.mxu0 %v808_v59 }
 0x12e   : > { %1177 = vmatmul.mubr.f32.gmra.mrb[92].mxu0 %v807_v60 }
 0x12f   : > { %1181 = vmatprep.mubr.f32.mxu0 %v810_v61 }
 0x132   : > { %1182 = vmatmul.mubr.f32.gmra.mrb[94].mxu0 %v809_v3 }
 0x149   : > { %v948_v63 = vpop.f32.mrb[0].mxu0 }
 0x14a   : > { %v949_v0 = vadd.f32 %v9359_v62, %v948_v63  ;;  %v950_v1 = vpop.f32.mrb[1].mxu0 }
 0x14c   : > { %v1267_v2 = vmax.f32 %v949_v0, 0.0 }
 0x14d   : > { %v953_v4 = vpop.f32.mrb[2].mxu0 }
 0x14e   : > { %v954_v5 = vadd.f32 %v9359_v62, %v953_v4  ;;  %v955_v6 = vpop.f32.mrb[3].mxu0  ;;  %8391 = vmatprep.mubr.msk.f32.mxu1 %vm1346_vm2, %v1267_v2 }
 0x150   : > { %v1268_v7 = vmax.f32 %v954_v5, 0.0 }
 0x151   : > { %v958_v8 = vpop.f32.mrb[4].mxu0 }
 0x152   : > { %v959_v9 = vadd.f32 %v9359_v62, %v958_v8  ;;  %v960_v10 = vpop.f32.mrb[5].mxu0  ;;  %8392 = vmatmul.mubr.msk.f32.vlgmr.msra.gmra.mrb[32].mxu1 %vm1346_vm2, %v1268_v7 }
 0x154   : > { %v1269_v11 = vmax.f32 %v959_v9, 0.0 }
 0x155   : > { %v963_v12 = vpop.f32.mrb[6].mxu0 }
 0x156   : > { %v964_v13 = vadd.f32 %v9359_v62, %v963_v12  ;;  %v965_v14 = vpop.f32.mrb[7].mxu0  ;;  %8394 = vmatprep.mubr.msk.f32.mxu1 %vm1346_vm2, %v1269_v11 }
 0x158   : > { %v1270_v15 = vmax.f32 %v964_v13, 0.0 }
 0x159   : > { %v968_v16 = vpop.f32.mrb[8].mxu0 }
 0x15a   : > { %v969_v17 = vadd.f32 %v9359_v62, %v968_v16  ;;  %v970_v18 = vpop.f32.mrb[9].mxu0  ;;  %8395 = vmatmul.mubr.msk.f32.gmra.mrb[34].mxu1 %vm1346_vm2, %v1270_v15  ;;  %v9378_v35 = vpop.f32.mrb[0].mxu1 }
 0x15b   : > { %v1190_v36 = vpop.f32.mrb[1].mxu1 }
 0x15c   : > { %v1271_v19 = vmax.f32 %v969_v17, 0.0 }
 0x15d   : > { %v973_v20 = vpop.f32.mrb[10].mxu0 }
 0x15e   : > { %v974_v21 = vadd.f32 %v9359_v62, %v973_v20  ;;  %v975_v22 = vpop.f32.mrb[11].mxu0  ;;  %8397 = vmatprep.mubr.msk.f32.mxu1 %vm1346_vm2, %v1271_v19  ;;  %v9380_v38 = vpop.f32.mrb[2].mxu1 }
 0x15f   : > { %v1195_v40 = vpop.f32.mrb[3].mxu1 }
 0x160   : > { %v1272_v23 = vmax.f32 %v974_v21, 0.0 }
 0x161   : > { %v978_v24 = vpop.f32.mrb[12].mxu0 }
 0x162   : > { %v979_v25 = vadd.f32 %v9359_v62, %v978_v24  ;;  %v980_v26 = vpop.f32.mrb[13].mxu0  ;;  %8398 = vmatmul.mubr.msk.f32.gmra.mrb[36].mxu1 %vm1346_vm2, %v1272_v23  ;;  %v9384_v44 = vpop.f32.mrb[4].mxu1 }
 0x163   : > { %v1200_v46 = vpop.f32.mrb[5].mxu1 }
 0x164   : > { %v1273_v27 = vmax.f32 %v979_v25, 0.0 }
 0x165   : > { %v983_v28 = vpop.f32.mrb[14].mxu0 }
 0x166   : > { %v984_v29 = vadd.f32 %v9359_v62, %v983_v28  ;;  %v985_v30 = vpop.f32.mrb[15].mxu0  ;;  %8400 = vmatprep.mubr.msk.f32.mxu1 %vm1346_vm2, %v1273_v27  ;;  %v9390_v54 = vpop.f32.mrb[6].mxu1 }
 0x167   : > { %v1205_v56 = vpop.f32.mrb[7].mxu1 }
 0x168   : > { %v1274_v31 = vmax.f32 %v984_v29, 0.0 }
 0x169   : > { %v988_v32 = vpop.f32.mrb[16].mxu0 }
 0x16a   : > { %v989_v33 = vadd.f32 %v9359_v62, %v988_v32  ;;  %v990_v34 = vpop.f32.mrb[17].mxu0  ;;  %8401 = vmatmul.mubr.msk.f32.gmra.mrb[38].mxu1 %vm1346_vm2, %v1274_v31  ;;  %v9396_v0 = vpop.f32.mrb[8].mxu1 }
 0x16b   : > { %v1210_v2 = vpop.f32.mrb[9].mxu1 }
 0x16c   : > { %v1275_v37 = vmax.f32 %v989_v33, 0.0 }
 0x16d   : > { %v993_v39 = vpop.f32.mrb[18].mxu0 }
 0x16e   : > { %v994_v41 = vadd.f32 %v9359_v62, %v993_v39  ;;  %v995_v42 = vpop.f32.mrb[19].mxu0  ;;  %8403 = vmatprep.mubr.msk.f32.mxu1 %vm1346_vm2, %v1275_v37  ;;  %v9400_v8 = vpop.f32.mrb[10].mxu1 }
 0x16f   : > { %v1215_v11 = vpop.f32.mrb[11].mxu1 }
 0x170   : > { %v1276_v43 = vmax.f32 %v994_v41, 0.0 }
 0x171   : > { %v998_v45 = vpop.f32.mrb[20].mxu0 }
 0x172   : > { %v999_v47 = vadd.f32 %v9359_v62, %v998_v45  ;;  %v1000_v48 = vpop.f32.mrb[21].mxu0  ;;  %8404 = vmatmul.mubr.msk.f32.gmra.mrb[40].mxu1 %vm1346_vm2, %v1276_v43  ;;  %v9404_v13 = vpop.f32.mrb[12].mxu1 }
 0x173   : > { %v1220_v15 = vpop.f32.mrb[13].mxu1 }
 0x174   : > { %v1277_v49 = vmax.f32 %v999_v47, 0.0 }
 0x175   : > { %v1003_v50 = vpop.f32.mrb[22].mxu0 }
 0x176   : > { %v1004_v51 = vadd.f32 %v9359_v62, %v1003_v50  ;;  %v1005_v52 = vpop.f32.mrb[23].mxu0  ;;  %8406 = vmatprep.mubr.msk.f32.mxu1 %vm1346_vm2, %v1277_v49  ;;  %v9408_v18 = vpop.f32.mrb[14].mxu1 }
 0x177   : > { %v1225_v20 = vpop.f32.mrb[15].mxu1 }
 0x178   : > { %v1278_v53 = vmax.f32 %v1004_v51, 0.0 }
 0x179   : > { %v1008_v55 = vpop.f32.mrb[24].mxu0 }
 0x17a   : > { %v1009_v57 = vadd.f32 %v9359_v62, %v1008_v55  ;;  %v1010_v58 = vpop.f32.mrb[25].mxu0  ;;  %8407 = vmatmul.mubr.msk.f32.gmra.mrb[42].mxu1 %vm1346_vm2, %v1278_v53  ;;  %v9412_v24 = vpop.f32.mrb[16].mxu1 }
 0x17b   : > { %v1230_v26 = vpop.f32.mrb[17].mxu1 }
 0x17c   : > { %v1279_v59 = vmax.f32 %v1009_v57, 0.0 }
 0x17d   : > { %v1013_v60 = vpop.f32.mrb[26].mxu0 }
 0x17e   : > { %v1014_v61 = vadd.f32 %v9359_v62, %v1013_v60  ;;  %v1015_v3 = vpop.f32.mrb[27].mxu0  ;;  %8409 = vmatprep.mubr.msk.f32.mxu1 %vm1346_vm2, %v1279_v59  ;;  %v9416_v30 = vpop.f32.mrb[18].mxu1 }
 0x17f   : > { %v1235_v32 = vpop.f32.mrb[19].mxu1 }
 0x180   : > { %v1280_v63 = vmax.f32 %v1014_v61, 0.0 }
 0x181   : > { %v1018_v1 = vpop.f32.mrb[28].mxu0 }
 0x182   : > { %v1019_v4 = vadd.f32 %v9359_v62, %v1018_v1  ;;  %v1020_v5 = vpop.f32.mrb[29].mxu0  ;;  %8410 = vmatmul.mubr.msk.f32.gmra.mrb[44].mxu1 %vm1346_vm2, %v1280_v63  ;;  %v9420_v37 = vpop.f32.mrb[20].mxu1 }
 0x183   : > { %v1240_v40 = vpop.f32.mrb[21].mxu1 }
 0x184   : > { %v1281_v6 = vmax.f32 %v1019_v4, 0.0 }
 0x185   : > { %v1023_v7 = vpop.f32.mrb[30].mxu0 }
 0x186   : > { %v1024_v9 = vadd.f32 %v9359_v62, %v1023_v7  ;;  %v1025_v10 = vpop.f32.mrb[31].mxu0  ;;  %8412 = vmatprep.mubr.msk.f32.mxu1 %vm1346_vm2, %v1281_v6  ;;  %v9424_v45 = vpop.f32.mrb[22].mxu1 }
 0x187   : > { %v1245_v46 = vpop.f32.mrb[23].mxu1 }
 0x188   : > { %v1282_v12 = vmax.f32 %v1024_v9, 0.0 }
 0x189   : > { %v1028_v14 = vpop.f32.mrb[32].mxu0 }
 0x18a   : > { %v1029_v16 = vadd.f32 %v9359_v62, %v1028_v14  ;;  %v1030_v17 = vpop.f32.mrb[33].mxu0  ;;  %8413 = vmatmul.mubr.msk.f32.gmra.mrb[46].mxu1 %vm1346_vm2, %v1282_v12  ;;  %v9426_v48 = vpop.f32.mrb[24].mxu1 }
 0x18b   : > { %v1250_v50 = vpop.f32.mrb[25].mxu1 }
 0x18c   : > { %v1283_v19 = vmax.f32 %v1029_v16, 0.0 }
 0x18d   : > { %v1033_v21 = vpop.f32.mrb[34].mxu0 }
 0x18e   : > { %v1034_v22 = vadd.f32 %v9359_v62, %v1033_v21  ;;  %v1035_v23 = vpop.f32.mrb[35].mxu0  ;;  %8415 = vmatprep.mubr.msk.f32.mxu1 %vm1346_vm2, %v1283_v19  ;;  %v9430_v53 = vpop.f32.mrb[26].mxu1 }
 0x18f   : > { %v1255_v55 = vpop.f32.mrb[27].mxu1 }
 0x190   : > { %v1284_v25 = vmax.f32 %v1034_v22, 0.0 }
 0x191   : > { %v1038_v27 = vpop.f32.mrb[36].mxu0 }
 0x192   : > { %v1039_v28 = vadd.f32 %v9359_v62, %v1038_v27  ;;  %v1040_v29 = vpop.f32.mrb[37].mxu0  ;;  %8416 = vmatmul.mubr.msk.f32.gmra.mrb[48].mxu1 %vm1346_vm2, %v1284_v25  ;;  %v9432_v57 = vpop.f32.mrb[28].mxu1 }
 0x193   : > { %v1260_v59 = vpop.f32.mrb[29].mxu1 }
 0x194   : > { %v1285_v31 = vmax.f32 %v1039_v28, 0.0 }
 0x195   : > { %v1043_v33 = vpop.f32.mrb[38].mxu0 }
 0x196   : > { %v1044_v34 = vadd.f32 %v9359_v62, %v1043_v33  ;;  %v1045_v36 = vpop.f32.mrb[39].mxu0  ;;  %8418 = vmatprep.mubr.msk.f32.mxu1 %vm1346_vm2, %v1285_v31  ;;  %v9436_v3 = vpop.f32.mrb[30].mxu1 }
 0x197   : > { %v1265_v63 = vpop.f32.mrb[31].mxu1 }
 0x198   : > { %v1286_v39 = vmax.f32 %v1044_v34, 0.0 }
 0x199   : > { %v1048_v41 = vpop.f32.mrb[40].mxu0 }
 0x19a   : > { %v1049_v42 = vadd.f32 %v9359_v62, %v1048_v41  ;;  %v1050_v43 = vpop.f32.mrb[41].mxu0  ;;  %8419 = vmatmul.mubr.msk.f32.gmra.mrb[50].mxu1 %vm1346_vm2, %v1286_v39 }
 0x19c   : > { %v1287_v47 = vmax.f32 %v1049_v42, 0.0 }
 0x19d   : > { %v1053_v49 = vpop.f32.mrb[42].mxu0 }
 0x19e   : > { %v1054_v51 = vadd.f32 %v9359_v62, %v1053_v49  ;;  %v1055_v52 = vpop.f32.mrb[43].mxu0  ;;  %8421 = vmatprep.mubr.msk.f32.mxu1 %vm1346_vm2, %v1287_v47 }
 0x1a0   : > { %v1288_v56 = vmax.f32 %v1054_v51, 0.0 }
 0x1a1   : > { %v1058_v58 = vpop.f32.mrb[44].mxu0 }
 0x1a2   : > { %v1059_v60 = vadd.f32 %v9359_v62, %v1058_v58  ;;  %v1060_v61 = vpop.f32.mrb[45].mxu0  ;;  %8422 = vmatmul.mubr.msk.f32.gmra.mrb[52].mxu1 %vm1346_vm2, %v1288_v56 }
 0x1a4   : > { %v1289_v1 = vmax.f32 %v1059_v60, 0.0 }
 0x1a5   : > { %v1063_v2 = vpop.f32.mrb[46].mxu0 }
 0x1a6   : > { %v1064_v4 = vadd.f32 %v9359_v62, %v1063_v2  ;;  %v1065_v5 = vpop.f32.mrb[47].mxu0  ;;  %8424 = vmatprep.mubr.msk.f32.mxu1 %vm1346_vm2, %v1289_v1 }
 0x1a8   : > { %v1290_v6 = vmax.f32 %v1064_v4, 0.0 }
 0x1a9   : > { %v1068_v7 = vpop.f32.mrb[48].mxu0 }
 0x1aa   : > { %v1069_v9 = vadd.f32 %v9359_v62, %v1068_v7  ;;  %v1070_v10 = vpop.f32.mrb[49].mxu0  ;;  %8425 = vmatmul.mubr.msk.f32.gmra.mrb[54].mxu1 %vm1346_vm2, %v1290_v6 }
 0x1ac   : > { %v1291_v11 = vmax.f32 %v1069_v9, 0.0 }
 0x1ad   : > { %v1073_v12 = vpop.f32.mrb[50].mxu0 }
 0x1ae   : > { %v1074_v14 = vadd.f32 %v9359_v62, %v1073_v12  ;;  %v1075_v15 = vpop.f32.mrb[51].mxu0  ;;  %8427 = vmatprep.mubr.msk.f32.mxu1 %vm1346_vm2, %v1291_v11 }
 0x1b0   : > { %v1292_v16 = vmax.f32 %v1074_v14, 0.0 }
 0x1b1   : > { %v1078_v17 = vpop.f32.mrb[52].mxu0 }
 0x1b2   : > { %v1079_v19 = vadd.f32 %v9359_v62, %v1078_v17  ;;  %v1080_v20 = vpop.f32.mrb[53].mxu0  ;;  %8428 = vmatmul.mubr.msk.f32.gmra.mrb[56].mxu1 %vm1346_vm2, %v1292_v16 }
 0x1b4   : > { %v1293_v21 = vmax.f32 %v1079_v19, 0.0 }
 0x1b5   : > { %v1083_v22 = vpop.f32.mrb[54].mxu0 }
 0x1b6   : > { %v1084_v23 = vadd.f32 %v9359_v62, %v1083_v22  ;;  %v1085_v25 = vpop.f32.mrb[55].mxu0  ;;  %8430 = vmatprep.mubr.msk.f32.mxu1 %vm1346_vm2, %v1293_v21 }
 0x1b8   : > { %v1294_v26 = vmax.f32 %v1084_v23, 0.0 }
 0x1b9   : > { %v1088_v27 = vpop.f32.mrb[56].mxu0 }
 0x1ba   : > { %v1089_v28 = vadd.f32 %v9359_v62, %v1088_v27  ;;  %v1090_v29 = vpop.f32.mrb[57].mxu0  ;;  %8431 = vmatmul.mubr.msk.f32.gmra.mrb[58].mxu1 %vm1346_vm2, %v1294_v26 }
 0x1bc   : > { %v1295_v31 = vmax.f32 %v1089_v28, 0.0 }
 0x1bd   : > { %v1093_v32 = vpop.f32.mrb[58].mxu0 }
 0x1be   : > { %v1094_v33 = vadd.f32 %v9359_v62, %v1093_v32  ;;  %v1095_v34 = vpop.f32.mrb[59].mxu0  ;;  %8433 = vmatprep.mubr.msk.f32.mxu1 %vm1346_vm2, %v1295_v31 }
 0x1c0   : > { %v1296_v36 = vmax.f32 %v1094_v33, 0.0 }
 0x1c1   : > { %v1098_v39 = vpop.f32.mrb[60].mxu0 }
 0x1c2   : > { %v1099_v40 = vadd.f32 %v9359_v62, %v1098_v39  ;;  %v1100_v41 = vpop.f32.mrb[61].mxu0  ;;  %8434 = vmatmul.mubr.msk.f32.gmra.mrb[60].mxu1 %vm1346_vm2, %v1296_v36 }
 0x1c4   : > { %v1297_v42 = vmax.f32 %v1099_v40, 0.0 }
 0x1c5   : > { %v1103_v43 = vpop.f32.mrb[62].mxu0 }
 0x1c6   : > { %v1104_v46 = vadd.f32 %v9359_v62, %v1103_v43  ;;  %v1105_v47 = vpop.f32.mrb[63].mxu0  ;;  %8436 = vmatprep.mubr.msk.f32.mxu1 %vm1346_vm2, %v1297_v42 }
 0x1c8   : > { %v1298_v49 = vmax.f32 %v1104_v46, 0.0 }
 0x1c9   : > { %v1108_v50 = vpop.f32.mrb[64].mxu0 }
 0x1ca   : > { %v1109_v51 = vadd.f32 %v9359_v62, %v1108_v50  ;;  %v1110_v52 = vpop.f32.mrb[65].mxu0  ;;  %8437 = vmatmul.mubr.msk.f32.gmra.mrb[62].mxu1 %vm1346_vm2, %v1298_v49 }
 0x1cc   : > { %v1299_v55 = vmax.f32 %v1109_v51, 0.0 }
 0x1cd   : > { %v1113_v56 = vpop.f32.mrb[66].mxu0 }
 0x1ce   : > { %v1114_v58 = vadd.f32 %v9359_v62, %v1113_v56  ;;  %v1115_v59 = vpop.f32.mrb[67].mxu0  ;;  %8439 = vmatprep.mubr.msk.f32.mxu1 %vm1346_vm2, %v1299_v55 }
 0x1d0   : > { %v1300_v60 = vmax.f32 %v1114_v58, 0.0 }
 0x1d1   : > { %v1118_v61 = vpop.f32.mrb[68].mxu0 }
 0x1d2   : > { %v1119_v63 = vadd.f32 %v9359_v62, %v1118_v61  ;;  %v1120_v1 = vpop.f32.mrb[69].mxu0  ;;  %8440 = vmatmul.mubr.msk.f32.gmra.mrb[64].mxu1 %vm1346_vm2, %v1300_v60 }
 0x1d4   : > { %v1301_v2 = vmax.f32 %v1119_v63, 0.0 }
 0x1d5   : > { %v1123_v4 = vpop.f32.mrb[70].mxu0 }
 0x1d6   : > { %v1124_v5 = vadd.f32 %v9359_v62, %v1123_v4  ;;  %v1125_v6 = vpop.f32.mrb[71].mxu0  ;;  %8442 = vmatprep.mubr.msk.f32.mxu1 %vm1346_vm2, %v1301_v2 }
 0x1d8   : > { %v1302_v7 = vmax.f32 %v1124_v5, 0.0  ;;  %v1189_v5 = vadd.f32 %v9359_v62, %v9378_v35  ;;  %v1204_v35 = vadd.f32 %v9359_v62, %v9390_v54 }
 0x1d9   : > { %v1128_v9 = vpop.f32.mrb[72].mxu0 }
 0x1da   : > { %v1129_v10 = vadd.f32 %v9359_v62, %v1128_v9  ;;  %v1130_v11 = vpop.f32.mrb[73].mxu0  ;;  %8443 = vmatmul.mubr.msk.f32.gmra.mrb[66].mxu1 %vm1346_vm2, %v1302_v7 }
 0x1dc   : > { %v1303_v12 = vmax.f32 %v1129_v10, 0.0  ;;  %v1194_v10 = vadd.f32 %v9359_v62, %v9380_v38  ;;  %v1318_v38 = vmax.f32 %v1204_v35, 0.0 }
 0x1dd   : > { %v1133_v14 = vpop.f32.mrb[74].mxu0 }
 0x1de   : > { %v1134_v15 = vadd.f32 %v9359_v62, %v1133_v14  ;;  %v1135_v16 = vpop.f32.mrb[75].mxu0  ;;  %8445 = vmatprep.mubr.msk.f32.mxu1 %vm1346_vm2, %v1303_v12  ;;  %v1315_v12 = vmax.f32 %v1189_v5, 0.0  ;;  %v1199_v14 = vadd.f32 %v9359_v62, %v9384_v44  ;;  %v1214_v44 = vadd.f32 %v9359_v62, %v9400_v8 }
 0x1df   : > { %v1239_v8 = vadd.f32 %v9359_v62, %v9420_v37  ;;  %v1254_v37 = vadd.f32 %v9359_v62, %v9430_v53 }
 0x1e0   : > { %v1304_v17 = vmax.f32 %v1134_v15, 0.0  ;;  %v1316_v15 = vmax.f32 %v1194_v10, 0.0  ;;  %v1317_v16 = vmax.f32 %v1199_v14, 0.0  ;;  %v1320_v54 = vmax.f32 %v1214_v44, 0.0 }
 0x1e1   : > { %v1138_v19 = vpop.f32.mrb[76].mxu0 }
 0x1e2   : > { %v1139_v20 = vadd.f32 %v9359_v62, %v1138_v19  ;;  %v1140_v21 = vpop.f32.mrb[77].mxu0  ;;  %8446 = vmatmul.mubr.msk.f32.gmra.mrb[68].mxu1 %vm1346_vm2, %v1304_v17  ;;  %v1209_v17 = vadd.f32 %v9359_v62, %v9396_v0  ;;  %v1224_v0 = vadd.f32 %v9359_v62, %v9408_v18  ;;  %v1244_v18 = vadd.f32 %v9359_v62, %v9424_v45 }
 0x1e3   : > { %v1328_v45 = vmax.f32 %v1254_v37, 0.0 }
 0x1e4   : > { %v1305_v22 = vmax.f32 %v1139_v20, 0.0  ;;  %v1319_v19 = vmax.f32 %v1209_v17, 0.0  ;;  %v1219_v20 = vadd.f32 %v9359_v62, %v9404_v13  ;;  %v1322_v13 = vmax.f32 %v1224_v0, 0.0 }
 0x1e5   : > { %v1143_v23 = vpop.f32.mrb[78].mxu0 }
 0x1e6   : > { %v1144_v25 = vadd.f32 %v9359_v62, %v1143_v23  ;;  %v1145_v26 = vpop.f32.mrb[79].mxu0  ;;  %8448 = vmatprep.mubr.msk.f32.mxu1 %vm1346_vm2, %v1305_v22  ;;  %v1321_v21 = vmax.f32 %v1219_v20, 0.0  ;;  %v1229_v22 = vadd.f32 %v9359_v62, %v9412_v24  ;;  %v1234_v23 = vadd.f32 %v9359_v62, %v9416_v30 }
 0x1e7   : > { %v1325_v26 = vmax.f32 %v1239_v8, 0.0  ;;  %v1249_v24 = vadd.f32 %v9359_v62, %v9426_v48 }
 0x1e8   : > { %v1306_v27 = vmax.f32 %v1144_v25, 0.0  ;;  %v1323_v25 = vmax.f32 %v1229_v22, 0.0 }
 0x1e9   : > { %v1148_v28 = vpop.f32.mrb[80].mxu0  ;;  %v1327_v30 = vmax.f32 %v1249_v24, 0.0 }
 0x1ea   : > { %8449 = vmatmul.mubr.msk.f32.gmra.mrb[70].mxu1 %vm1346_vm2, %v1306_v27  ;;  %v1149_v29 = vadd.f32 %v9359_v62, %v1148_v28  ;;  %v1150_v31 = vpop.f32.mrb[81].mxu0  ;;  %v1324_v27 = vmax.f32 %v1234_v23, 0.0  ;;  %v1326_v28 = vmax.f32 %v1244_v18, 0.0 }
 0x1eb   : > { %v1264_v31 = vadd.f32 %v9359_v62, %v9436_v3 }
 0x1ec   : > { %v1307_v32 = vmax.f32 %v1149_v29, 0.0  ;;  %v1259_v29 = vadd.f32 %v9359_v62, %v9432_v57 }
 0x1ed   : > { %v1153_v33 = vpop.f32.mrb[82].mxu0 }
 0x1ee   : > { %v1154_v34 = vadd.f32 %v9359_v62, %v1153_v33  ;;  %v1155_v36 = vpop.f32.mrb[83].mxu0  ;;  %8451 = vmatprep.mubr.msk.f32.mxu1 %vm1346_vm2, %v1307_v32  ;;  %v1329_v48 = vmax.f32 %v1259_v29, 0.0  ;;  %v9536_v32 = vld [vmem:[%s11963_s5] ss:$0 sm:$0xff]  ;;  %v1330_v33 = vmax.f32 %v1264_v31, 0.0 }
 0x1f0   : > { %v1308_v39 = vmax.f32 %v1154_v34, 0.0 }
 0x1f1   : > { %v1158_v40 = vpop.f32.mrb[84].mxu0 }
 0x1f2   : > { %v1159_v41 = vadd.f32 %v9359_v62, %v1158_v40  ;;  %v1160_v42 = vpop.f32.mrb[85].mxu0  ;;  %8452 = vmatmul.mubr.msk.f32.gmra.mrb[72].mxu1 %vm1346_vm2, %v1308_v39 }
 0x1f4   : > { %v1309_v43 = vmax.f32 %v1159_v41, 0.0 }
 0x1f5   : > { %v1163_v46 = vpop.f32.mrb[86].mxu0 }
 0x1f6   : > { %v1164_v47 = vadd.f32 %v9359_v62, %v1163_v46  ;;  %v1165_v49 = vpop.f32.mrb[87].mxu0  ;;  %8454 = vmatprep.mubr.msk.f32.mxu1 %vm1346_vm2, %v1309_v43 }
 0x1f8   : > { %v1310_v50 = vmax.f32 %v1164_v47, 0.0 }
 0x1f9   : > { %v1168_v51 = vpop.f32.mrb[88].mxu0 }
 0x1fa   : > { %v1169_v52 = vadd.f32 %v9359_v62, %v1168_v51  ;;  %v1170_v55 = vpop.f32.mrb[89].mxu0  ;;  %8455 = vmatmul.mubr.msk.f32.gmra.mrb[74].mxu1 %vm1346_vm2, %v1310_v50 }
 0x1fc   : > { %v1311_v56 = vmax.f32 %v1169_v52, 0.0 }
 0x1fd   : > { %v1173_v58 = vpop.f32.mrb[90].mxu0 }
 0x1fe   : > { %v1174_v59 = vadd.f32 %v9359_v62, %v1173_v58  ;;  %v1175_v60 = vpop.f32.mrb[91].mxu0  ;;  %8457 = vmatprep.mubr.msk.f32.mxu1 %vm1346_vm2, %v1311_v56 }
 0x200   : > { %v1312_v61 = vmax.f32 %v1174_v59, 0.0 }
 0x201   : > { %v1178_v63 = vpop.f32.mrb[92].mxu0 }
 0x202   : > { %v1179_v1 = vadd.f32 %v9359_v62, %v1178_v63  ;;  %v1180_v2 = vpop.f32.mrb[93].mxu0  ;;  %8458 = vmatmul.mubr.msk.f32.gmra.mrb[76].mxu1 %vm1346_vm2, %v1312_v61 }
 0x204   : > { %v1313_v4 = vmax.f32 %v1179_v1, 0.0 }
 0x205   : > { %v1183_v6 = vpop.f32.mrb[94].mxu0 }
 0x206   : > { %v1184_v7 = vadd.f32 %v9359_v62, %v1183_v6  ;;  %8460 = vmatprep.mubr.msk.f32.mxu1 %vm1346_vm2, %v1313_v4  ;;  %v1185_v9 = vpop.f32.mrb[95].mxu0  ;;  %v9545_v62 = vld [vmem:[%s11964_s6] ss:$0 sm:$0xff] }
 0x208   : > { %v1314_v11 = vmax.f32 %v1184_v7, 0.0 }
 0x20a   : > { %8461 = vmatmul.mubr.msk.f32.gmra.mrb[78].mxu1 %vm1346_vm2, %v1314_v11 }
 0x20b   : > { %8463 = vmatprep.mubr.msk.f32.mxu1 %vm1346_vm2, %v1315_v12 }
 0x20e   : > { %8464 = vmatmul.mubr.msk.f32.gmra.mrb[80].mxu1 %vm1346_vm2, %v1316_v15 }
 0x20f   : > { %8466 = vmatprep.mubr.msk.f32.mxu1 %vm1346_vm2, %v1317_v16 }
 0x212   : > { %8467 = vmatmul.mubr.msk.f32.gmra.mrb[82].mxu1 %vm1346_vm2, %v1318_v38 }
 0x213   : > { %8469 = vmatprep.mubr.msk.f32.mxu1 %vm1346_vm2, %v1319_v19 }
 0x216   : > { %8470 = vmatmul.mubr.msk.f32.gmra.mrb[84].mxu1 %vm1346_vm2, %v1320_v54 }
 0x217   : > { %8472 = vmatprep.mubr.msk.f32.mxu1 %vm1346_vm2, %v1321_v21 }
 0x21a   : > { %8473 = vmatmul.mubr.msk.f32.gmra.mrb[86].mxu1 %vm1346_vm2, %v1322_v13 }
 0x21b   : > { %8475 = vmatprep.mubr.msk.f32.mxu1 %vm1346_vm2, %v1323_v25 }
 0x21e   : > { %8476 = vmatmul.mubr.msk.f32.gmra.mrb[88].mxu1 %vm1346_vm2, %v1324_v27 }
 0x21f   : > { %8478 = vmatprep.mubr.msk.f32.mxu1 %vm1346_vm2, %v1325_v26 }
 0x222   : > { %8479 = vmatmul.mubr.msk.f32.gmra.mrb[90].mxu1 %vm1346_vm2, %v1326_v28 }
 0x223   : > { %8481 = vmatprep.mubr.msk.f32.mxu1 %vm1346_vm2, %v1327_v30 }
 0x225   : > { %v8393_v53 = vpop.f32.mrb[32].mxu1 }
 0x226   : > { %v1611_v34 = vadd.f32 %v8393_v53, %v9536_v32  ;;  %v1605_v36 = vpop.f32.mrb[33].mxu1  ;;  %8482 = vmatmul.mubr.msk.f32.gmra.mrb[92].mxu1 %vm1346_vm2, %v1328_v45  ;;  %v8698_v53 = vmov 0  }
 0x227   : > { %v1606_v57 = vadd.f32 %v9536_v32, %v1605_v36  ;;  %8484 = vmatprep.mubr.msk.f32.mxu1 %vm1346_vm2, %v1329_v48  ;;  %8627 = vset.pattern.permute.xlu0 %v8698_v53 }
 0x228   : > { %v1925_v3 = vmax.f32 %v1611_v34, 0.0  ;;  %8626 = vset.pattern.permute.xlu1 %v8698_v53 }
 0x229   : > { %v1924_v39 = vmax.f32 %v1606_v57, 0.0 }
 0x22a   : > { %v1996_v40 = vmul.f32 %v9545_v62, %v1925_v3  ;;  %8485 = vmatmul.mubr.msk.f32.gmra.mrb[94].mxu1 %vm1346_vm2, %v1330_v33 }
 0x22b   : > { %v1995_v42 = vmul.f32 %v9545_v62, %v1924_v39 }
 0x22c   : > { %v2062_v41 = vsel %vm1346_vm2, %v1996_v40, 0.0 }
 0x22d   : > { %2063 = vadd.xlane.f32.xlu0 %v2062_v41  ;;  %v8396_v43 = vpop.f32.mrb[34].mxu1  ;;  %v2059_v51 = vsel %vm1346_vm2, %v1995_v42, 0.0 }
 0x22e   : > { %v1621_v46 = vadd.f32 %v8396_v43, %v9536_v32  ;;  %v1615_v47 = vpop.f32.mrb[35].mxu1 }
 0x22f   : > { %v1616_v49 = vadd.f32 %v9536_v32, %v1615_v47 }
 0x230   : > { %v1927_v50 = vmax.f32 %v1621_v46, 0.0 }
 0x231   : > { %v1926_v52 = vmax.f32 %v1616_v49, 0.0  ;;  %2060 = vadd.xlane.f32.xlu0 %v2059_v51 }
 0x232   : > { %v1998_v55 = vmul.f32 %v9545_v62, %v1927_v50 }
 0x233   : > { %v1997_v58 = vmul.f32 %v9545_v62, %v1926_v52 }
 0x234   : > { %v2068_v56 = vsel %vm1346_vm2, %v1998_v55, 0.0 }
 0x235   : > { %2069 = vadd.xlane.f32.xlu1 %v2068_v56  ;;  %v8399_v59 = vpop.f32.mrb[36].mxu1  ;;  %v2065_v2 = vsel %vm1346_vm2, %v1997_v58, 0.0 }
 0x236   : > { %v1631_v60 = vadd.f32 %v8399_v59, %v9536_v32  ;;  %v1625_v61 = vpop.f32.mrb[37].mxu1 }
 0x237   : > { %v1626_v63 = vadd.f32 %v9536_v32, %v1625_v61 }
 0x238   : > { %v1929_v1 = vmax.f32 %v1631_v60, 0.0 }
 0x239   : > { %v1928_v4 = vmax.f32 %v1626_v63, 0.0  ;;  %2066 = vadd.xlane.f32.xlu1 %v2065_v2 }
 0x23a   : > { %v2000_v5 = vmul.f32 %v9545_v62, %v1929_v1 }
 0x23b   : > { %v1999_v6 = vmul.f32 %v9545_v62, %v1928_v4 }
 0x23c   : > { %v2074_v7 = vsel %vm1346_vm2, %v2000_v5, 0.0 }
 0x23d   : > { %v8402_v9 = vpop.f32.mrb[38].mxu1  ;;  %2075 = vadd.xlane.f32.xlu1 %v2074_v7  ;;  %v2071_v10 = vsel %vm1346_vm2, %v1999_v6, 0.0 }
 0x23e   : > { %v1641_v11 = vadd.f32 %v8402_v9, %v9536_v32  ;;  %v1635_v12 = vpop.f32.mrb[39].mxu1  ;;  %2072 = vadd.xlane.f32.xlu0 %v2071_v10 }
 0x23f   : > { %v1636_v14 = vadd.f32 %v9536_v32, %v1635_v12 }
 0x240   : > { %v1931_v15 = vmax.f32 %v1641_v11, 0.0 }
 0x241   : > { %v1930_v35 = vmax.f32 %v1636_v14, 0.0 }
 0x242   : > { %v2002_v16 = vmul.f32 %v9545_v62, %v1931_v15 }
 0x243   : > { %v2001_v17 = vmul.f32 %v9545_v62, %v1930_v35 }
 0x244   : > { %v2080_v38 = vsel %vm1346_vm2, %v2002_v16, 0.0 }
 0x245   : > { %v8405_v44 = vpop.f32.mrb[40].mxu1  ;;  %2081 = vadd.xlane.f32.xlu1 %v2080_v38  ;;  %v2077_v19 = vsel %vm1346_vm2, %v2001_v17, 0.0 }
 0x246   : > { %v1651_v20 = vadd.f32 %v8405_v44, %v9536_v32  ;;  %v1645_v54 = vpop.f32.mrb[41].mxu1  ;;  %2078 = vadd.xlane.f32.xlu0 %v2077_v19 }
 0x247   : > { %v1646_v0 = vadd.f32 %v9536_v32, %v1645_v54 }
 0x248   : > { %v1933_v21 = vmax.f32 %v1651_v20, 0.0 }
 0x249   : > { %v1932_v22 = vmax.f32 %v1646_v0, 0.0 }
 0x24a   : > { %v2004_v8 = vmul.f32 %v9545_v62, %v1933_v21 }
 0x24b   : > { %v2003_v13 = vmul.f32 %v9545_v62, %v1932_v22 }
 0x24c   : > { %v2086_v23 = vsel %vm1346_vm2, %v2004_v8, 0.0 }
 0x24d   : > { %v8408_v25 = vpop.f32.mrb[42].mxu1  ;;  %2087 = vadd.xlane.f32.xlu1 %v2086_v23  ;;  %v2083_v18 = vsel %vm1346_vm2, %v2003_v13, 0.0 }
 0x24e   : > { %v1661_v26 = vadd.f32 %v8408_v25, %v9536_v32  ;;  %v1655_v24 = vpop.f32.mrb[43].mxu1  ;;  %2084 = vadd.xlane.f32.xlu0 %v2083_v18 }
 0x24f   : > { %v1656_v27 = vadd.f32 %v9536_v32, %v1655_v24 }
 0x250   : > { %v1935_v28 = vmax.f32 %v1661_v26, 0.0 }
 0x251   : > { %v1934_v37 = vmax.f32 %v1656_v27, 0.0 }
 0x252   : > { %v2006_v30 = vmul.f32 %v9545_v62, %v1935_v28 }
 0x253   : > { %v2005_v29 = vmul.f32 %v9545_v62, %v1934_v37 }
 0x254   : > { %v2092_v45 = vsel %vm1346_vm2, %v2006_v30, 0.0 }
 0x255   : > { %v8411_v31 = vpop.f32.mrb[44].mxu1  ;;  %2093 = vadd.xlane.f32.xlu1 %v2092_v45  ;;  %v2089_v48 = vsel %vm1346_vm2, %v2005_v29, 0.0 }
 0x256   : > { %v1671_v33 = vadd.f32 %v8411_v31, %v9536_v32  ;;  %v1665_v34 = vpop.f32.mrb[45].mxu1  ;;  %2090 = vadd.xlane.f32.xlu0 %v2089_v48 }
 0x257   : > { %v1666_v36 = vadd.f32 %v9536_v32, %v1665_v34 }
 0x258   : > { %v1937_v57 = vmax.f32 %v1671_v33, 0.0 }
 0x259   : > { %v1936_v3 = vmax.f32 %v1666_v36, 0.0 }
 0x25a   : > { %v2008_v39 = vmul.f32 %v9545_v62, %v1937_v57 }
 0x25b   : > { %v2007_v40 = vmul.f32 %v9545_v62, %v1936_v3 }
 0x25c   : > { %v2098_v41 = vsel %vm1346_vm2, %v2008_v39, 0.0 }
 0x25d   : > { %v8414_v42 = vpop.f32.mrb[46].mxu1  ;;  %2099 = vadd.xlane.f32.xlu1 %v2098_v41  ;;  %v2095_v43 = vsel %vm1346_vm2, %v2007_v40, 0.0 }
 0x25e   : > { %v1681_v46 = vadd.f32 %v8414_v42, %v9536_v32  ;;  %v1675_v47 = vpop.f32.mrb[47].mxu1  ;;  %2096 = vadd.xlane.f32.xlu0 %v2095_v43 }
 0x25f   : > { %v1676_v49 = vadd.f32 %v9536_v32, %v1675_v47 }
 0x260   : > { %v1939_v50 = vmax.f32 %v1681_v46, 0.0 }
 0x261   : > { %v1938_v51 = vmax.f32 %v1676_v49, 0.0 }
 0x262   : > { %v2010_v52 = vmul.f32 %v9545_v62, %v1939_v50 }
 0x263   : > { %v2009_v55 = vmul.f32 %v9545_v62, %v1938_v51 }
 0x264   : > { %v2104_v56 = vsel %vm1346_vm2, %v2010_v52, 0.0 }
 0x265   : > { %v8417_v58 = vpop.f32.mrb[48].mxu1  ;;  %2105 = vadd.xlane.f32.xlu1 %v2104_v56  ;;  %v2101_v59 = vsel %vm1346_vm2, %v2009_v55, 0.0 }
 0x266   : > { %v1691_v60 = vadd.f32 %v8417_v58, %v9536_v32  ;;  %v1685_v61 = vpop.f32.mrb[49].mxu1  ;;  %2102 = vadd.xlane.f32.xlu0 %v2101_v59 }
 0x267   : > { %v1686_v63 = vadd.f32 %v9536_v32, %v1685_v61 }
 0x268   : > { %v1941_v1 = vmax.f32 %v1691_v60, 0.0 }
 0x269   : > { %v1940_v2 = vmax.f32 %v1686_v63, 0.0 }
 0x26a   : > { %v2012_v4 = vmul.f32 %v9545_v62, %v1941_v1 }
 0x26b   : > { %v2011_v5 = vmul.f32 %v9545_v62, %v1940_v2 }
 0x26c   : > { %v2110_v6 = vsel %vm1346_vm2, %v2012_v4, 0.0 }
 0x26d   : > { %v8420_v7 = vpop.f32.mrb[50].mxu1  ;;  %2111 = vadd.xlane.f32.xlu1 %v2110_v6  ;;  %v2107_v9 = vsel %vm1346_vm2, %v2011_v5, 0.0 }
 0x26e   : > { %v1701_v10 = vadd.f32 %v8420_v7, %v9536_v32  ;;  %v1695_v11 = vpop.f32.mrb[51].mxu1  ;;  %2108 = vadd.xlane.f32.xlu0 %v2107_v9 }
 0x26f   : > { %v1696_v12 = vadd.f32 %v9536_v32, %v1695_v11 }
 0x270   : > { %v1943_v14 = vmax.f32 %v1701_v10, 0.0 }
 0x271   : > { %v1942_v15 = vmax.f32 %v1696_v12, 0.0 }
 0x272   : > { %v2014_v35 = vmul.f32 %v9545_v62, %v1943_v14 }
 0x273   : > { %v2013_v16 = vmul.f32 %v9545_v62, %v1942_v15 }
 0x274   : > { %v2116_v17 = vsel %vm1346_vm2, %v2014_v35, 0.0 }
 0x275   : > { %v8423_v38 = vpop.f32.mrb[52].mxu1  ;;  %2117 = vadd.xlane.f32.xlu1 %v2116_v17  ;;  %v2113_v44 = vsel %vm1346_vm2, %v2013_v16, 0.0 }
 0x276   : > { %v1711_v19 = vadd.f32 %v8423_v38, %v9536_v32  ;;  %v1705_v20 = vpop.f32.mrb[53].mxu1  ;;  %2114 = vadd.xlane.f32.xlu0 %v2113_v44 }
 0x277   : > { %v1706_v54 = vadd.f32 %v9536_v32, %v1705_v20 }
 0x278   : > { %v1945_v0 = vmax.f32 %v1711_v19, 0.0 }
 0x279   : > { %v1944_v21 = vmax.f32 %v1706_v54, 0.0 }
 0x27a   : > { %v2016_v22 = vmul.f32 %v9545_v62, %v1945_v0 }
 0x27b   : > { %v2015_v8 = vmul.f32 %v9545_v62, %v1944_v21 }
 0x27c   : > { %v2122_v13 = vsel %vm1346_vm2, %v2016_v22, 0.0 }
 0x27d   : > { %v8426_v23 = vpop.f32.mrb[54].mxu1  ;;  %2123 = vadd.xlane.f32.xlu1 %v2122_v13  ;;  %v2119_v25 = vsel %vm1346_vm2, %v2015_v8, 0.0 }
 0x27e   : > { %v1721_v18 = vadd.f32 %v8426_v23, %v9536_v32  ;;  %v1715_v26 = vpop.f32.mrb[55].mxu1  ;;  %2120 = vadd.xlane.f32.xlu0 %v2119_v25 }
 0x27f   : > { %v1716_v24 = vadd.f32 %v9536_v32, %v1715_v26 }
 0x280   : > { %v1947_v27 = vmax.f32 %v1721_v18, 0.0 }
 0x281   : > { %v1946_v28 = vmax.f32 %v1716_v24, 0.0 }
 0x282   : > { %v2018_v37 = vmul.f32 %v9545_v62, %v1947_v27  ;;  %v11967_v27 = vlaneseq }
 0x283   : > { %v2017_v30 = vmul.f32 %v9545_v62, %v1946_v28 }
 0x284   : > { %v2128_v29 = vsel %vm1346_vm2, %v2018_v37, 0.0 }
 0x285   : > { %v8429_v45 = vpop.f32.mrb[56].mxu1  ;;  %2129 = vadd.xlane.f32.xlu1 %v2128_v29  ;;  %v2125_v31 = vsel %vm1346_vm2, %v2017_v30, 0.0 }
 0x286   : > { %v1731_v48 = vadd.f32 %v8429_v45, %v9536_v32  ;;  %v1725_v53 = vpop.f32.mrb[57].mxu1  ;;  %2126 = vadd.xlane.f32.xlu0 %v2125_v31  ;;  %v9656_v31 = vshrl.u32 %v11967_v27, 7 }
 0x287   : > { %v1726_v33 = vadd.f32 %v9536_v32, %v1725_v53 }
 0x288   : > { %v1949_v34 = vmax.f32 %v1731_v48, 0.0 }
 0x289   : > { %v1948_v36 = vmax.f32 %v1726_v33, 0.0 }
 0x28a   : > { %v2020_v57 = vmul.f32 %v9545_v62, %v1949_v34 }
 0x28b   : > { %v2019_v3 = vmul.f32 %v9545_v62, %v1948_v36  ;;  %v9660_v36 = vstv %s2251_s23 }
 0x28c   : > { %v2134_v39 = vsel %vm1346_vm2, %v2020_v57, 0.0 }
 0x28d   : > { %v8432_v40 = vpop.f32.mrb[58].mxu1  ;;  %2135 = vadd.xlane.f32.xlu1 %v2134_v39  ;;  %v2131_v41 = vsel %vm1346_vm2, %v2019_v3, 0.0  ;;  %v9663_v3 = vsub.s32 0, %v9656_v31  ;;  %v8699_v39 = vmov 1966171168  }
 0x28e   : > { %v1741_v42 = vadd.f32 %v8432_v40, %v9536_v32  ;;  %v1735_v43 = vpop.f32.mrb[59].mxu1  ;;  %2132 = vadd.xlane.f32.xlu0 %v2131_v41  ;;  %v4434_v40 = vunpack.c.l.s4 %v8699_v39 }
 0x28f   : > { %v1736_v46 = vadd.f32 %v9536_v32, %v1735_v43  ;;  %v9667_v43 = vsub.s32 1, %v9656_v31 }
 0x290   : > { %v1951_v47 = vmax.f32 %v1741_v42, 0.0 }
 0x291   : > { %v1950_v49 = vmax.f32 %v1736_v46, 0.0  ;;  %v9670_v46 = vsub.s32 2, %v9656_v31 }
 0x292   : > { %v2022_v50 = vmul.f32 %v9545_v62, %v1951_v47  ;;  %v9673_v47 = vsub.s32 3, %v9656_v31 }
 0x293   : > { %v2021_v51 = vmul.f32 %v9545_v62, %v1950_v49 }
 0x294   : > { %v2140_v52 = vsel %vm1346_vm2, %v2022_v50, 0.0 }
 0x295   : > { %v8435_v55 = vpop.f32.mrb[60].mxu1  ;;  %2141 = vadd.xlane.f32.xlu1 %v2140_v52  ;;  %v2137_v56 = vsel %vm1346_vm2, %v2021_v51, 0.0  ;;  %v9678_v51 = vsub.s32 4, %v9656_v31  ;;  %v9681_v52 = vsub.s32 5, %v9656_v31 }
 0x296   : > { %v1751_v58 = vadd.f32 %v8435_v55, %v9536_v32  ;;  %v1745_v59 = vpop.f32.mrb[61].mxu1  ;;  %2138 = vadd.xlane.f32.xlu0 %v2137_v56  ;;  %v9685_v56 = vsub.s32 6, %v9656_v31 }
 0x297   : > { %v1746_v60 = vadd.f32 %v9536_v32, %v1745_v59 }
 0x298   : > { %v1953_v61 = vmax.f32 %v1751_v58, 0.0  ;;  %v9688_v58 = vsub.s32 7, %v9656_v31 }
 0x299   : > { %v1952_v63 = vmax.f32 %v1746_v60, 0.0 }
 0x29a   : > { %v2024_v1 = vmul.f32 %v9545_v62, %v1953_v61  ;;  %v4435_v61 = vunpack.c.0.s8 %v4434_v40 }
 0x29b   : > { %v2023_v2 = vmul.f32 %v9545_v62, %v1952_v63 }
 0x29c   : > { %v2146_v4 = vsel %vm1346_vm2, %v2024_v1, 0.0 }
 0x29d   : > { %v8438_v5 = vpop.f32.mrb[62].mxu1  ;;  %2147 = vadd.xlane.f32.xlu1 %v2146_v4  ;;  %v2143_v6 = vsel %vm1346_vm2, %v2023_v2, 0.0 }
 0x29e   : > { %v1761_v7 = vadd.f32 %v8438_v5, %v9536_v32  ;;  %v1755_v9 = vpop.f32.mrb[63].mxu1  ;;  %2144 = vadd.xlane.f32.xlu0 %v2143_v6 }
 0x29f   : > { %v1756_v10 = vadd.f32 %v9536_v32, %v1755_v9 }
 0x2a0   : > { %v1955_v11 = vmax.f32 %v1761_v7, 0.0 }
 0x2a1   : > { %v1954_v12 = vmax.f32 %v1756_v10, 0.0 }
 0x2a2   : > { %v2026_v14 = vmul.f32 %v9545_v62, %v1955_v11 }
 0x2a3   : > { %v2025_v15 = vmul.f32 %v9545_v62, %v1954_v12 }
 0x2a4   : > { %v2152_v35 = vsel %vm1346_vm2, %v2026_v14, 0.0 }
 0x2a5   : > { %v8441_v16 = vpop.f32.mrb[64].mxu1  ;;  %2153 = vadd.xlane.f32.xlu1 %v2152_v35  ;;  %v2149_v17 = vsel %vm1346_vm2, %v2025_v15, 0.0 }
 0x2a6   : > { %v1771_v38 = vadd.f32 %v8441_v16, %v9536_v32  ;;  %v1765_v44 = vpop.f32.mrb[65].mxu1  ;;  %2150 = vadd.xlane.f32.xlu0 %v2149_v17 }
 0x2a7   : > { %v1766_v19 = vadd.f32 %v9536_v32, %v1765_v44  ;;  %v9705_v44 = vsub.s32 %v4435_v61, %v9656_v31 }
 0x2a8   : > { %v1957_v20 = vmax.f32 %v1771_v38, 0.0 }
 0x2a9   : > { %v1956_v54 = vmax.f32 %v1766_v19, 0.0 }
 0x2aa   : > { %v2028_v0 = vmul.f32 %v9545_v62, %v1957_v20 }
 0x2ab   : > { %v2027_v21 = vmul.f32 %v9545_v62, %v1956_v54 }
 0x2ac   : > { %v2158_v22 = vsel %vm1346_vm2, %v2028_v0, 0.0 }
 0x2ad   : > { %v8444_v8 = vpop.f32.mrb[66].mxu1  ;;  %2159 = vadd.xlane.f32.xlu1 %v2158_v22  ;;  %v2155_v13 = vsel %vm1346_vm2, %v2027_v21, 0.0 }
 0x2ae   : > { %v1781_v23 = vadd.f32 %v8444_v8, %v9536_v32  ;;  %v1775_v25 = vpop.f32.mrb[67].mxu1  ;;  %2156 = vadd.xlane.f32.xlu0 %v2155_v13 }
 0x2af   : > { %v1776_v18 = vadd.f32 %v9536_v32, %v1775_v25 }
 0x2b0   : > { %v1959_v26 = vmax.f32 %v1781_v23, 0.0 }
 0x2b1   : > { %v1958_v24 = vmax.f32 %v1776_v18, 0.0 }
 0x2b2   : > { %v2030_v28 = vmul.f32 %v9545_v62, %v1959_v26 }
 0x2b3   : > { %v2029_v37 = vmul.f32 %v9545_v62, %v1958_v24 }
 0x2b4   : > { %v2164_v30 = vsel %vm1346_vm2, %v2030_v28, 0.0 }
 0x2b5   : > { %v8447_v29 = vpop.f32.mrb[68].mxu1  ;;  %2165 = vadd.xlane.f32.xlu1 %v2164_v30  ;;  %v2161_v45 = vsel %vm1346_vm2, %v2029_v37, 0.0 }
 0x2b6   : > { %v1791_v48 = vadd.f32 %v8447_v29, %v9536_v32  ;;  %v1785_v53 = vpop.f32.mrb[69].mxu1  ;;  %2162 = vadd.xlane.f32.xlu0 %v2161_v45 }
 0x2b7   : > { %v1786_v33 = vadd.f32 %v9536_v32, %v1785_v53 }
 0x2b8   : > { %v1961_v34 = vmax.f32 %v1791_v48, 0.0 }
 0x2b9   : > { %v1960_v57 = vmax.f32 %v1786_v33, 0.0 }
 0x2ba   : > { %v2064_v41 = vpop.xlane.xlu0 %2063  ;;  %v2032_v42 = vmul.f32 %v9545_v62, %v1961_v34 }
 0x2bb   : > { %v2254_v49 = vadd.f32 %v9660_v36, %v2064_v41  ;;  %v2031_v50 = vmul.f32 %v9545_v62, %v1960_v57 }
 0x2bc   : > { %v2170_v55 = vsel %vm1346_vm2, %v2032_v42, 0.0 }
 0x2bd   : > { %v8450_v59 = vpop.f32.mrb[70].mxu1  ;;  %2171 = vadd.xlane.f32.xlu1 %v2170_v55  ;;  %v2167_v60 = vsel %vm1346_vm2, %v2031_v50, 0.0  ;;  %v2416_v4 = vrot.slane %v2254_v49, %v9663_v3  ;;  %v2420_v5 = vrot.slane %v2254_v49, %v9667_v43  ;;  %v2424_v6 = vrot.slane %v2254_v49, %v9670_v46 }
 0x2be   : > { %v1801_v63 = vadd.f32 %v8450_v59, %v9536_v32  ;;  %v1795_v1 = vpop.f32.mrb[71].mxu1  ;;  %2168 = vadd.xlane.f32.xlu0 %v2167_v60  ;;  %v2061_v2 = vpop.xlane.xlu0 %2060  ;;  %v2428_v9 = vrot.slane %v2254_v49, %v9673_v47  ;;  %v2432_v10 = vrot.slane %v2254_v49, %v9678_v51  ;;  %v2436_v11 = vrot.slane %v2254_v49, %v9681_v52 }
 0x2bf   : > { %v1796_v7 = vadd.f32 %v9536_v32, %v1795_v1  ;;  %v2253_v14 = vadd.f32 %v9660_v36, %v2061_v2  ;;  %v2440_v15 = vrot.slane %v2254_v49, %v9685_v56  ;;  %v2444_v35 = vrot.slane %v2254_v49, %v9688_v58 }
 0x2c0   : > { %v1963_v12 = vmax.f32 %v1801_v63, 0.0  ;;  %v4478_v19 = vcombine.low %v2416_v4, %v2420_v5  ;;  %v4479_v20 = vcombine.low %v2424_v6, %v2428_v9  ;;  %v4480_v0 = vcombine.low %v2432_v10, %v2436_v11 }
 0x2c1   : > { %v1962_v16 = vmax.f32 %v1796_v7, 0.0  ;;  %v4481_v21 = vcombine.low %v2440_v15, %v2444_v35  ;;  %v2384_v22 = vrot.slane %v2253_v14, %v9663_v3  ;;  %v2388_v23 = vrot.slane %v2253_v14, %v9667_v43 }
 0x2c2   : > { %v2034_v17 = vmul.f32 %v9545_v62, %v1963_v12  ;;  %v2392_v25 = vrot.slane %v2253_v14, %v9670_v46  ;;  %v2396_v18 = vrot.slane %v2253_v14, %v9673_v47  ;;  %v2400_v24 = vrot.slane %v2253_v14, %v9678_v51 }
 0x2c3   : > { %v2033_v38 = vmul.f32 %v9545_v62, %v1962_v16  ;;  %v2404_v28 = vrot.slane %v2253_v14, %v9681_v52  ;;  %v2408_v37 = vrot.slane %v2253_v14, %v9685_v56  ;;  %v2412_v30 = vrot.slane %v2253_v14, %v9688_v58 }
 0x2c4   : > { %v2176_v54 = vsel %vm1346_vm2, %v2034_v17, 0.0  ;;  %v4488_v29 = vrot.slane %v4478_v19, %v9705_v44  ;;  %v4495_v45 = vrot.slane %v4479_v20, %v9705_v44  ;;  %v4502_v48 = vrot.slane %v4480_v0, %v9705_v44  ;;  %v2070_v20 = vpop.xlane.xlu1 %2069 }
 0x2c5   : > { %2177 = vadd.xlane.f32.xlu1 %v2176_v54  ;;  %v2173_v8 = vsel %vm1346_vm2, %v2033_v38, 0.0  ;;  %v8453_v13 = vpop.f32.mrb[72].mxu1  ;;  %v4509_v53 = vrot.slane %v4481_v21, %v9705_v44  ;;  %v4429_v33 = vcombine.low %v2384_v22, %v2388_v23  ;;  %v4430_v34 = vcombine.low %v2392_v25, %v2396_v18 }
 0x2c6   : > { %2174 = vadd.xlane.f32.xlu0 %v2173_v8  ;;  %v1805_v26 = vpop.f32.mrb[73].mxu1  ;;  %v4431_v57 = vcombine.low %v2400_v24, %v2404_v28  ;;  %v4432_v39 = vcombine.low %v2408_v37, %v2412_v30  ;;  %v4510_v40 = vcombine.low %v4488_v29, %v4495_v45  ;;  %v1811_v17 = vadd.f32 %v8453_v13, %v9536_v32 }
 0x2c7   : > { %v4511_v41 = vcombine.low %v4502_v48, %v4509_v53  ;;  %v4439_v50 = vrot.slane %v4429_v33, %v9705_v44  ;;  %v4446_v55 = vrot.slane %v4430_v34, %v9705_v44  ;;  %v1806_v38 = vadd.f32 %v9536_v32, %v1805_v26 }
 0x2c8   : > { %v4453_v59 = vrot.slane %v4431_v57, %v9705_v44  ;;  %v4460_v60 = vrot.slane %v4432_v39, %v9705_v44  ;;  %v4518_v61 = vrot.slane %v4510_v40, %v9705_v44  ;;  %v2256_v0 = vadd.f32 %v9660_v36, %v2070_v20  ;;  %v2067_v25 = vpop.xlane.xlu1 %2066 }
 0x2c9   : > { %v4525_v63 = vrot.slane %v4511_v41, %v9705_v44  ;;  %v4461_v1 = vcombine.low %v4439_v50, %v4446_v55  ;;  %v1965_v21 = vmax.f32 %v1811_v17, 0.0  ;;  %v1964_v22 = vmax.f32 %v1806_v38, 0.0 }
 0x2ca   : > { %v4462_v2 = vcombine.low %v4453_v59, %v4460_v60  ;;  %v2480_v28 = vrot.slane %v2256_v0, %v9663_v3  ;;  %v2484_v37 = vrot.slane %v2256_v0, %v9667_v43  ;;  %v2488_v29 = vrot.slane %v2256_v0, %v9670_v46 }
 0x2cb   : > { %v4526_v4 = vcombine.low %v4518_v61, %v4525_v63  ;;  %v4469_v6 = vrot.slane %v4461_v1, %v9705_v44  ;;  %v2036_v13 = vmul.f32 %v9545_v62, %v1965_v21  ;;  %v2035_v26 = vmul.f32 %v9545_v62, %v1964_v22 }
 0x2cc   : > { %v4476_v7 = vrot.slane %v4462_v2, %v9705_v44  ;;  %v2492_v45 = vrot.slane %v2256_v0, %v9673_v47  ;;  %v2496_v48 = vrot.slane %v2256_v0, %v9678_v51  ;;  %v2500_v53 = vrot.slane %v2256_v0, %v9681_v52  ;;  %v9777_v63 = vpop.xlane.xlu1 %2075 }
 0x2cd   : > { %v9721_v42 = vpop.f32.mrb[74].mxu1  ;;  %v2255_v33 = vadd.f32 %v9660_v36, %v2067_v25  ;;  %v2504_v34 = vrot.slane %v2256_v0, %v9685_v56  ;;  %v2508_v57 = vrot.slane %v2256_v0, %v9688_v58  ;;  %v2179_v55 = vsel %vm1346_vm2, %v2035_v26, 0.0 }
 0x2ce   : > { %v1815_v49 = vpop.f32.mrb[75].mxu1  ;;  %v4477_v10 = vcombine.low %v4469_v6, %v4476_v7  ;;  %v4576_v59 = vcombine.low %v2480_v28, %v2484_v37  ;;  %v4577_v60 = vcombine.low %v2488_v29, %v2492_v45  ;;  %v4578_v61 = vcombine.low %v2496_v48, %v2500_v53 }
 0x2cf   : > { %v1816_v18 = vadd.f32 %v9536_v32, %v1815_v49  ;;  %v2182_v49 = vsel %vm1346_vm2, %v2036_v13, 0.0  ;;  %v4579_v1 = vcombine.low %v2504_v34, %v2508_v57  ;;  %v2448_v2 = vrot.slane %v2255_v33, %v9663_v3 }
 0x2d0   : > { %v2456_v6 = vrot.slane %v2255_v33, %v9670_v46  ;;  %v2460_v17 = vrot.slane %v2255_v33, %v9673_v47  ;;  %v2464_v20 = vrot.slane %v2255_v33, %v9678_v51  ;;  %v2468_v0 = vrot.slane %v2255_v33, %v9681_v52 }
 0x2d1   : > { %v1966_v39 = vmax.f32 %v1816_v18, 0.0  ;;  %v2472_v21 = vrot.slane %v2255_v33, %v9685_v56  ;;  %v2476_v22 = vrot.slane %v2255_v33, %v9688_v58  ;;  %v4593_v13 = vrot.slane %v4577_v60, %v9705_v44 }
 0x2d2   : > { %v9793_v18 = vpop.xlane.xlu1 %2081  ;;  %v4600_v26 = vrot.slane %v4578_v61, %v9705_v44  ;;  %v4607_v45 = vrot.slane %v4579_v1, %v9705_v44  ;;  %v4529_v34 = vcombine.low %v2464_v20, %v2468_v0 }
 0x2d3   : > { %v4530_v57 = vcombine.low %v2472_v21, %v2476_v22 }
 0x2d4   : > { %v4609_v60 = vcombine.low %v4600_v26, %v4607_v45 }
 0x2d5   : > { %v9729_v5 = vpop.f32.mrb[76].mxu1 }
 0x2d6   : > { %7569 = vperm.xlu1 %8626, %v4526_v4   ;;  %v1825_v9 = vpop.f32.mrb[77].mxu1  ;;  %v2452_v4 = vrot.slane %v2255_v33, %v9667_v43  ;;  %v4528_v33 = vcombine.low %v2456_v6, %v2460_v17 }
 0x2d7   : > { %v1826_v40 = vadd.f32 %v9536_v32, %v1825_v9 }
 0x2d8   : > { %v4527_v53 = vcombine.low %v2448_v2, %v2452_v4  ;;  %v4544_v1 = vrot.slane %v4528_v33, %v9705_v44  ;;  %v4558_v2 = vrot.slane %v4530_v57, %v9705_v44 }
 0x2d9   : > { %v1968_v7 = vmax.f32 %v1826_v40, 0.0 }
 0x2da   : > { %v2088_v40 = vpop.xlane.xlu1 %2087  ;;  %v4537_v61 = vrot.slane %v4527_v53, %v9705_v44 }
 0x2db   : > { %v2039_v29 = vmul.f32 %v9545_v62, %v1968_v7  ;;  %v4551_v7 = vrot.slane %v4529_v34, %v9705_v44  ;;  %v2262_v4 = vadd.f32 %v9660_v36, %v2088_v40 }
 0x2dc   : > { %7566 = vperm.xlu0 %8627, %v4477_v10   ;;  %v2037_v10 = vmul.f32 %v9545_v62, %v1966_v39  ;;  %v4559_v17 = vcombine.low %v4537_v61, %v4544_v1  ;;  %v2073_v1 = vpop.xlane.xlu0 %2072 }
 0x2dd   : > { %v9733_v11 = vpop.f32.mrb[78].mxu1  ;;  %v4560_v20 = vcombine.low %v4551_v7, %v4558_v2  ;;  %v2672_v0 = vrot.slane %v2262_v4, %v9663_v3  ;;  %v2676_v21 = vrot.slane %v2262_v4, %v9667_v43  ;;  %v2680_v22 = vrot.slane %v2262_v4, %v9670_v46 }
 0x2de   : > { %v1835_v12 = vpop.f32.mrb[79].mxu1  ;;  %v2185_v37 = vsel %vm1346_vm2, %v2037_v10, 0.0  ;;  %v4623_v10 = vrot.slane %v4609_v60, %v9705_v44  ;;  %v2692_v26 = vrot.slane %v2262_v4, %v9681_v52  ;;  %v4567_v45 = vrot.slane %v4559_v17, %v9705_v44 }
 0x2df   : > { %v1836_v9 = vadd.f32 %v9536_v32, %v1835_v12  ;;  %v4586_v12 = vrot.slane %v4576_v59, %v9705_v44  ;;  %v4574_v53 = vrot.slane %v4560_v20, %v9705_v44  ;;  %v4870_v33 = vcombine.low %v2672_v0, %v2676_v21 }
 0x2e1   : > { %v9735_v14 = vpop.f32.mrb[80].mxu1  ;;  %v1970_v28 = vmax.f32 %v1836_v9, 0.0  ;;  %v4608_v59 = vcombine.low %v4586_v12, %v4593_v13  ;;  %v2684_v12 = vrot.slane %v2262_v4, %v9673_v47  ;;  %v2688_v13 = vrot.slane %v2262_v4, %v9678_v51 }
 0x2e2   : > { %v9737_v15 = vpop.f32.mrb[81].mxu1  ;;  %v9835_v17 = vpop.xlane.xlu1 %2093 }
 0x2e3   : > { %v4616_v9 = vrot.slane %v4608_v59, %v9705_v44  ;;  %v4871_v34 = vcombine.low %v2680_v22, %v2684_v12  ;;  %v4872_v57 = vcombine.low %v2688_v13, %v2692_v26  ;;  %v1821_v22 = vadd.f32 %v9721_v42, %v9536_v32 }
 0x2e5   : > { %v9739_v35 = vpop.f32.mrb[82].mxu1  ;;  %v4887_v59 = vrot.slane %v4871_v34, %v9705_v44  ;;  %v4894_v60 = vrot.slane %v4872_v57, %v9705_v44  ;;  %v1967_v26 = vmax.f32 %v1821_v22, 0.0 }
 0x2e6   : > { %v9741_v16 = vpop.f32.mrb[83].mxu1 }
 0x2e9   : > { %v9745_v19 = vpop.f32.mrb[84].mxu1 }
 0x2ea   : > { %v9747_v54 = vpop.f32.mrb[85].mxu1  ;;  %v9839_v21 = vpop.xlane.xlu1 %2099 }
 0x2ed   : > { %v9750_v8 = vpop.f32.mrb[86].mxu1 }
 0x2ee   : > { %v9752_v23 = vpop.f32.mrb[87].mxu1 }
 0x2f1   : > { %v9755_v24 = vpop.f32.mrb[88].mxu1 }
 0x2f2   : > { %v9761_v30 = vpop.f32.mrb[89].mxu1  ;;  %v9845_v13 = vpop.xlane.xlu1 %2105 }
 0x2f5   : > { %v9771_v41 = vpop.f32.mrb[90].mxu1 }
 0x2f6   : > { %12000 = vst [vmem:[#allocation7_spill] sm:$0xff] %v9771_v41  ;;  %v9774_v50 = vpop.f32.mrb[91].mxu1 }
 0x2f9   : > { %v9785_v38 = vpop.f32.mrb[92].mxu1 }
 0x2fa   : > { %12001 = vst [vmem:[#allocation8_spill] sm:$0xff] %v9785_v38  ;;  %2183 = vadd.xlane.f32.xlu1 %v2182_v49  ;;  %v9791_v25 = vpop.f32.mrb[93].mxu1  ;;  %v2191_v49 = vsel %vm1346_vm2, %v2039_v29, 0.0  ;;  %v4624_v29 = vcombine.low %v4616_v9, %v4623_v10 }
 0x2fb   : > { %2180 = vadd.xlane.f32.xlu0 %v2179_v55  ;;  %v2041_v55 = vmul.f32 %v9545_v62, %v1970_v28  ;;  %v2696_v28 = vrot.slane %v2262_v4, %v9685_v56 }
 0x2fd   : > { %v9801_v48 = vpop.f32.mrb[94].mxu1  ;;  %v2197_v6 = vsel %vm1346_vm2, %v2041_v55, 0.0  ;;  %v4880_v55 = vrot.slane %v4870_v33, %v9705_v44 }
 0x2fe   : > { %12002 = vst [vmem:[#allocation9_spill] sm:$0xff] %v9801_v48  ;;  %v9803_v39 = vpop.f32.mrb[95].mxu1 }
 0x2ff   : > { %2186 = vadd.xlane.f32.xlu0 %v2185_v37  ;;  %v2700_v37 = vrot.slane %v2262_v4, %v9688_v58  ;;  %v4902_v7 = vcombine.low %v4880_v55, %v4887_v59  ;;  %v9829_v4 = vpop.xlane.xlu0 %2078 }
 0x301   : > { %v4873_v40 = vcombine.low %v2696_v28, %v2700_v37  ;;  %v2258_v28 = vadd.f32 %v9660_v36, %v9777_v63 }
 0x303   : > { %2192 = vadd.xlane.f32.xlu0 %v2191_v49  ;;  %v4575_v49 = vcombine.low %v4567_v45, %v4574_v53  ;;  %v4901_v61 = vrot.slane %v4873_v40, %v9705_v44  ;;  %v9833_v10 = vpop.xlane.xlu0 %2084  ;;  %v2038_v45 = vmul.f32 %v9545_v62, %v1967_v26  ;;  %v2544_v42 = vrot.slane %v2258_v28, %v9663_v3 }
 0x304   : > { %v2548_v34 = vrot.slane %v2258_v28, %v9667_v43  ;;  %v2552_v57 = vrot.slane %v2258_v28, %v9670_v46  ;;  %v2556_v40 = vrot.slane %v2258_v28, %v9673_v47  ;;  %v2560_v63 = vrot.slane %v2258_v28, %v9678_v51 }
 0x305   : > { %v4903_v2 = vcombine.low %v4894_v60, %v4901_v61  ;;  %v2568_v55 = vrot.slane %v2258_v28, %v9685_v56  ;;  %v2572_v59 = vrot.slane %v2258_v28, %v9688_v58  ;;  %v2257_v60 = vadd.f32 %v9660_v36, %v2073_v1 }
 0x306   : > { %v1846_v61 = vadd.f32 %v9536_v32, %v9737_v15  ;;  %v4675_v22 = vcombine.low %v2552_v57, %v2556_v40 }
 0x307   : > { %2198 = vadd.xlane.f32.xlu0 %v2197_v6  ;;  %v4910_v6 = vrot.slane %v4902_v7, %v9705_v44  ;;  %v4917_v9 = vrot.slane %v4903_v2, %v9705_v44  ;;  %v9837_v0 = vpop.xlane.xlu0 %2090  ;;  %v4677_v27 = vcombine.low %v2568_v55, %v2572_v59  ;;  %v2516_v1 = vrot.slane %v2257_v60, %v9667_v43 }
 0x308   : > { %v2524_v15 = vrot.slane %v2257_v60, %v9673_v47  ;;  %v2532_v48 = vrot.slane %v2257_v60, %v9681_v52 }
 0x309   : > { %v4918_v20 = vcombine.low %v4910_v6, %v4917_v9  ;;  %v2188_v6 = vsel %vm1346_vm2, %v2038_v45, 0.0  ;;  %v4674_v9 = vcombine.low %v2544_v42, %v2548_v34  ;;  %v2536_v45 = vrot.slane %v2257_v60, %v9685_v56 }
 0x30a   : > { %v2540_v42 = vrot.slane %v2257_v60, %v9688_v58  ;;  %v4705_v55 = vrot.slane %v4677_v27, %v9705_v44 }
 0x30b   : > { %7575 = vperm.xlu1 %8626, %v4624_v29   ;;  %v9843_v12 = vpop.xlane.xlu0 %2096  ;;  %v9851_v29 = vpop.xlane.xlu1 %2111  ;;  %v4684_v57 = vrot.slane %v4674_v9, %v9705_v44 }
 0x30f   : > { %7572 = vperm.xlu1 %8626, %v4575_v49   ;;  %v9849_v37 = vpop.xlane.xlu0 %2102  ;;  %v9856_v33 = vpop.xlane.xlu1 %2117  ;;  %v2564_v49 = vrot.slane %v2258_v28, %v9681_v52  ;;  %v2512_v28 = vrot.slane %v2257_v60, %v9663_v3 }
 0x311   : > { %v4676_v26 = vcombine.low %v2560_v63, %v2564_v49  ;;  %v4691_v63 = vrot.slane %v4675_v22, %v9705_v44  ;;  %v4625_v59 = vcombine.low %v2512_v28, %v2516_v1 }
 0x313   : > { %v9854_v53 = vpop.xlane.xlu0 %2108  ;;  %v9871_v2 = vpop.xlane.xlu1 %2123  ;;  %v4698_v49 = vrot.slane %v4676_v26, %v9705_v44  ;;  %v4706_v9 = vcombine.low %v4684_v57, %v4691_v63  ;;  %v4635_v22 = vrot.slane %v4625_v59, %v9705_v44 }
 0x314   : > { %12003 = vst [vmem:[#allocation10_spill] sm:$0xff] %v9854_v53  ;;  %12005 = vst [vmem:[#allocation12_spill] sm:$0xff] %v9871_v2  ;;  %v2520_v53 = vrot.slane %v2257_v60, %v9670_v46  ;;  %v4628_v2 = vcombine.low %v2536_v45, %v2540_v42 }
 0x316   : > { %v4626_v38 = vcombine.low %v2520_v53, %v2524_v15  ;;  %v4656_v53 = vrot.slane %v4628_v2, %v9705_v44 }
 0x317   : > { %v9869_v7 = vpop.xlane.xlu0 %2114  ;;  %v9886_v34 = vpop.xlane.xlu1 %2129 }
 0x318   : > { %12004 = vst [vmem:[#allocation11_spill] sm:$0xff] %v9869_v7  ;;  %v2528_v7 = vrot.slane %v2257_v60, %v9678_v51  ;;  %v4642_v26 = vrot.slane %v4626_v38, %v9705_v44 }
 0x31a   : > { %v4627_v41 = vcombine.low %v2528_v7, %v2532_v48  ;;  %v2264_v48 = vadd.f32 %v9660_v36, %v9835_v17  ;;  %v4657_v45 = vcombine.low %v4635_v22, %v4642_v26 }
 0x31c   : > { %v4649_v27 = vrot.slane %v4627_v41, %v9705_v44  ;;  %v2736_v17 = vrot.slane %v2264_v48, %v9663_v3  ;;  %v2744_v57 = vrot.slane %v2264_v48, %v9670_v46  ;;  %v2756_v63 = vrot.slane %v2264_v48, %v9681_v52 }
 0x31d   : > { %7593 = vperm.xlu0 %8627, %v4918_v20   ;;  %v1856_v20 = vadd.f32 %v9536_v32, %v9741_v16  ;;  %v1972_v32 = vmax.f32 %v1846_v61, 0.0  ;;  %v9884_v16 = vpop.xlane.xlu0 %2120  ;;  %v9894_v61 = vpop.xlane.xlu1 %2135 }
 0x31e   : > { %12006 = vst [vmem:[#allocation13_spill] sm:$0xff] %v9884_v16  ;;  %v4658_v41 = vcombine.low %v4649_v27, %v4656_v53 }
 0x31f   : > { %v1974_v40 = vmax.f32 %v1856_v20, 0.0  ;;  %v2043_v16 = vmul.f32 %v9545_v62, %v1972_v32  ;;  %v4707_v20 = vcombine.low %v4698_v49, %v4705_v55  ;;  %v2740_v32 = vrot.slane %v2264_v48, %v9667_v43 }
 0x320   : > { %v2760_v49 = vrot.slane %v2264_v48, %v9685_v56  ;;  %v2764_v55 = vrot.slane %v2264_v48, %v9688_v58 }
 0x321   : > { %v9892_v60 = vpop.xlane.xlu0 %2126  ;;  %v2203_v1 = vsel %vm1346_vm2, %v2043_v16, 0.0  ;;  %v4721_v38 = vrot.slane %v4707_v20, %v9705_v44  ;;  %v2748_v16 = vrot.slane %v2264_v48, %v9673_v47  ;;  %v4968_v26 = vcombine.low %v2736_v17, %v2740_v32 }
 0x322   : > { %12007 = vst [vmem:[#allocation14_spill] sm:$0xff] %v9892_v60  ;;  %v9906_v28 = vpop.xlane.xlu1 %2141 }
 0x323   : > { %v4969_v27 = vcombine.low %v2744_v57, %v2748_v16 }
 0x325   : > { %v9904_v7 = vpop.xlane.xlu0 %2132 }
 0x326   : > { %12008 = vst [vmem:[#allocation15_spill] sm:$0xff] %v9904_v7 }
 0x329   : > { %v9912_v42 = vpop.xlane.xlu0 %2138 }
 0x32a   : > { %12009 = vst [vmem:[#allocation16_spill] sm:$0xff] %v9912_v42  ;;  %v9914_v2 = vpop.xlane.xlu1 %2147 }
 0x32b   : > { %12010 = vst [vmem:[#allocation17_spill] sm:$0xff] %v9914_v2 }
 0x32d   : > { %v9926_v20 = vpop.xlane.xlu0 %2144 }
 0x32e   : > { %12011 = vst [vmem:[#allocation18_spill] sm:$0xff] %v9926_v20 }
 0x332   : > { %v9928_v22 = vpop.xlane.xlu1 %2153 }
 0x333   : > { %2189 = vadd.xlane.f32.xlu1 %v2188_v6  ;;  %v2045_v6 = vmul.f32 %v9545_v62, %v1974_v40  ;;  %v4714_v62 = vrot.slane %v4706_v9, %v9705_v44  ;;  %v2752_v40 = vrot.slane %v2264_v48, %v9678_v51  ;;  %v4672_v9 = vrot.slane %v4658_v41, %v9705_v44  ;;  %v9930_v42 = vpop.xlane.xlu0 %2150 }
 0x334   : > { %12012 = vst [vmem:[#allocation19_spill] sm:$0xff] %v9928_v22  ;;  %12013 = vst [vmem:[#allocation20_spill] sm:$0xff] %v9930_v42  ;;  %v4978_v48 = vrot.slane %v4968_v26, %v9705_v44 }
 0x335   : > { %v2209_v15 = vsel %vm1346_vm2, %v2045_v6, 0.0  ;;  %v4722_v59 = vcombine.low %v4714_v62, %v4721_v38  ;;  %v4665_v6 = vrot.slane %v4657_v45, %v9705_v44  ;;  %v4970_v53 = vcombine.low %v2752_v40, %v2756_v63 }
 0x336   : > { %v4985_v62 = vrot.slane %v4969_v27, %v9705_v44  ;;  %v12019_v63 = vlaneseq }
 0x337   : > { %v4992_v38 = vrot.slane %v4970_v53, %v9705_v44 }
 0x338   : > { %v5000_v32 = vcombine.low %v4978_v48, %v4985_v62 }
 0x33a   : > { %v9932_v7 = vpop.xlane.xlu1 %2159 }
 0x33b   : > { %12014 = vst [vmem:[#allocation21_spill] sm:$0xff] %v9932_v7  ;;  %v9938_v41 = vpop.xlane.xlu0 %2156 }
 0x33c   : > { %2204 = vadd.xlane.f32.xlu0 %v2203_v1  ;;  %v4971_v1 = vcombine.low %v2760_v49, %v2764_v55  ;;  %12015 = vst [vmem:[#allocation22_spill] sm:$0xff] %v9938_v41  ;;  %v9947_v49 = vand.u32 127, %v12019_v63  ;;  %v5008_v55 = vrot.slane %v5000_v32, %v9705_v44  ;;  %v9984_v63 = vld [vmem:[%s11964_s6] ss:$0 sm:$0xff] }
 0x33e   : > { %v4999_v45 = vrot.slane %v4971_v1, %v9705_v44  ;;  %v7763_v26 = vadd.s32 4294967288, %v9947_v49 }
 0x340   : > { %2210 = vadd.xlane.f32.xlu0 %v2209_v15  ;;  %v4673_v15 = vcombine.low %v4665_v6, %v4672_v9  ;;  %v5001_v57 = vcombine.low %v4992_v38, %v4999_v45  ;;  %v9959_v1 = vsub.s32 %v7763_v26, %v9656_v31  ;;  %v9968_v38 = vld [vmem:[%s11963_s5] ss:$0 sm:$0xff] }
 0x341   : > { %v1831_v45 = vadd.f32 %v9968_v38, %v9729_v5 }
 0x342   : > { %v9940_v17 = vpop.xlane.xlu1 %2165  ;;  %12023 = vst [vmem:[#allocation29_spill] sm:$0xff] %v9959_v1 }
 0x343   : > { %12016 = vst [vmem:[#allocation23_spill] sm:$0xff] %v9940_v17  ;;  %v9942_v16 = vpop.xlane.xlu0 %2162  ;;  %v1969_v26 = vmax.f32 %v1831_v45, 0.0 }
 0x344   : > { %7581 = vperm.xlu1 %8626, %v4722_v59   ;;  %12017 = vst [vmem:[#allocation24_spill] sm:$0xff] %v9942_v16  ;;  %v5015_v59 = vrot.slane %v5001_v57, %v9705_v44 }
 0x345   : > { %v2040_v5 = vmul.f32 %v9984_v63, %v1969_v26  ;;  %v1876_v26 = vadd.f32 %v9968_v38, %v9752_v23 }
 0x346   : > { %v5016_v27 = vcombine.low %v5008_v55, %v5015_v59  ;;  %v2260_v59 = vadd.f32 %v9660_v36, %v9793_v18 }
 0x348   : > { %7578 = vperm.xlu1 %8626, %v4673_v15   ;;  %v9963_v15 = vsub.s32 %v9947_v49, %v9656_v31  ;;  %v2624_v18 = vrot.slane %v2260_v59, %v9678_v51  ;;  %v2628_v45 = vrot.slane %v2260_v59, %v9681_v52 }
 0x34a   : > { %v9944_v40 = vpop.xlane.xlu1 %2171  ;;  %12024 = vst [vmem:[#allocation30_spill] sm:$0xff] %v9963_v15  ;;  %v4774_v41 = vcombine.low %v2624_v18, %v2628_v45 }
 0x34b   : > { %12018 = vst [vmem:[#allocation25_spill] sm:$0xff] %v9944_v40  ;;  %v9951_v6 = vpop.xlane.xlu0 %2168 }
 0x34c   : > { %12020 = vst [vmem:[#allocation26_spill] sm:$0xff] %v9951_v6 }
 0x352   : > { %v9953_v9 = vpop.xlane.xlu1 %2177 }
 0x353   : > { %12021 = vst [vmem:[#allocation27_spill] sm:$0xff] %v9953_v9  ;;  %v9956_v53 = vpop.xlane.xlu0 %2174 }
 0x354   : > { %12022 = vst [vmem:[#allocation28_spill] sm:$0xff] %v9956_v53  ;;  %v2194_v53 = vsel %vm1346_vm2, %v2040_v5, 0.0 }
 0x356   : > { %7599 = vperm.xlu0 %8627, %v5016_v27   ;;  %v7570_v48 = vpop.permute.xlu1 %7569  ;;  %v2259_v27 = vadd.f32 %v9660_v36, %v9829_v4  ;;  %v2632_v4 = vrot.slane %v2260_v59, %v9685_v56 }
 0x357   : > { %v7767_v32 = vrot.slane %v7570_v48, %v9959_v1  ;;  %v2608_v48 = vrot.slane %v2260_v59, %v9663_v3  ;;  %v1866_v1 = vadd.f32 %v9968_v38, %v9747_v54 }
 0x358   : > { %v2576_v42 = vrot.slane %v2259_v27, %v9663_v3  ;;  %v2580_v60 = vrot.slane %v2259_v27, %v9667_v43  ;;  %v2584_v9 = vrot.slane %v2259_v27, %v9670_v46  ;;  %v2592_v40 = vrot.slane %v2259_v27, %v9678_v51 }
 0x359   : > { %v2596_v54 = vrot.slane %v2259_v27, %v9681_v52  ;;  %v2600_v23 = vrot.slane %v2259_v27, %v9685_v56  ;;  %v2604_v5 = vrot.slane %v2259_v27, %v9688_v58 }
 0x35a   : > { %v4723_v45 = vcombine.low %v2576_v42, %v2580_v60  ;;  %v2266_v60 = vadd.f32 %v9660_v36, %v9839_v21 }
 0x35b   : > { %v7567_v62 = vpop.permute.xlu0 %7566  ;;  %v4725_v17 = vcombine.low %v2592_v40, %v2596_v54  ;;  %v4726_v7 = vcombine.low %v2600_v23, %v2604_v5 }
 0x35c   : > { %v7762_v57 = vrot.slane %v7567_v62, %v9963_v15  ;;  %v2612_v62 = vrot.slane %v2260_v59, %v9667_v43  ;;  %v2636_v15 = vrot.slane %v2260_v59, %v9688_v58  ;;  %v2800_v54 = vrot.slane %v2266_v60, %v9663_v3 }
 0x35d   : > { %v2812_v23 = vrot.slane %v2266_v60, %v9673_v47  ;;  %v2816_v21 = vrot.slane %v2266_v60, %v9678_v51  ;;  %v2828_v5 = vrot.slane %v2266_v60, %v9688_v58 }
 0x35e   : > { %v9975_v55 = vsel %vm7768_vm3, %v7767_v32, %v7762_v57  ;;  %v2616_v32 = vrot.slane %v2260_v59, %v9670_v46  ;;  %v2620_v57 = vrot.slane %v2260_v59, %v9673_v47  ;;  %v4772_v6 = vcombine.low %v2608_v48, %v2612_v62 }
 0x35f   : > { %v4775_v20 = vcombine.low %v2632_v4, %v2636_v15  ;;  %v2588_v59 = vrot.slane %v2259_v27, %v9673_v47  ;;  %v1976_v48 = vmax.f32 %v1866_v1, 0.0  ;;  %v1978_v62 = vmax.f32 %v1876_v26, 0.0 }
 0x360   : > { %v4773_v16 = vcombine.low %v2616_v32, %v2620_v57  ;;  %v4782_v32 = vrot.slane %v4772_v6, %v9705_v44  ;;  %v4796_v57 = vrot.slane %v4774_v41, %v9705_v44  ;;  %v4754_v41 = vrot.slane %v4726_v7, %v9705_v44 }
 0x361   : > { %v4803_v18 = vrot.slane %v4775_v20, %v9705_v44  ;;  %v4724_v4 = vcombine.low %v2584_v9, %v2588_v59  ;;  %v2047_v22 = vmul.f32 %v9984_v63, %v1976_v48  ;;  %v2049_v2 = vmul.f32 %v9984_v63, %v1978_v62 }
 0x362   : > { %v4789_v15 = vrot.slane %v4773_v16, %v9705_v44  ;;  %v4747_v16 = vrot.slane %v4725_v17, %v9705_v44  ;;  %v2804_v17 = vrot.slane %v2266_v60, %v9667_v43  ;;  %v2808_v7 = vrot.slane %v2266_v60, %v9670_v46 }
 0x363   : > { %v4805_v1 = vcombine.low %v4796_v57, %v4803_v18  ;;  %v4740_v6 = vrot.slane %v4724_v4, %v9705_v44  ;;  %v2215_v42 = vsel %vm1346_vm2, %v2047_v22, 0.0  ;;  %v2221_v20 = vsel %vm1346_vm2, %v2049_v2, 0.0 }
 0x364   : > { %v4804_v27 = vcombine.low %v4782_v32, %v4789_v15  ;;  %v4756_v59 = vcombine.low %v4747_v16, %v4754_v41  ;;  %v2820_v22 = vrot.slane %v2266_v60, %v9681_v52  ;;  %v2824_v2 = vrot.slane %v2266_v60, %v9685_v56 }
 0x365   : > { %v4819_v9 = vrot.slane %v4805_v1, %v9705_v44  ;;  %v5066_v15 = vcombine.low %v2800_v54, %v2804_v17  ;;  %v5067_v57 = vcombine.low %v2808_v7, %v2812_v23 }
 0x366   : > { %v4812_v40 = vrot.slane %v4804_v27, %v9705_v44  ;;  %v4770_v32 = vrot.slane %v4756_v59, %v9705_v44  ;;  %v5068_v18 = vcombine.low %v2816_v21, %v2820_v22 }
 0x367   : > { %v5076_v27 = vrot.slane %v5066_v15, %v9705_v44  ;;  %v5083_v1 = vrot.slane %v5067_v57, %v9705_v44 }
 0x368   : > { %v4820_v48 = vcombine.low %v4812_v40, %v4819_v9 }
 0x369   : > { %v5098_v16 = vcombine.low %v5076_v27, %v5083_v1 }
 0x36b   : > { %v5106_v40 = vrot.slane %v5098_v16, %v9705_v44 }
 0x36c   : > { %2195 = vadd.xlane.f32.xlu1 %v2194_v53  ;;  %v4733_v53 = vrot.slane %v4723_v45, %v9705_v44  ;;  %v5069_v45 = vcombine.low %v2824_v2, %v2828_v5  ;;  %v1841_v5 = vadd.f32 %v9968_v38, %v9733_v11 }
 0x36e   : > { %v4755_v26 = vcombine.low %v4733_v53, %v4740_v6  ;;  %v5090_v53 = vrot.slane %v5068_v18, %v9705_v44  ;;  %v5097_v6 = vrot.slane %v5069_v45, %v9705_v44  ;;  %v1886_v18 = vadd.f32 %v9968_v38, %v9761_v30 }
 0x370   : > { %v4763_v62 = vrot.slane %v4755_v26, %v9705_v44  ;;  %v5099_v41 = vcombine.low %v5090_v53, %v5097_v6  ;;  %v1980_v6 = vmax.f32 %v1886_v18, 0.0 }
 0x372   : > { %v4771_v4 = vcombine.low %v4763_v62, %v4770_v32  ;;  %v5113_v9 = vrot.slane %v5099_v41, %v9705_v44  ;;  %v1971_v62 = vmax.f32 %v1841_v5, 0.0  ;;  %v2261_v32 = vadd.f32 %v9660_v36, %v9833_v10 }
 0x373   : > { %v2268_v5 = vadd.f32 %v9660_v36, %v9845_v13 }
 0x374   : > { %v5114_v17 = vcombine.low %v5106_v40, %v5113_v9  ;;  %v2042_v57 = vmul.f32 %v9984_v63, %v1971_v62  ;;  %v2640_v11 = vrot.slane %v2261_v32, %v9663_v3  ;;  %v2652_v27 = vrot.slane %v2261_v32, %v9673_v47 }
 0x375   : > { %2216 = vadd.xlane.f32.xlu0 %v2215_v42  ;;  %v7770_v42 = vadd.s32 4294967280, %v9947_v49  ;;  %v2656_v10 = vrot.slane %v2261_v32, %v9678_v51  ;;  %v2660_v53 = vrot.slane %v2261_v32, %v9681_v52  ;;  %v2664_v30 = vrot.slane %v2261_v32, %v9685_v56 }
 0x376   : > { %v2200_v1 = vsel %vm1346_vm2, %v2042_v57, 0.0  ;;  %v2864_v57 = vrot.slane %v2268_v5, %v9663_v3  ;;  %v2868_v18 = vrot.slane %v2268_v5, %v9667_v43  ;;  %v2884_v13 = vrot.slane %v2268_v5, %v9681_v52 }
 0x377   : > { %v10045_v59 = vsub.s32 %v7770_v42, %v9656_v31  ;;  %v4823_v40 = vcombine.low %v2656_v10, %v2660_v53 }
 0x379   : > { %2222 = vadd.xlane.f32.xlu0 %v2221_v20  ;;  %v7777_v20 = vadd.s32 4294967272, %v9947_v49  ;;  %12026 = vst [vmem:[#allocation32_spill] sm:$0xff] %v10045_v59 }
 0x37b   : > { %v10048_v54 = vsub.s32 %v7777_v20, %v9656_v31 }
 0x37d   : > { %7587 = vperm.xlu1 %8626, %v4820_v48   ;;  %12027 = vst [vmem:[#allocation33_spill] sm:$0xff] %v10048_v54  ;;  %v1851_v48 = vadd.f32 %v9968_v38, %v9735_v14  ;;  %v2648_v14 = vrot.slane %v2261_v32, %v9670_v46 }
 0x37f   : > { %v1973_v15 = vmax.f32 %v1851_v48, 0.0  ;;  %v4822_v20 = vcombine.low %v2648_v14, %v2652_v27  ;;  %v2892_v14 = vrot.slane %v2268_v5, %v9688_v58 }
 0x381   : > { %7584 = vperm.xlu1 %8626, %v4771_v4   ;;  %v2044_v45 = vmul.f32 %v9984_v63, %v1973_v15  ;;  %v2644_v4 = vrot.slane %v2261_v32, %v9667_v43 }
 0x383   : > { %v2206_v41 = vsel %vm1346_vm2, %v2044_v45, 0.0  ;;  %v4821_v42 = vcombine.low %v2640_v11, %v2644_v4  ;;  %v2876_v45 = vrot.slane %v2268_v5, %v9673_v47  ;;  %v2880_v11 = vrot.slane %v2268_v5, %v9678_v51 }
 0x384   : > { %v2888_v4 = vrot.slane %v2268_v5, %v9685_v56 }
 0x387   : > { %v10038_v60 = vpop.xlane.xlu1 %2183 }
 0x388   : > { %12025 = vst [vmem:[#allocation31_spill] sm:$0xff] %v10038_v60 }
 0x38b   : > { %v7576_v26 = vpop.permute.xlu1 %7575 }
 0x38c   : > { %v7781_v21 = vrot.slane %v7576_v26, %v10048_v54  ;;  %v2051_v26 = vmul.f32 %v9984_v63, %v1980_v6 }
 0x38e   : > { %v2227_v48 = vsel %vm1346_vm2, %v2051_v26, 0.0 }
 0x38f   : > { %v7573_v7 = vpop.permute.xlu1 %7572  ;;  %7605 = vperm.xlu0 %8627, %v5114_v17  }
 0x390   : > { %v7774_v23 = vrot.slane %v7573_v7, %v10045_v59  ;;  %v4831_v7 = vrot.slane %v4821_v42, %v9705_v44 }
 0x392   : > { %v7776_v22 = vsel %vm7775_vm4, %v7774_v23, %v9975_v55  ;;  %v1896_v55 = vadd.f32 %v9968_v38, %v9774_v50  ;;  %v2668_v50 = vrot.slane %v2261_v32, %v9688_v58  ;;  %v4838_v23 = vrot.slane %v4822_v20, %v9705_v44 }
 0x393   : > { %v10055_v2 = vsel %vm7782_vm5, %v7781_v21, %v7776_v22  ;;  %v4845_v21 = vrot.slane %v4823_v40, %v9705_v44 }
 0x394   : > { %v1982_v16 = vmax.f32 %v1896_v55, 0.0  ;;  %v4824_v9 = vcombine.low %v2664_v30, %v2668_v50  ;;  %v4853_v32 = vcombine.low %v4831_v7, %v4838_v23  ;;  %v2872_v55 = vrot.slane %v2268_v5, %v9670_v46 }
 0x395   : > { %v5166_v30 = vcombine.low %v2880_v11, %v2884_v13  ;;  %v5167_v50 = vcombine.low %v2888_v4, %v2892_v14  ;;  %v7791_v7 = vadd.s32 4294967256, %v9947_v49  ;;  %v2263_v5 = vadd.f32 %v9660_v36, %v9837_v0 }
 0x396   : > { %v2053_v17 = vmul.f32 %v9984_v63, %v1982_v16  ;;  %v4852_v22 = vrot.slane %v4824_v9, %v9705_v44  ;;  %v4861_v27 = vrot.slane %v4853_v32, %v9705_v44  ;;  %v5165_v53 = vcombine.low %v2872_v55, %v2876_v45 }
 0x397   : > { %v5188_v42 = vrot.slane %v5166_v30, %v9705_v44  ;;  %v5195_v20 = vrot.slane %v5167_v50, %v9705_v44  ;;  %v2704_v0 = vrot.slane %v2263_v5, %v9663_v3  ;;  %v2708_v11 = vrot.slane %v2263_v5, %v9667_v43 }
 0x398   : > { %v2233_v62 = vsel %vm1346_vm2, %v2053_v17, 0.0  ;;  %v4854_v15 = vcombine.low %v4845_v21, %v4852_v22  ;;  %v7784_v17 = vadd.s32 4294967264, %v9947_v49  ;;  %v2712_v13 = vrot.slane %v2263_v5, %v9670_v46 }
 0x399   : > { %v5197_v9 = vcombine.low %v5188_v42, %v5195_v20  ;;  %v2716_v4 = vrot.slane %v2263_v5, %v9673_v47  ;;  %v1916_v14 = vadd.f32 %v9968_v38, %v9803_v39  ;;  %v2732_v50 = vrot.slane %v2263_v5, %v9688_v58 }
 0x39a   : > { %v4868_v10 = vrot.slane %v4854_v15, %v9705_v44  ;;  %v1861_v15 = vadd.f32 %v9968_v38, %v9739_v35  ;;  %v10129_v35 = vadd.f32 %v9968_v38, %v9750_v8  ;;  %v2270_v39 = vadd.f32 %v9660_v36, %v9851_v29 }
 0x39b   : > { %v5211_v21 = vrot.slane %v5197_v9, %v9705_v44  ;;  %v1986_v42 = vmax.f32 %v1916_v14, 0.0  ;;  %v10158_v9 = vadd.f32 %v9660_v36, %v9849_v37  ;;  %v10162_v29 = vadd.f32 %v9660_v36, %v9856_v33 }
 0x39c   : > { %v4869_v6 = vcombine.low %v4861_v27, %v4868_v10  ;;  %v10139_v10 = vadd.f32 %v9968_v38, %v9755_v24  ;;  %v1975_v30 = vmax.f32 %v1861_v15, 0.0  ;;  %v10152_v24 = vadd.f32 %v9660_v36, %v9843_v12 }
 0x39d   : > { %12032 = vst [vmem:[#allocation38_spill] sm:$0xff] %v10158_v9  ;;  %v2932_v37 = vrot.slane %v2270_v39, %v9667_v43  ;;  %v10175_v15 = vadd.f32 %v9660_v36, %v9886_v34  ;;  %v2952_v34 = vrot.slane %v2270_v39, %v9685_v56  ;;  %v10190_v14 = vadd.f32 %v9660_v36, %v9894_v61 }
 0x39e   : > { %12031 = vst [vmem:[#allocation37_spill] sm:$0xff] %v10152_v24  ;;  %v2046_v12 = vmul.f32 %v9984_v63, %v1975_v30  ;;  %v2992_v30 = vrot.slane %v10162_v29, %v9663_v3  ;;  %v10207_v61 = vadd.f32 %v9660_v36, %v9906_v28 }
 0x3a5   : > { %2201 = vadd.xlane.f32.xlu1 %v2200_v1  ;;  %v5164_v1 = vcombine.low %v2864_v57, %v2868_v18  ;;  %v1871_v18 = vadd.f32 %v9968_v38, %v9745_v19  ;;  %v1906_v19 = vadd.f32 %v9968_v38, %v9791_v25  ;;  %v2728_v25 = vrot.slane %v2263_v5, %v9685_v56 }
 0x3a7   : > { %v5174_v16 = vrot.slane %v5164_v1, %v9705_v44  ;;  %v2720_v1 = vrot.slane %v2263_v5, %v9678_v51 }
 0x3a9   : > { %2207 = vadd.xlane.f32.xlu1 %v2206_v41  ;;  %v5181_v41 = vrot.slane %v5165_v53, %v9705_v44  ;;  %v2724_v53 = vrot.slane %v2263_v5, %v9681_v52 }
 0x3ab   : > { %v5196_v40 = vcombine.low %v5174_v16, %v5181_v41  ;;  %v1977_v16 = vmax.f32 %v1871_v18, 0.0  ;;  %v1984_v41 = vmax.f32 %v1906_v19, 0.0  ;;  %v2057_v18 = vmul.f32 %v9984_v63, %v1986_v42 }
 0x3ac   : > { %v2956_v19 = vrot.slane %v2270_v39, %v9688_v58 }
 0x3ad   : > { %v5204_v23 = vrot.slane %v5196_v40, %v9705_v44  ;;  %v2048_v33 = vmul.f32 %v9984_v63, %v1977_v16  ;;  %v10212_v16 = vsel %vm1346_vm2, %v2057_v18, 0.0 }
 0x3ae   : > { %2228 = vadd.xlane.f32.xlu0 %v2227_v48  ;;  %v10112_v48 = vsub.s32 %v7784_v17, %v9656_v31  ;;  %v4921_v17 = vcombine.low %v2720_v1, %v2724_v53 }
 0x3af   : > { %v5212_v32 = vcombine.low %v5204_v23, %v5211_v21  ;;  %v4922_v21 = vcombine.low %v2728_v25, %v2732_v50  ;;  %v2996_v25 = vrot.slane %v10162_v29, %v9667_v43  ;;  %v3000_v50 = vrot.slane %v10162_v29, %v9670_v46 }
 0x3b0   : > { %12029 = vst [vmem:[#allocation35_spill] sm:$0xff] %v10112_v48 }
 0x3b2   : > { %2234 = vadd.xlane.f32.xlu0 %v2233_v62  ;;  %v10115_v62 = vsub.s32 %v7791_v7, %v9656_v31  ;;  %v12033_v7 = vld [vmem:[#allocation12_spill] sm:$0xff] }
 0x3b3   : > { %v10166_v23 = vadd.f32 %v9660_v36, %v12033_v7  ;;  %v10220_v7 = vcombine.low %v2952_v34, %v2956_v19  ;;  %v3124_v34 = vrot.slane %v10175_v15, %v9667_v43  ;;  %v3128_v19 = vrot.slane %v10175_v15, %v9670_v46 }
 0x3b4   : > { %12030 = vst [vmem:[#allocation36_spill] sm:$0xff] %v10115_v62 }
 0x3b5   : > { %v3060_v18 = vrot.slane %v10166_v23, %v9667_v43  ;;  %v5293_v28 = vrot.slane %v10220_v7, %v9705_v44  ;;  %v3188_v7 = vrot.slane %v10190_v14, %v9667_v43 }
 0x3ba   : > { %7590 = vperm.xlu1 %8626, %v4869_v6   ;;  %v4920_v6 = vcombine.low %v2712_v13, %v2716_v4  ;;  %v4950_v13 = vrot.slane %v4922_v21, %v9705_v44  ;;  %v2948_v4 = vrot.slane %v2270_v39, %v9681_v52  ;;  %v3008_v21 = vrot.slane %v10162_v29, %v9678_v51 }
 0x3bc   : > { %v4936_v5 = vrot.slane %v4920_v6, %v9705_v44 }
 0x3c0   : > { %v10103_v26 = vpop.xlane.xlu1 %2189 }
 0x3c1   : > { %12028 = vst [vmem:[#allocation34_spill] sm:$0xff] %v10103_v26 }
 0x3c4   : > { %v7582_v22 = vpop.permute.xlu1 %7581 }
 0x3c5   : > { %v7795_v45 = vrot.slane %v7582_v22, %v10115_v62 }
 0x3c8   : > { %7611 = vperm.xlu0 %8627, %v5212_v32   ;;  %v7579_v57 = vpop.permute.xlu1 %7578  ;;  %v2928_v32 = vrot.slane %v2270_v39, %v9663_v3 }
 0x3c9   : > { %v7788_v55 = vrot.slane %v7579_v57, %v10112_v48  ;;  %v2055_v57 = vmul.f32 %v9984_v63, %v1984_v41 }
 0x3ca   : > { %v10195_v53 = vcombine.low %v2928_v32, %v2932_v37  ;;  %v3020_v32 = vrot.slane %v10162_v29, %v9688_v58  ;;  %v5360_v37 = vcombine.low %v2992_v30, %v2996_v25  ;;  %v3132_v30 = vrot.slane %v10175_v15, %v9673_v47 }
 0x3cb   : > { %v7790_v27 = vsel %vm7789_vm6, %v7788_v55, %v10055_v2  ;;  %v4919_v2 = vcombine.low %v2704_v0, %v2708_v11  ;;  %v4943_v55 = vrot.slane %v4921_v17, %v9705_v44  ;;  %v2936_v0 = vrot.slane %v2270_v39, %v9670_v46 }
 0x3cc   : > { %v10144_v8 = vsel %vm7796_vm7, %v7795_v45, %v7790_v27  ;;  %v2940_v45 = vrot.slane %v2270_v39, %v9673_v47  ;;  %v2944_v11 = vrot.slane %v2270_v39, %v9678_v51  ;;  %v2212_v27 = vsel %vm1346_vm2, %v2046_v12, 0.0 }
 0x3cd   : > { %v4929_v22 = vrot.slane %v4919_v2, %v9705_v44  ;;  %v3004_v39 = vrot.slane %v10162_v29, %v9673_v47  ;;  %v2218_v2 = vsel %vm1346_vm2, %v2048_v33, 0.0  ;;  %v2239_v6 = vsel %vm1346_vm2, %v2055_v57, 0.0 }
 0x3ce   : > { %v10214_v41 = vcombine.low %v4943_v55, %v4950_v13  ;;  %v10216_v42 = vcombine.low %v2936_v0, %v2940_v45  ;;  %v10218_v17 = vcombine.low %v2944_v11, %v2948_v4  ;;  %v3056_v57 = vrot.slane %v10166_v23, %v9663_v3 }
 0x3cf   : > { %v10193_v1 = vcombine.low %v4929_v22, %v4936_v5  ;;  %v3012_v22 = vrot.slane %v10162_v29, %v9681_v52  ;;  %v3016_v5 = vrot.slane %v10162_v29, %v9685_v56  ;;  %v5361_v33 = vcombine.low %v3000_v50, %v3004_v39 }
 0x3d0   : > { %v3064_v55 = vrot.slane %v10166_v23, %v9670_v46  ;;  %v3068_v0 = vrot.slane %v10166_v23, %v9673_v47  ;;  %v3072_v45 = vrot.slane %v10166_v23, %v9678_v51  ;;  %v3076_v29 = vrot.slane %v10166_v23, %v9681_v52 }
 0x3d1   : > { %v3080_v11 = vrot.slane %v10166_v23, %v9685_v56  ;;  %v3084_v13 = vrot.slane %v10166_v23, %v9688_v58  ;;  %v3120_v4 = vrot.slane %v10175_v15, %v9663_v3  ;;  %v3136_v25 = vrot.slane %v10175_v15, %v9678_v51 }
 0x3d2   : > { %v3140_v50 = vrot.slane %v10175_v15, %v9681_v52  ;;  %v3144_v23 = vrot.slane %v10175_v15, %v9685_v56  ;;  %v4966_v39 = vrot.slane %v10214_v41, %v9705_v44  ;;  %v5279_v40 = vrot.slane %v10216_v42, %v9705_v44 }
 0x3d3   : > { %v5286_v20 = vrot.slane %v10218_v17, %v9705_v44  ;;  %v5362_v12 = vcombine.low %v3008_v21, %v3012_v22  ;;  %v5363_v62 = vcombine.low %v3016_v5, %v3020_v32  ;;  %v5458_v48 = vcombine.low %v3056_v57, %v3060_v18 }
 0x3d4   : > { %v5459_v54 = vcombine.low %v3064_v55, %v3068_v0  ;;  %v5460_v59 = vcombine.low %v3072_v45, %v3076_v29  ;;  %v5461_v26 = vcombine.low %v3080_v11, %v3084_v13  ;;  %v5557_v9 = vcombine.low %v3128_v19, %v3132_v30 }
 0x3d5   : > { %v5370_v41 = vrot.slane %v5360_v37, %v9705_v44  ;;  %v5377_v60 = vrot.slane %v5361_v33, %v9705_v44  ;;  %v5558_v42 = vcombine.low %v3136_v25, %v3140_v50  ;;  %v3184_v17 = vrot.slane %v10190_v14, %v9663_v3 }
 0x3d6   : > { %v3192_v21 = vrot.slane %v10190_v14, %v9670_v46  ;;  %v5384_v22 = vrot.slane %v5362_v12, %v9705_v44  ;;  %v5391_v5 = vrot.slane %v5363_v62, %v9705_v44  ;;  %v5468_v32 = vrot.slane %v5458_v48, %v9705_v44 }
 0x3d7   : > { %v5475_v37 = vrot.slane %v5459_v54, %v9705_v44  ;;  %v5482_v33 = vrot.slane %v5460_v59, %v9705_v44  ;;  %v5489_v57 = vrot.slane %v5461_v26, %v9705_v44  ;;  %v5573_v55 = vrot.slane %v5557_v9, %v9705_v44  ;;  %v12034_v9 = vld [vmem:[#allocation17_spill] sm:$0xff] }
 0x3d8   : > { %v5580_v0 = vrot.slane %v5558_v42, %v9705_v44  ;;  %v3200_v62 = vrot.slane %v10190_v14, %v9678_v51  ;;  %v3204_v48 = vrot.slane %v10190_v14, %v9681_v52  ;;  %v3208_v59 = vrot.slane %v10190_v14, %v9685_v56 }
 0x3d9   : > { %v3212_v54 = vrot.slane %v10190_v14, %v9688_v58  ;;  %v5654_v26 = vcombine.low %v3184_v17, %v3188_v7  ;;  %v12036_v11 = vrot.slane %v10195_v53, %v9705_v44  ;;  %v5393_v19 = vcombine.low %v5384_v22, %v5391_v5 }
 0x3da   : > { %v5490_v30 = vcombine.low %v5468_v32, %v5475_v37  ;;  %v5491_v25 = vcombine.low %v5482_v33, %v5489_v57  ;;  %v3264_v53 = vrot.slane %v10207_v61, %v9678_v51  ;;  %v3272_v42 = vrot.slane %v10207_v61, %v9685_v56 }
 0x3db   : > { %v5294_v13 = vcombine.low %v12036_v11, %v5279_v40  ;;  %v3260_v40 = vrot.slane %v10207_v61, %v9673_v47  ;;  %v3276_v17 = vrot.slane %v10207_v61, %v9688_v58 }
 0x3dc   : > { %v5505_v22 = vrot.slane %v5491_v25, %v9705_v44 }
 0x3de   : > { %2213 = vadd.xlane.f32.xlu1 %v2212_v27  ;;  %v3148_v27 = vrot.slane %v10175_v15, %v9688_v58  ;;  %v5556_v15 = vcombine.low %v3120_v4, %v3124_v34  ;;  %v5295_v4 = vcombine.low %v5286_v20, %v5293_v28  ;;  %v5392_v34 = vcombine.low %v5370_v41, %v5377_v60 }
 0x3df   : > { %v3252_v20 = vrot.slane %v10207_v61, %v9667_v43  ;;  %v3256_v60 = vrot.slane %v10207_v61, %v9670_v46  ;;  %v5302_v28 = vrot.slane %v5294_v13, %v9705_v44 }
 0x3e0   : > { %v5559_v24 = vcombine.low %v3144_v23, %v3148_v27  ;;  %v5566_v18 = vrot.slane %v5556_v15, %v9705_v44  ;;  %v5656_v23 = vcombine.low %v3200_v62, %v3204_v48  ;;  %v3248_v27 = vrot.slane %v10207_v61, %v9663_v3  ;;  %v12038_v62 = vld [vmem:[#allocation19_spill] sm:$0xff] }
 0x3e1   : > { %v5657_v15 = vcombine.low %v3208_v59, %v3212_v54  ;;  %v5309_v41 = vrot.slane %v5295_v4, %v9705_v44  ;;  %v5400_v7 = vrot.slane %v5392_v34, %v9705_v44  ;;  %v2284_v48 = vadd.f32 %v9660_v36, %v12038_v62 }
 0x3e2   : > { %2219 = vadd.xlane.f32.xlu1 %v2218_v2  ;;  %v3196_v2 = vrot.slane %v10190_v14, %v9673_v47  ;;  %v5587_v45 = vrot.slane %v5559_v24, %v9705_v44  ;;  %v12035_v24 = vrot.slane %v10193_v1, %v9705_v44  ;;  %v5588_v14 = vcombine.low %v5566_v18, %v5573_v55 }
 0x3e3   : > { %v5664_v1 = vrot.slane %v5654_v26, %v9705_v44  ;;  %v5678_v37 = vrot.slane %v5656_v23, %v9705_v44  ;;  %v5685_v33 = vrot.slane %v5657_v15, %v9705_v44  ;;  %v5752_v18 = vcombine.low %v3248_v27, %v3252_v20  ;;  %v12039_v26 = vld [vmem:[#allocation21_spill] sm:$0xff] }
 0x3e4   : > { %v5655_v12 = vcombine.low %v3192_v21, %v3196_v2  ;;  %v4967_v29 = vcombine.low %v12035_v24, %v4966_v39  ;;  %v5589_v50 = vcombine.low %v5580_v0, %v5587_v45  ;;  %v5407_v21 = vrot.slane %v5393_v19, %v9705_v44  ;;  %v12037_v0 = vld [vmem:[#allocation7_spill] sm:$0xff] }
 0x3e5   : > { %v5498_v2 = vrot.slane %v5490_v30, %v9705_v44  ;;  %v5596_v5 = vrot.slane %v5588_v14, %v9705_v44  ;;  %v10345_v45 = vadd.f32 %v9968_v38, %v12037_v0  ;;  %v5310_v59 = vcombine.low %v5302_v28, %v5309_v41  ;;  %v12040_v38 = vld [vmem:[#allocation23_spill] sm:$0xff] }
 0x3e6   : > { %v5671_v39 = vrot.slane %v5655_v12, %v9705_v44  ;;  %v5603_v32 = vrot.slane %v5589_v50, %v9705_v44  ;;  %v5755_v54 = vcombine.low %v3272_v42, %v3276_v17  ;;  %v10351_v12 = vadd.f32 %v9660_v36, %v12039_v26 }
 0x3e7   : > { %2240 = vadd.xlane.f32.xlu0 %v2239_v6  ;;  %v10304_v6 = vadd.f32 %v9660_v36, %v12034_v9  ;;  %v10353_v9 = vcombine.low %v5400_v7, %v5407_v21  ;;  %v10361_v13 = vadd.f32 %v9660_v36, %v12040_v38  ;;  %v10363_v4 = vcombine.low %v5498_v2, %v5505_v22 }
 0x3e8   : > { %v10341_v57 = vcombine.low %v5664_v1, %v5671_v39  ;;  %v10365_v34 = vcombine.low %v5596_v5, %v5603_v32  ;;  %v10367_v19 = vcombine.low %v5678_v37, %v5685_v33  ;;  %v5762_v30 = vrot.slane %v5752_v18, %v9705_v44 }
 0x3e9   : > { %v3312_v24 = vrot.slane %v10304_v6, %v9663_v3  ;;  %v3316_v11 = vrot.slane %v10304_v6, %v9667_v43  ;;  %v5783_v50 = vrot.slane %v5755_v54, %v9705_v44  ;;  %v3320_v23 = vrot.slane %v10304_v6, %v9670_v46 }
 0x3ea   : > { %v3324_v27 = vrot.slane %v10304_v6, %v9673_v47  ;;  %v3328_v15 = vrot.slane %v10304_v6, %v9678_v51  ;;  %v3332_v1 = vrot.slane %v10304_v6, %v9681_v52  ;;  %v3336_v39 = vrot.slane %v10304_v6, %v9685_v56 }
 0x3eb   : > { %2246 = vadd.xlane.f32.xlu0 %v10212_v16  ;;  %v3268_v16 = vrot.slane %v10207_v61, %v9681_v52  ;;  %v5753_v61 = vcombine.low %v3256_v60, %v3260_v40  ;;  %v3340_v20 = vrot.slane %v10304_v6, %v9688_v58  ;;  %v5850_v60 = vcombine.low %v3312_v24, %v3316_v11 }
 0x3ec   : > { %v3376_v40 = vrot.slane %v2284_v48, %v9663_v3  ;;  %v3388_v28 = vrot.slane %v2284_v48, %v9673_v47  ;;  %v3392_v42 = vrot.slane %v2284_v48, %v9678_v51  ;;  %v3396_v17 = vrot.slane %v2284_v48, %v9681_v52 }
 0x3ed   : > { %v5754_v55 = vcombine.low %v3264_v53, %v3268_v16  ;;  %v5769_v25 = vrot.slane %v5753_v61, %v9705_v44  ;;  %v3380_v53 = vrot.slane %v2284_v48, %v9667_v43  ;;  %v3384_v16 = vrot.slane %v2284_v48, %v9670_v46 }
 0x3ee   : > { %v3400_v7 = vrot.slane %v2284_v48, %v9685_v56  ;;  %v3404_v21 = vrot.slane %v2284_v48, %v9688_v58  ;;  %v7798_v6 = vadd.s32 4294967248, %v9947_v49  ;;  %v5701_v2 = vrot.slane %v10367_v19, %v9705_v44 }
 0x3ef   : > { %v5776_v14 = vrot.slane %v5754_v55, %v9705_v44  ;;  %v10400_v22 = vcombine.low %v5762_v30, %v5769_v25  ;;  %v12042_v5 = vmax.f32 %v10129_v35, 0.0  ;;  %v7805_v37 = vadd.s32 4294967240, %v9947_v49 }
 0x3f0   : > { %v5851_v18 = vcombine.low %v3320_v23, %v3324_v27  ;;  %v5852_v61 = vcombine.low %v3328_v15, %v3332_v1  ;;  %v5853_v55 = vcombine.low %v3336_v39, %v3340_v20  ;;  %v5860_v0 = vrot.slane %v5850_v60, %v9705_v44 }
 0x3f1   : > { %v10405_v32 = vmul.f32 %v9984_v63, %v12042_v5  ;;  %v5785_v33 = vcombine.low %v5776_v14, %v5783_v50  ;;  %v5948_v62 = vcombine.low %v3376_v40, %v3380_v53  ;;  %v5949_v48 = vcombine.low %v3384_v16, %v3388_v28 }
 0x3f2   : > { %v5950_v26 = vcombine.low %v3392_v42, %v3396_v17  ;;  %v5951_v24 = vcombine.low %v3400_v7, %v3404_v21  ;;  %v3440_v11 = vrot.slane %v10351_v12, %v9663_v3  ;;  %v3444_v35 = vrot.slane %v10351_v12, %v9667_v43  ;;  %v12045_v7 = vld [vmem:[#allocation25_spill] sm:$0xff] }
 0x3f3   : > { %7596 = vperm.xlu1 %8626, %v4967_v29   ;;  %v5694_v29 = vrot.slane %v10341_v57, %v9705_v44  ;;  %v10414_v38 = vsub.s32 %v7798_v6, %v9656_v31  ;;  %v3448_v30 = vrot.slane %v10351_v12, %v9670_v46  ;;  %v3452_v25 = vrot.slane %v10351_v12, %v9673_v47 }
 0x3f4   : > { %v3456_v14 = vrot.slane %v10351_v12, %v9678_v51  ;;  %v10423_v50 = vsub.s32 %v7805_v37, %v9656_v31  ;;  %v3460_v23 = vrot.slane %v10351_v12, %v9681_v52  ;;  %v3464_v27 = vrot.slane %v10351_v12, %v9685_v56 }
 0x3f5   : > { %12043 = vst [vmem:[#allocation17_spill] sm:$0xff] %v10414_v38  ;;  %v3468_v15 = vrot.slane %v10351_v12, %v9688_v58  ;;  %v5867_v1 = vrot.slane %v5851_v18, %v9705_v44  ;;  %v5874_v39 = vrot.slane %v5852_v61, %v9705_v44  ;;  %v5881_v20 = vrot.slane %v5853_v55, %v9705_v44 }
 0x3f6   : > { %12044 = vst [vmem:[#allocation7_spill] sm:$0xff] %v10423_v50  ;;  %v5958_v60 = vrot.slane %v5948_v62, %v9705_v44  ;;  %v5965_v53 = vrot.slane %v5949_v48, %v9705_v44  ;;  %v5972_v16 = vrot.slane %v5950_v26, %v9705_v44  ;;  %v5979_v28 = vrot.slane %v5951_v24, %v9705_v44 }
 0x3f7   : > { %v6046_v12 = vcombine.low %v3440_v11, %v3444_v35  ;;  %v6047_v17 = vcombine.low %v3448_v30, %v3452_v25  ;;  %v10441_v21 = vadd.f32 %v9660_v36, %v12045_v7  ;;  %v6049_v5 = vcombine.low %v3464_v27, %v3468_v15 }
 0x3f8   : > { %v5792_v18 = vrot.slane %v10400_v22, %v9705_v44  ;;  %v5799_v61 = vrot.slane %v5785_v33, %v9705_v44  ;;  %v5882_v55 = vcombine.low %v5860_v0, %v5867_v1  ;;  %v5883_v62 = vcombine.low %v5874_v39, %v5881_v20 }
 0x3f9   : > { %v10391_v41 = vpop.xlane.xlu1 %2195  ;;  %v5980_v48 = vcombine.low %v5958_v60, %v5965_v53  ;;  %v5981_v26 = vcombine.low %v5972_v16, %v5979_v28  ;;  %v6063_v11 = vrot.slane %v6047_v17, %v9705_v44  ;;  %v3508_v22 = vrot.slane %v10361_v13, %v9667_v43  ;;  %v12047_v17 = vld [vmem:[#allocation27_spill] sm:$0xff] }
 0x3fa   : > { %12041 = vst [vmem:[#allocation12_spill] sm:$0xff] %v10391_v41  ;;  %v3512_v0 = vrot.slane %v10361_v13, %v9670_v46  ;;  %v3516_v35 = vrot.slane %v10361_v13, %v9673_v47  ;;  %v3520_v30 = vrot.slane %v10361_v13, %v9678_v51  ;;  %v3524_v25 = vrot.slane %v10361_v13, %v9681_v52 }
 0x3fb   : > { %v5702_v27 = vcombine.low %v5694_v29, %v5701_v2  ;;  %v5800_v15 = vcombine.low %v5792_v18, %v5799_v61  ;;  %v2224_v1 = vsel %vm1346_vm2, %v10405_v32, 0.0  ;;  %v12046_v39 = vmax.f32 %v10139_v10, 0.0 }
 0x3fc   : > { %v5890_v60 = vrot.slane %v5882_v55, %v9705_v44  ;;  %v5995_v19 = vrot.slane %v5981_v26, %v9705_v44  ;;  %v6145_v29 = vcombine.low %v3512_v0, %v3516_v35  ;;  %v6146_v2 = vcombine.low %v3520_v30, %v3524_v25 }
 0x3fd   : > { %v7588_v54 = vpop.permute.xlu1 %7587  ;;  %v2052_v20 = vmul.f32 %v9984_v63, %v12046_v39  ;;  %v3568_v32 = vrot.slane %v10441_v21, %v9663_v3  ;;  %v3572_v63 = vrot.slane %v10441_v21, %v9667_v43  ;;  %v3576_v10 = vrot.slane %v10441_v21, %v9670_v46 }
 0x3fe   : > { %v7809_v6 = vrot.slane %v7588_v54, %v10423_v50  ;;  %v6056_v54 = vrot.slane %v6046_v12, %v9705_v44  ;;  %v3580_v28 = vrot.slane %v10441_v21, %v9673_v47  ;;  %v3588_v12 = vrot.slane %v10441_v21, %v9681_v52 }
 0x3ff   : > { %v2292_v7 = vadd.f32 %v9660_v36, %v12047_v17 }
 0x401   : > { %7617 = vperm.xlu0 %8627, %v5310_v59   ;;  %v7585_v40 = vpop.permute.xlu1 %7584  ;;  %v6048_v59 = vcombine.low %v3456_v14, %v3460_v23  ;;  %v3528_v14 = vrot.slane %v10361_v13, %v9685_v56  ;;  %v3532_v23 = vrot.slane %v10361_v13, %v9688_v58  ;;  %v3636_v39 = vrot.slane %v2292_v7, %v9667_v43 }
 0x402   : > { %v7802_v42 = vrot.slane %v7585_v40, %v10414_v38  ;;  %v6078_v40 = vcombine.low %v6056_v54, %v6063_v11  ;;  %v6242_v54 = vcombine.low %v3568_v32, %v3572_v63  ;;  %v6243_v11 = vcombine.low %v3576_v10, %v3580_v28 }
 0x403   : > { %v6070_v33 = vrot.slane %v6048_v59, %v9705_v44  ;;  %v6147_v16 = vcombine.low %v3528_v14, %v3532_v23  ;;  %v3596_v59 = vrot.slane %v10441_v21, %v9688_v58 }
 0x404   : > { %v7804_v37 = vsel %vm7803_vm8, %v7802_v42, %v10144_v8  ;;  %v3504_v8 = vrot.slane %v10361_v13, %v9663_v3  ;;  %v5897_v13 = vrot.slane %v5883_v62, %v9705_v44  ;;  %v3584_v42 = vrot.slane %v10441_v21, %v9678_v51 }
 0x405   : > { %7623 = vperm.xlu0 %8627, %v10353_v9   ;;  %v10451_v24 = vsel %vm7810_vm9, %v7809_v6, %v7804_v37  ;;  %v6077_v9 = vrot.slane %v6049_v5, %v9705_v44  ;;  %v2230_v6 = vsel %vm1346_vm2, %v2052_v20, 0.0  ;;  %v6086_v18 = vrot.slane %v6078_v40, %v9705_v44 }
 0x406   : > { %v6144_v57 = vcombine.low %v3504_v8, %v3508_v22  ;;  %v5898_v5 = vcombine.low %v5890_v60, %v5897_v13  ;;  %v6161_v62 = vrot.slane %v6145_v29, %v9705_v44  ;;  %v6175_v26 = vrot.slane %v6147_v16, %v9705_v44 }
 0x407   : > { %v6079_v53 = vcombine.low %v6070_v33, %v6077_v9  ;;  %v6244_v8 = vcombine.low %v3584_v42, %v3588_v12  ;;  %v3640_v20 = vrot.slane %v2292_v7, %v9670_v46  ;;  %v3644_v60 = vrot.slane %v2292_v7, %v9673_v47 }
 0x408   : > { %v6154_v55 = vrot.slane %v6144_v57, %v9705_v44  ;;  %v3648_v13 = vrot.slane %v2292_v7, %v9678_v51  ;;  %v3660_v40 = vrot.slane %v2292_v7, %v9688_v58  ;;  %v6252_v32 = vrot.slane %v6242_v54, %v9705_v44 }
 0x409   : > { %7629 = vperm.xlu0 %8627, %v10363_v4   ;;  %v5988_v4 = vrot.slane %v5980_v48, %v9705_v44  ;;  %v6093_v61 = vrot.slane %v6079_v53, %v9705_v44  ;;  %v6168_v48 = vrot.slane %v6146_v2, %v9705_v44  ;;  %v12049_v53 = vld [vmem:[#allocation31_spill] sm:$0xff]  ;;  %v6259_v63 = vrot.slane %v6243_v11, %v9705_v44 }
 0x40a   : > { %v2294_v57 = vadd.f32 %v9660_v36, %v12049_v53  ;;  %v6176_v2 = vcombine.low %v6154_v55, %v6161_v62 }
 0x40b   : > { %v5996_v37 = vcombine.low %v5988_v4, %v5995_v19  ;;  %v3652_v4 = vrot.slane %v2292_v7, %v9681_v52  ;;  %v3656_v19 = vrot.slane %v2292_v7, %v9685_v56  ;;  %v6094_v29 = vcombine.low %v6086_v18, %v6093_v61 }
 0x40c   : > { %v6177_v16 = vcombine.low %v6168_v48, %v6175_v26  ;;  %v3696_v61 = vrot.slane %v2294_v57, %v9663_v3  ;;  %v3704_v55 = vrot.slane %v2294_v57, %v9670_v46  ;;  %v3708_v62 = vrot.slane %v2294_v57, %v9673_v47 }
 0x40d   : > { %7635 = vperm.xlu0 %8627, %v10365_v34   ;;  %v3592_v34 = vrot.slane %v10441_v21, %v9685_v56  ;;  %v12048_v21 = vld [vmem:[#allocation37_spill] sm:$0xff]  ;;  %v6343_v18 = vcombine.low %v3656_v19, %v3660_v40  ;;  %v3712_v48 = vrot.slane %v2294_v57, %v9678_v51  ;;  %v3716_v26 = vrot.slane %v2294_v57, %v9681_v52 }
 0x40e   : > { %v2768_v22 = vrot.slane %v12048_v21, %v9663_v3  ;;  %v2772_v9 = vrot.slane %v12048_v21, %v9667_v43  ;;  %v2776_v0 = vrot.slane %v12048_v21, %v9670_v46  ;;  %v2780_v35 = vrot.slane %v12048_v21, %v9673_v47 }
 0x40f   : > { %v6245_v33 = vcombine.low %v3592_v34, %v3596_v59  ;;  %v2784_v30 = vrot.slane %v12048_v21, %v9678_v51  ;;  %v2788_v25 = vrot.slane %v12048_v21, %v9681_v52  ;;  %v2792_v14 = vrot.slane %v12048_v21, %v9685_v56 }
 0x410   : > { %v2796_v23 = vrot.slane %v12048_v21, %v9688_v58  ;;  %v5017_v28 = vcombine.low %v2768_v22, %v2772_v9  ;;  %v5018_v42 = vcombine.low %v2776_v0, %v2780_v35  ;;  %v6341_v34 = vcombine.low %v3640_v20, %v3644_v60  ;;  %v12050_v60 = vld [vmem:[#allocation8_spill] sm:$0xff] }
 0x411   : > { %7641 = vperm.xlu0 %8627, %v5702_v27   ;;  %v3632_v27 = vrot.slane %v2292_v7, %v9663_v3  ;;  %v6273_v10 = vrot.slane %v6245_v33, %v9705_v44  ;;  %v5019_v12 = vcombine.low %v2784_v30, %v2788_v25  ;;  %v6342_v59 = vcombine.low %v3648_v13, %v3652_v4  ;;  %v12051_v4 = vld [vmem:[#allocation9_spill] sm:$0xff] }
 0x412   : > { %v5020_v17 = vcombine.low %v2792_v14, %v2796_v23  ;;  %v3720_v54 = vrot.slane %v2294_v57, %v9685_v56  ;;  %v5027_v11 = vrot.slane %v5017_v28, %v9705_v44  ;;  %v6184_v33 = vrot.slane %v6176_v2, %v9705_v44  ;;  %v12052_v2 = vld [vmem:[#allocation10_spill] sm:$0xff] }
 0x413   : > { %v6340_v7 = vcombine.low %v3632_v27, %v3636_v39  ;;  %v5041_v21 = vrot.slane %v5019_v12, %v9705_v44  ;;  %v6274_v9 = vcombine.low %v6252_v32, %v6259_v63  ;;  %v6357_v30 = vrot.slane %v6341_v34, %v9705_v44  ;;  %v10580_v12 = vpop.xlane.xlu0 %2180 }
 0x414   : > { %v5048_v22 = vrot.slane %v5020_v17, %v9705_v44  ;;  %v6364_v25 = vrot.slane %v6342_v59, %v9705_v44  ;;  %v6371_v14 = vrot.slane %v6343_v18, %v9705_v44  ;;  %v6439_v27 = vcombine.low %v3704_v55, %v3708_v62  ;;  %v12053_v55 = vld [vmem:[#allocation11_spill] sm:$0xff] }
 0x415   : > { %7647 = vperm.xlu0 %8627, %v5800_v15   ;;  %v6266_v15 = vrot.slane %v6244_v8, %v9705_v44  ;;  %v5034_v8 = vrot.slane %v5018_v42, %v9705_v44  ;;  %v6350_v35 = vrot.slane %v6340_v7, %v9705_v44  ;;  %v6440_v39 = vcombine.low %v3712_v48, %v3716_v26  ;;  %v12054_v48 = vld [vmem:[#allocation13_spill] sm:$0xff] }
 0x416   : > { %v5050_v53 = vcombine.low %v5041_v21, %v5048_v22  ;;  %v7819_v32 = vadd.s32 4294967224, %v9947_v49  ;;  %v6373_v42 = vcombine.low %v6364_v25, %v6371_v14  ;;  %v6455_v7 = vrot.slane %v6439_v27, %v9705_v44  ;;  %v12058_v22 = vld [vmem:[#allocation16_spill] sm:$0xff] }
 0x417   : > { %2225 = vadd.xlane.f32.xlu1 %v2224_v1  ;;  %v3700_v1 = vrot.slane %v2294_v57, %v9667_v43  ;;  %v6275_v0 = vcombine.low %v6266_v15, %v6273_v10  ;;  %v5049_v40 = vcombine.low %v5027_v11, %v5034_v8  ;;  %v6282_v15 = vrot.slane %v6274_v9, %v9705_v44  ;;  %v12057_v8 = vld [vmem:[#allocation15_spill] sm:$0xff]  ;;  %v12059_v9 = vld [vmem:[#allocation38_spill] sm:$0xff] }
 0x418   : > { %v6372_v28 = vcombine.low %v6350_v35, %v6357_v30  ;;  %v6462_v34 = vrot.slane %v6440_v39, %v9705_v44  ;;  %v10592_v62 = vadd.f32 %v9660_v36, %v12053_v55  ;;  %v10596_v26 = vadd.f32 %v9660_v36, %v12054_v48  ;;  %v10615_v35 = vpop.xlane.xlu0 %2186 }
 0x419   : > { %7653 = vperm.xlu0 %8627, %v5898_v5   ;;  %v3724_v5 = vrot.slane %v2294_v57, %v9688_v58  ;;  %v6438_v23 = vcombine.low %v3696_v61, %v3700_v1  ;;  %v1983_v57 = vmax.f32 %v10345_v45, 0.0  ;;  %v6289_v10 = vrot.slane %v6275_v0, %v9705_v44 }
 0x41a   : > { %v5057_v61 = vrot.slane %v5049_v40, %v9705_v44  ;;  %v5064_v1 = vrot.slane %v5050_v53, %v9705_v44  ;;  %v10603_v11 = vsub.s32 %v7819_v32, %v9656_v31  ;;  %v10607_v21 = vadd.f32 %v9660_v36, %v12057_v8 }
 0x41b   : > { %2231 = vadd.xlane.f32.xlu1 %v2230_v6  ;;  %v6191_v6 = vrot.slane %v6177_v16, %v9705_v44  ;;  %v6441_v20 = vcombine.low %v3720_v54, %v3724_v5  ;;  %v10575_v16 = vadd.f32 %v9660_v36, %v12052_v2  ;;  %v6448_v17 = vrot.slane %v6438_v23, %v9705_v44  ;;  %v12055_v54 = vld [vmem:[#allocation14_spill] sm:$0xff] }
 0x41c   : > { %v10600_v5 = vadd.f32 %v9660_v36, %v12055_v54  ;;  %12056 = vst [vmem:[#allocation19_spill] sm:$0xff] %v10603_v11  ;;  %v2832_v0 = vrot.slane %v12059_v9, %v9663_v3  ;;  %v6380_v30 = vrot.slane %v6372_v28, %v9705_v44  ;;  %v6387_v25 = vrot.slane %v6373_v42, %v9705_v44  ;;  %v10652_v55 = vpop.xlane.xlu0 %2192 }
 0x41d   : > { %7659 = vperm.xlu0 %8627, %v5996_v37   ;;  %v8630_v37 = vld [vmem:[%s11963_s5] ss:$0 sm:$0xff]  ;;  %v6192_v63 = vcombine.low %v6184_v33, %v6191_v6  ;;  %v6469_v59 = vrot.slane %v6441_v20, %v9705_v44  ;;  %v10611_v33 = vadd.f32 %v9660_v36, %v12058_v22  ;;  %v6290_v6 = vcombine.low %v6282_v15, %v6289_v10 }
 0x41e   : > { %v10567_v13 = vadd.f32 %v8630_v37, %v12050_v60  ;;  %v10570_v19 = vadd.f32 %v8630_v37, %v12051_v4  ;;  %v6470_v14 = vcombine.low %v6448_v17, %v6455_v7  ;;  %v5065_v27 = vcombine.low %v5057_v61, %v5064_v1  ;;  %v12060_v15 = vld [vmem:[#allocation18_spill] sm:$0xff]  ;;  %v12061_v7 = vld [vmem:[#allocation20_spill] sm:$0xff] }
 0x41f   : > { %v6471_v23 = vcombine.low %v6462_v34, %v6469_v59  ;;  %v2836_v39 = vrot.slane %v12059_v9, %v9667_v43  ;;  %v2840_v20 = vrot.slane %v12059_v9, %v9670_v46  ;;  %v2844_v37 = vrot.slane %v12059_v9, %v9673_v47 }
 0x420   : > { %v1985_v18 = vmax.f32 %v10567_v13, 0.0  ;;  %v2848_v60 = vrot.slane %v12059_v9, %v9678_v51  ;;  %v2852_v13 = vrot.slane %v12059_v9, %v9681_v52  ;;  %v2856_v4 = vrot.slane %v12059_v9, %v9685_v56 }
 0x421   : > { %7665 = vperm.xlu0 %8627, %v6094_v29   ;;  %v1987_v29 = vmax.f32 %v10570_v19, 0.0  ;;  %v2860_v40 = vrot.slane %v12059_v9, %v9688_v58  ;;  %v2896_v53 = vrot.slane %v10575_v16, %v9663_v3  ;;  %v2900_v2 = vrot.slane %v10575_v16, %v9667_v43 }
 0x422   : > { %v2904_v32 = vrot.slane %v10575_v16, %v9670_v46  ;;  %v10643_v10 = vadd.f32 %v9660_v36, %v12060_v15  ;;  %v6388_v28 = vcombine.low %v6380_v30, %v6387_v25  ;;  %v6478_v42 = vrot.slane %v6470_v14, %v9705_v44  ;;  %v12062_v25 = vld [vmem:[#allocation22_spill] sm:$0xff] }
 0x423   : > { %v6485_v17 = vrot.slane %v6471_v23, %v9705_v44  ;;  %v10649_v34 = vadd.f32 %v9660_v36, %v12061_v7  ;;  %v7833_v59 = vadd.s32 4294967208, %v9947_v49  ;;  %v5115_v61 = vcombine.low %v2832_v0, %v2836_v39  ;;  %v12063_v23 = vld [vmem:[#allocation24_spill] sm:$0xff]  ;;  %v12064_v39 = vld [vmem:[#allocation26_spill] sm:$0xff] }
 0x424   : > { %v5116_v1 = vcombine.low %v2840_v20, %v2844_v37  ;;  %v5117_v48 = vcombine.low %v2848_v60, %v2852_v13  ;;  %v5118_v54 = vcombine.low %v2856_v4, %v2860_v40  ;;  %v2912_v8 = vrot.slane %v10575_v16, %v9678_v51 }
 0x425   : > { %7671 = vperm.xlu0 %8627, %v6192_v63   ;;  %v2908_v63 = vrot.slane %v10575_v16, %v9673_v47  ;;  %v2916_v22 = vrot.slane %v10575_v16, %v9681_v52  ;;  %v2924_v9 = vrot.slane %v10575_v16, %v9688_v58  ;;  %v5213_v30 = vcombine.low %v2896_v53, %v2900_v2 }
 0x426   : > { %v10664_v14 = vadd.f32 %v9660_v36, %v12062_v25  ;;  %v10672_v20 = vadd.f32 %v9660_v36, %v12064_v39  ;;  %v6486_v37 = vcombine.low %v6478_v42, %v6485_v17  ;;  %v10675_v60 = vsub.s32 %v7833_v59, %v9656_v31 }
 0x427   : > { %v5214_v0 = vcombine.low %v2904_v32, %v2908_v63  ;;  %v5125_v40 = vrot.slane %v5115_v61, %v9705_v44  ;;  %v5132_v53 = vrot.slane %v5116_v1, %v9705_v44  ;;  %v5139_v2 = vrot.slane %v5117_v48, %v9705_v44 }
 0x428   : > { %12065 = vst [vmem:[#allocation21_spill] sm:$0xff] %v10675_v60  ;;  %v5146_v32 = vrot.slane %v5118_v54, %v9705_v44  ;;  %v5215_v63 = vcombine.low %v2912_v8, %v2916_v22  ;;  %v5223_v42 = vrot.slane %v5213_v30, %v9705_v44  ;;  %v2960_v45 = vrot.slane %v10592_v62, %v9663_v3  ;;  %v12067_v22 = vld [vmem:[#allocation28_spill] sm:$0xff] }
 0x429   : > { %7677 = vperm.xlu0 %8627, %v6290_v6   ;;  %v2920_v6 = vrot.slane %v10575_v16, %v9685_v56  ;;  %v8631_v16 = vld [vmem:[%s11964_s6] ss:$0 sm:$0xff]  ;;  %v5230_v17 = vrot.slane %v5214_v0, %v9705_v44  ;;  %v2964_v7 = vrot.slane %v10592_v62, %v9667_v43  ;;  %v2968_v59 = vrot.slane %v10592_v62, %v9670_v46 }
 0x42a   : > { %v2054_v13 = vmul.f32 %v8631_v16, %v1983_v57  ;;  %v2056_v4 = vmul.f32 %v8631_v16, %v1985_v18  ;;  %v10692_v57 = vpop.xlane.xlu0 %2198  ;;  %v7812_v18 = vadd.s32 4294967232, %v9947_v49  ;;  %v2972_v61 = vrot.slane %v10592_v62, %v9673_v47 }
 0x42b   : > { %v2976_v1 = vrot.slane %v10592_v62, %v9678_v51  ;;  %v2980_v48 = vrot.slane %v10592_v62, %v9681_v52  ;;  %v2984_v54 = vrot.slane %v10592_v62, %v9685_v56  ;;  %v2988_v8 = vrot.slane %v10592_v62, %v9688_v58 }
 0x42c   : > { %7602 = vperm.xlu1 %8626, %v5065_v27   ;;  %v10668_v27 = vadd.f32 %v9660_v36, %v12063_v23  ;;  %v10717_v30 = vsel %vm1346_vm2, %v2056_v4, 0.0  ;;  %v2058_v0 = vmul.f32 %v8631_v16, %v1987_v29  ;;  %v10721_v23 = vcombine.low %v5125_v40, %v5132_v53 }
 0x42d   : > { %7683 = vperm.xlu0 %8627, %v6388_v28   ;;  %v5216_v28 = vcombine.low %v2920_v6, %v2924_v9  ;;  %v10711_v6 = vadd.f32 %v9660_v36, %v12067_v22  ;;  %v10714_v9 = vsel %vm1346_vm2, %v2054_v13, 0.0  ;;  %v10723_v39 = vcombine.low %v5139_v2, %v5146_v32 }
 0x42e   : > { %v5237_v62 = vrot.slane %v5215_v63, %v9705_v44  ;;  %v10729_v13 = vsub.s32 %v7812_v18, %v9656_v31  ;;  %v10731_v50 = vcombine.low %v5223_v42, %v5230_v17  ;;  %v5311_v4 = vcombine.low %v2960_v45, %v2964_v7  ;;  %v7594_v40 = vpop.permute.xlu0 %7593 }
 0x42f   : > { %12068 = vst [vmem:[#allocation25_spill] sm:$0xff] %v10711_v6  ;;  %v5312_v19 = vcombine.low %v2968_v59, %v2972_v61  ;;  %v5313_v29 = vcombine.low %v2976_v1, %v2980_v48  ;;  %v5314_v16 = vcombine.low %v2984_v54, %v2988_v8  ;;  %v7823_v1 = vrot.slane %v7594_v40, %v10603_v11 }
 0x430   : > { %12069 = vst [vmem:[#allocation27_spill] sm:$0xff] %v10729_v13  ;;  %v5321_v41 = vrot.slane %v5311_v4, %v9705_v44  ;;  %v3024_v40 = vrot.slane %v10596_v26, %v9663_v3  ;;  %v3028_v4 = vrot.slane %v10596_v26, %v9667_v43 }
 0x431   : > { %7689 = vperm.xlu0 %8627, %v6486_v37   ;;  %v5244_v37 = vrot.slane %v5216_v28, %v9705_v44 }
 0x432   : > { %v10686_v15 = vpop.xlane.xlu1 %2201 }
 0x433   : > { %12066 = vst [vmem:[#allocation23_spill] sm:$0xff] %v10686_v15  ;;  %v5246_v8 = vcombine.low %v5237_v62, %v5244_v37  ;;  %v5328_v37 = vrot.slane %v5312_v19, %v9705_v44  ;;  %v10770_v19 = vsel %vm1346_vm2, %v2058_v0, 0.0 }
 0x434   : > { %12071 = vst [vmem:[#allocation31_spill] sm:$0xff] %v10770_v19 }
 0x436   : > { %v2208_v25 = vpop.xlane.xlu1 %2207 }
 0x437   : > { %v2302_v22 = vadd.f32 %v9660_v36, %v2208_v25 }
 0x439   : > { %v3952_v53 = vrot.slane %v2302_v22, %v9663_v3  ;;  %v3956_v2 = vrot.slane %v2302_v22, %v9667_v43  ;;  %v3960_v32 = vrot.slane %v2302_v22, %v9670_v46  ;;  %v3964_v63 = vrot.slane %v2302_v22, %v9673_v47 }
 0x43a   : > { %v7591_v28 = vpop.permute.xlu1 %7590  ;;  %v3968_v18 = vrot.slane %v2302_v22, %v9678_v51  ;;  %v3972_v42 = vrot.slane %v2302_v22, %v9681_v52  ;;  %v3976_v17 = vrot.slane %v2302_v22, %v9685_v56  ;;  %v3980_v45 = vrot.slane %v2302_v22, %v9688_v58 }
 0x43b   : > { %v7816_v7 = vrot.slane %v7591_v28, %v10729_v13  ;;  %v6830_v59 = vcombine.low %v3952_v53, %v3956_v2  ;;  %v6831_v61 = vcombine.low %v3960_v32, %v3964_v63  ;;  %v5342_v32 = vrot.slane %v5314_v16, %v9705_v44 }
 0x43c   : > { %v6832_v48 = vcombine.low %v3968_v18, %v3972_v42  ;;  %v6833_v54 = vcombine.low %v3976_v17, %v3980_v45  ;;  %v3032_v28 = vrot.slane %v10596_v26, %v9670_v46  ;;  %v3036_v18 = vrot.slane %v10596_v26, %v9673_v47 }
 0x43d   : > { %v7818_v25 = vsel %vm7817_vm10, %v7816_v7, %v10451_v24  ;;  %v6840_v38 = vrot.slane %v6830_v59, %v9705_v44  ;;  %v6847_v15 = vrot.slane %v6831_v61, %v9705_v44  ;;  %v5335_v24 = vrot.slane %v5313_v29, %v9705_v44 }
 0x43e   : > { %v6854_v22 = vrot.slane %v6832_v48, %v9705_v44  ;;  %v6861_v53 = vrot.slane %v6833_v54, %v9705_v44  ;;  %v10751_v2 = vsel %vm7824_vm11, %v7823_v1, %v7818_v25  ;;  %v5253_v16 = vrot.slane %v10731_v50, %v9705_v44 }
 0x43f   : > { %12070 = vst [vmem:[#allocation37_spill] sm:$0xff] %v10751_v2  ;;  %v6862_v62 = vcombine.low %v6840_v38, %v6847_v15  ;;  %v5155_v38 = vrot.slane %v10721_v23, %v9705_v44  ;;  %v5162_v15 = vrot.slane %v10723_v39, %v9705_v44  ;;  %v5260_v17 = vrot.slane %v5246_v8, %v9705_v44 }
 0x440   : > { %v6863_v63 = vcombine.low %v6854_v22, %v6861_v53  ;;  %v3040_v45 = vrot.slane %v10596_v26, %v9678_v51  ;;  %v5343_v7 = vcombine.low %v5321_v41, %v5328_v37  ;;  %v5344_v59 = vcombine.low %v5335_v24, %v5342_v32 }
 0x441   : > { %v6870_v42 = vrot.slane %v6862_v62, %v9705_v44  ;;  %v3044_v23 = vrot.slane %v10596_v26, %v9681_v52  ;;  %v3048_v39 = vrot.slane %v10596_v26, %v9685_v56  ;;  %v3052_v61 = vrot.slane %v10596_v26, %v9688_v58 }
 0x442   : > { %v6877_v29 = vrot.slane %v6863_v63, %v9705_v44  ;;  %v10784_v1 = vcombine.low %v3024_v40, %v3028_v4  ;;  %v10786_v50 = vcombine.low %v3032_v28, %v3036_v18  ;;  %v3088_v48 = vrot.slane %v10600_v5, %v9663_v3 }
 0x443   : > { %v3092_v41 = vrot.slane %v10600_v5, %v9667_v43  ;;  %v3096_v54 = vrot.slane %v10600_v5, %v9670_v46  ;;  %v3100_v8 = vrot.slane %v10600_v5, %v9673_v47  ;;  %v3104_v26 = vrot.slane %v10600_v5, %v9678_v51 }
 0x444   : > { %v6878_v0 = vcombine.low %v6870_v42, %v6877_v29  ;;  %v3108_v25 = vrot.slane %v10600_v5, %v9681_v52  ;;  %v3112_v22 = vrot.slane %v10600_v5, %v9685_v56  ;;  %v3116_v53 = vrot.slane %v10600_v5, %v9688_v58 }
 0x445   : > { %v3152_v40 = vrot.slane %v10607_v21, %v9663_v3  ;;  %v3156_v62 = vrot.slane %v10607_v21, %v9667_v43  ;;  %v3160_v37 = vrot.slane %v10607_v21, %v9670_v46  ;;  %v3164_v24 = vrot.slane %v10607_v21, %v9673_v47 }
 0x446   : > { %7713 = vperm.xlu0 %8627, %v6878_v0   ;;  %v5351_v32 = vrot.slane %v5343_v7, %v9705_v44  ;;  %v5411_v63 = vcombine.low %v3040_v45, %v3044_v23  ;;  %v3168_v4 = vrot.slane %v10607_v21, %v9678_v51  ;;  %v3172_v5 = vrot.slane %v10607_v21, %v9681_v52 }
 0x447   : > { %v5358_v28 = vrot.slane %v5344_v59, %v9705_v44  ;;  %v5412_v18 = vcombine.low %v3048_v39, %v3052_v61  ;;  %v3176_v42 = vrot.slane %v10607_v21, %v9685_v56  ;;  %v3180_v29 = vrot.slane %v10607_v21, %v9688_v58 }
 0x448   : > { %v5507_v0 = vcombine.low %v3088_v48, %v3092_v41  ;;  %v5508_v11 = vcombine.low %v3096_v54, %v3100_v8  ;;  %v5509_v13 = vcombine.low %v3104_v26, %v3108_v25  ;;  %v5510_v7 = vcombine.low %v3112_v22, %v3116_v53 }
 0x449   : > { %v10822_v45 = vcombine.low %v5155_v38, %v5162_v15  ;;  %v10824_v23 = vcombine.low %v5253_v16, %v5260_v17  ;;  %v5605_v19 = vcombine.low %v3152_v40, %v3156_v62  ;;  %v5606_v6 = vcombine.low %v3160_v37, %v3164_v24 }
 0x44a   : > { %v10828_v59 = vadd.f32 %v9660_v36, %v10580_v12  ;;  %v5419_v39 = vrot.slane %v10784_v1, %v9705_v44  ;;  %v5426_v21 = vrot.slane %v10786_v50, %v9705_v44  ;;  %v5607_v61 = vcombine.low %v3168_v4, %v3172_v5 }
 0x44b   : > { %12072 = vst [vmem:[#allocation8_spill] sm:$0xff] %v10824_v23  ;;  %v10834_v48 = vcombine.low %v5351_v32, %v5358_v28  ;;  %v5433_v38 = vrot.slane %v5411_v63, %v9705_v44  ;;  %v5440_v15 = vrot.slane %v5412_v18, %v9705_v44  ;;  %v5608_v16 = vcombine.low %v3176_v42, %v3180_v29 }
 0x44c   : > { %12073 = vst [vmem:[#allocation9_spill] sm:$0xff] %v10828_v59  ;;  %v5517_v17 = vrot.slane %v5507_v0, %v9705_v44  ;;  %v5524_v41 = vrot.slane %v5508_v11, %v9705_v44  ;;  %v5531_v12 = vrot.slane %v5509_v13, %v9705_v44  ;;  %v5538_v54 = vrot.slane %v5510_v7, %v9705_v44 }
 0x44d   : > { %12074 = vst [vmem:[#allocation10_spill] sm:$0xff] %v10834_v48  ;;  %v5615_v1 = vrot.slane %v5605_v19, %v9705_v44  ;;  %v5622_v50 = vrot.slane %v5606_v6, %v9705_v44  ;;  %v3216_v8 = vrot.slane %v10611_v33, %v9663_v3  ;;  %v3220_v26 = vrot.slane %v10611_v33, %v9667_v43 }
 0x44e   : > { %v5629_v25 = vrot.slane %v5607_v61, %v9705_v44  ;;  %v3224_v11 = vrot.slane %v10611_v33, %v9670_v46  ;;  %v3228_v13 = vrot.slane %v10611_v33, %v9673_v47  ;;  %v3232_v19 = vrot.slane %v10611_v33, %v9678_v51 }
 0x44f   : > { %v5636_v6 = vrot.slane %v5608_v16, %v9705_v44  ;;  %v3236_v22 = vrot.slane %v10611_v33, %v9681_v52  ;;  %v3240_v53 = vrot.slane %v10611_v33, %v9685_v56  ;;  %v3280_v40 = vrot.slane %v10643_v10, %v9663_v3 }
 0x450   : > { %2237 = vadd.xlane.f32.xlu1 %v10714_v9  ;;  %v3244_v9 = vrot.slane %v10611_v33, %v9688_v58  ;;  %v3284_v62 = vrot.slane %v10643_v10, %v9667_v43  ;;  %v3288_v37 = vrot.slane %v10643_v10, %v9670_v46  ;;  %v3292_v24 = vrot.slane %v10643_v10, %v9673_v47 }
 0x451   : > { %v3296_v32 = vrot.slane %v10643_v10, %v9678_v51  ;;  %v3300_v63 = vrot.slane %v10643_v10, %v9681_v52  ;;  %v3304_v33 = vrot.slane %v10643_v10, %v9685_v56  ;;  %v3308_v4 = vrot.slane %v10643_v10, %v9688_v58 }
 0x452   : > { %v5441_v5 = vcombine.low %v5419_v39, %v5426_v21  ;;  %v5442_v28 = vcombine.low %v5433_v38, %v5440_v15  ;;  %v5539_v18 = vcombine.low %v5517_v17, %v5524_v41  ;;  %v5540_v42 = vcombine.low %v5531_v12, %v5538_v54 }
 0x453   : > { %v5637_v29 = vcombine.low %v5615_v1, %v5622_v50  ;;  %v5638_v0 = vcombine.low %v5629_v25, %v5636_v6  ;;  %v5703_v7 = vcombine.low %v3216_v8, %v3220_v26  ;;  %v5704_v61 = vcombine.low %v3224_v11, %v3228_v13 }
 0x454   : > { %2243 = vadd.xlane.f32.xlu1 %v10717_v30  ;;  %v5705_v16 = vcombine.low %v3232_v19, %v3236_v22  ;;  %v5706_v48 = vcombine.low %v3240_v53, %v3244_v9  ;;  %v5801_v23 = vcombine.low %v3280_v40, %v3284_v62  ;;  %v5802_v59 = vcombine.low %v3288_v37, %v3292_v24 }
 0x455   : > { %v10882_v2 = vadd.f32 %v9660_v36, %v10615_v35  ;;  %v7847_v10 = vadd.s32 4294967192, %v9947_v49  ;;  %v5803_v60 = vcombine.low %v3296_v32, %v3300_v63  ;;  %v5804_v30 = vcombine.low %v3304_v33, %v3308_v4 }
 0x456   : > { %v5449_v39 = vrot.slane %v5441_v5, %v9705_v44  ;;  %v5456_v21 = vrot.slane %v5442_v28, %v9705_v44  ;;  %v5547_v38 = vrot.slane %v5539_v18, %v9705_v44  ;;  %v5554_v15 = vrot.slane %v5540_v42, %v9705_v44 }
 0x457   : > { %v5645_v17 = vrot.slane %v5637_v29, %v9705_v44  ;;  %v5652_v41 = vrot.slane %v5638_v0, %v9705_v44  ;;  %v5713_v12 = vrot.slane %v5703_v7, %v9705_v44  ;;  %v5720_v35 = vrot.slane %v5704_v61, %v9705_v44 }
 0x458   : > { %v5727_v54 = vrot.slane %v5705_v16, %v9705_v44  ;;  %v5734_v1 = vrot.slane %v5706_v48, %v9705_v44  ;;  %v5811_v50 = vrot.slane %v5801_v23, %v9705_v44  ;;  %v5818_v8 = vrot.slane %v5802_v59, %v9705_v44 }
 0x459   : > { %v10899_v26 = vadd.f32 %v9660_v36, %v10652_v55  ;;  %v10902_v25 = vsub.s32 %v7847_v10, %v9656_v31  ;;  %v5825_v11 = vrot.slane %v5803_v60, %v9705_v44  ;;  %v5832_v13 = vrot.slane %v5804_v30, %v9705_v44 }
 0x45a   : > { %v3344_v19 = vrot.slane %v10649_v34, %v9663_v3  ;;  %v3348_v48 = vrot.slane %v10649_v34, %v9667_v43  ;;  %v3352_v23 = vrot.slane %v10649_v34, %v9670_v46  ;;  %v3356_v55 = vrot.slane %v10649_v34, %v9673_v47 }
 0x45b   : > { %12075 = vst [vmem:[#allocation11_spill] sm:$0xff] %v10902_v25  ;;  %v10916_v59 = vadd.f32 %v9660_v36, %v10692_v57  ;;  %v10918_v6 = vcombine.low %v5449_v39, %v5456_v21  ;;  %v10920_v60 = vcombine.low %v5547_v38, %v5554_v15  ;;  %v10922_v22 = vcombine.low %v5645_v17, %v5652_v41 }
 0x45c   : > { %v10924_v53 = vcombine.low %v5713_v12, %v5720_v35  ;;  %v10926_v9 = vcombine.low %v5727_v54, %v5734_v1  ;;  %v10928_v40 = vcombine.low %v5811_v50, %v5818_v8  ;;  %v3360_v62 = vrot.slane %v10649_v34, %v9678_v51 }
 0x45d   : > { %12076 = vst [vmem:[#allocation13_spill] sm:$0xff] %v10916_v59  ;;  %12077 = vst [vmem:[#allocation14_spill] sm:$0xff] %v10920_v60  ;;  %v10932_v37 = vcombine.low %v5825_v11, %v5832_v13  ;;  %v3364_v57 = vrot.slane %v10649_v34, %v9681_v52  ;;  %v3368_v24 = vrot.slane %v10649_v34, %v9685_v56  ;;  %v12081_v59 = vld [vmem:[#allocation37_spill] sm:$0xff] }
 0x45e   : > { %12078 = vst [vmem:[#allocation15_spill] sm:$0xff] %v10922_v22  ;;  %v3372_v32 = vrot.slane %v10649_v34, %v9688_v58  ;;  %v5899_v63 = vcombine.low %v3344_v19, %v3348_v48  ;;  %v5900_v33 = vcombine.low %v3352_v23, %v3356_v55  ;;  %v3408_v4 = vrot.slane %v10664_v14, %v9663_v3  ;;  %v10999_v48 = vpop.xlane.xlu0 %2204 }
 0x45f   : > { %v3412_v5 = vrot.slane %v10664_v14, %v9667_v43  ;;  %v3416_v28 = vrot.slane %v10664_v14, %v9670_v46  ;;  %v3420_v18 = vrot.slane %v10664_v14, %v9673_v47  ;;  %v3424_v42 = vrot.slane %v10664_v14, %v9678_v51 }
 0x460   : > { %v3428_v34 = vrot.slane %v10664_v14, %v9681_v52  ;;  %v3432_v29 = vrot.slane %v10664_v14, %v9685_v56  ;;  %v3436_v0 = vrot.slane %v10664_v14, %v9688_v58  ;;  %v3472_v7 = vrot.slane %v10668_v27, %v9663_v3 }
 0x461   : > { %v3476_v61 = vrot.slane %v10668_v27, %v9667_v43  ;;  %v3480_v16 = vrot.slane %v10668_v27, %v9670_v46  ;;  %v3484_v10 = vrot.slane %v10668_v27, %v9673_v47  ;;  %v3488_v30 = vrot.slane %v10668_v27, %v9678_v51 }
 0x462   : > { %v3492_v39 = vrot.slane %v10668_v27, %v9681_v52  ;;  %v10968_v21 = vcombine.low %v3360_v62, %v3364_v57  ;;  %v10970_v14 = vcombine.low %v3368_v24, %v3372_v32  ;;  %v5909_v38 = vrot.slane %v5899_v63, %v9705_v44 }
 0x463   : > { %v5916_v15 = vrot.slane %v5900_v33, %v9705_v44  ;;  %v10981_v35 = vcombine.low %v3408_v4, %v3412_v5  ;;  %v10983_v54 = vcombine.low %v3416_v28, %v3420_v18  ;;  %v10985_v1 = vcombine.low %v3424_v42, %v3428_v34 }
 0x464   : > { %v10987_v50 = vcombine.low %v3432_v29, %v3436_v0  ;;  %v3500_v8 = vrot.slane %v10668_v27, %v9688_v58  ;;  %v10993_v11 = vcombine.low %v3472_v7, %v3476_v61  ;;  %v10995_v13 = vcombine.low %v3480_v16, %v3484_v10 }
 0x465   : > { %7608 = vperm.xlu1 %8626, %v10822_v45   ;;  %v3496_v45 = vrot.slane %v10668_v27, %v9685_v56  ;;  %v10997_v19 = vcombine.low %v3488_v30, %v3492_v39  ;;  %v11007_v57 = vcombine.low %v5909_v38, %v5916_v15  ;;  %v3536_v27 = vrot.slane %v10672_v20, %v9663_v3 }
 0x466   : > { %v3540_v24 = vrot.slane %v10672_v20, %v9667_v43  ;;  %v3544_v32 = vrot.slane %v10672_v20, %v9670_v46  ;;  %v3548_v63 = vrot.slane %v10672_v20, %v9673_v47  ;;  %v7826_v61 = vadd.s32 4294967216, %v9947_v49 }
 0x467   : > { %v11025_v42 = vcombine.low %v3496_v45, %v3500_v8  ;;  %v3552_v16 = vrot.slane %v10672_v20, %v9678_v51  ;;  %v3556_v10 = vrot.slane %v10672_v20, %v9681_v52  ;;  %v3560_v30 = vrot.slane %v10672_v20, %v9685_v56  ;;  %v11047_v45 = vpop.xlane.xlu0 %2210 }
 0x468   : > { %v3564_v39 = vrot.slane %v10672_v20, %v9688_v58  ;;  %v11043_v38 = vcombine.low %v3536_v27, %v3540_v24  ;;  %v11045_v15 = vcombine.low %v3544_v32, %v3548_v63  ;;  %v11059_v32 = vsub.s32 %v7826_v61, %v9656_v31 }
 0x46a   : > { %12079 = vst [vmem:[#allocation16_spill] sm:$0xff] %v11059_v32 }
 0x46b   : > { %v2214_v18 = vpop.xlane.xlu1 %2213  ;;  %v7600_v28 = vpop.permute.xlu0 %7599 }
 0x46c   : > { %v2304_v7 = vadd.f32 %v9660_v36, %v2214_v18 }
 0x46e   : > { %v4016_v8 = vrot.slane %v2304_v7, %v9663_v3  ;;  %v4020_v18 = vrot.slane %v2304_v7, %v9667_v43  ;;  %v4024_v12 = vrot.slane %v2304_v7, %v9670_v46  ;;  %v4028_v23 = vrot.slane %v2304_v7, %v9673_v47 }
 0x46f   : > { %v2220_v17 = vpop.xlane.xlu1 %2219  ;;  %v4032_v41 = vrot.slane %v2304_v7, %v9678_v51  ;;  %v4036_v0 = vrot.slane %v2304_v7, %v9681_v52  ;;  %v4040_v20 = vrot.slane %v2304_v7, %v9685_v56  ;;  %v4044_v27 = vrot.slane %v2304_v7, %v9688_v58 }
 0x470   : > { %v2306_v24 = vadd.f32 %v9660_v36, %v2220_v17  ;;  %v6928_v63 = vcombine.low %v4016_v8, %v4020_v18  ;;  %v6929_v34 = vcombine.low %v4024_v12, %v4028_v23  ;;  %v12080_v18 = vld [vmem:[#allocation21_spill] sm:$0xff] }
 0x471   : > { %v6930_v29 = vcombine.low %v4032_v41, %v4036_v0  ;;  %v6931_v5 = vcombine.low %v4040_v20, %v4044_v27  ;;  %v7837_v20 = vrot.slane %v7600_v28, %v12080_v18 }
 0x472   : > { %v6938_v33 = vrot.slane %v6928_v63, %v9705_v44  ;;  %v6945_v4 = vrot.slane %v6929_v34, %v9705_v44  ;;  %v4080_v55 = vrot.slane %v2306_v24, %v9663_v3  ;;  %v4084_v7 = vrot.slane %v2306_v24, %v9667_v43 }
 0x473   : > { %v7597_v62 = vpop.permute.xlu1 %7596  ;;  %v6952_v17 = vrot.slane %v6930_v29, %v9705_v44  ;;  %v6959_v61 = vrot.slane %v6931_v5, %v9705_v44  ;;  %v4088_v12 = vrot.slane %v2306_v24, %v9670_v46  ;;  %v4092_v41 = vrot.slane %v2306_v24, %v9673_v47 }
 0x474   : > { %v7830_v23 = vrot.slane %v7597_v62, %v11059_v32  ;;  %v6960_v0 = vcombine.low %v6938_v33, %v6945_v4  ;;  %v4096_v8 = vrot.slane %v2306_v24, %v9678_v51  ;;  %v4100_v34 = vrot.slane %v2306_v24, %v9681_v52 }
 0x475   : > { %v6961_v27 = vcombine.low %v6952_v17, %v6959_v61  ;;  %v4104_v63 = vrot.slane %v2306_v24, %v9685_v56  ;;  %v4108_v29 = vrot.slane %v2306_v24, %v9688_v58  ;;  %v7026_v25 = vcombine.low %v4080_v55, %v4084_v7  ;;  %v12082_v55 = vld [vmem:[#allocation25_spill] sm:$0xff] }
 0x476   : > { %v7832_v5 = vsel %vm7831_vm12, %v7830_v23, %v12081_v59  ;;  %v6968_v22 = vrot.slane %v6960_v0, %v9705_v44  ;;  %v7027_v60 = vcombine.low %v4088_v12, %v4092_v41  ;;  %v7028_v33 = vcombine.low %v4096_v8, %v4100_v34 }
 0x477   : > { %v6975_v62 = vrot.slane %v6961_v27, %v9705_v44  ;;  %v7029_v4 = vcombine.low %v4104_v63, %v4108_v29  ;;  %v11080_v32 = vsel %vm7838_vm13, %v7837_v20, %v7832_v5  ;;  %v7036_v28 = vrot.slane %v7026_v25, %v9705_v44 }
 0x478   : > { %v7043_v17 = vrot.slane %v7027_v60, %v9705_v44  ;;  %v6195_v61 = vcombine.low %v3552_v16, %v3556_v10  ;;  %v6196_v24 = vcombine.low %v3560_v30, %v3564_v39  ;;  %v7050_v59 = vrot.slane %v7028_v33, %v9705_v44 }
 0x479   : > { %v6976_v18 = vcombine.low %v6968_v22, %v6975_v62  ;;  %v7057_v23 = vrot.slane %v7029_v4, %v9705_v44  ;;  %v3600_v7 = vrot.slane %v12082_v55, %v9663_v3  ;;  %v3604_v41 = vrot.slane %v12082_v55, %v9667_v43  ;;  %v12085_v62 = vld [vmem:[#allocation9_spill] sm:$0xff] }
 0x47a   : > { %v7058_v12 = vcombine.low %v7036_v28, %v7043_v17  ;;  %v3608_v0 = vrot.slane %v12082_v55, %v9670_v46  ;;  %v3612_v25 = vrot.slane %v12082_v55, %v9673_v47  ;;  %v6126_v22 = vrot.slane %v11025_v42, %v9705_v44 }
 0x47b   : > { %7719 = vperm.xlu0 %8627, %v6976_v18   ;;  %v7059_v60 = vcombine.low %v7050_v59, %v7057_v23  ;;  %v6203_v16 = vrot.slane %v11043_v38, %v9705_v44  ;;  %v6210_v10 = vrot.slane %v11045_v15, %v9705_v44  ;;  %v6217_v39 = vrot.slane %v6195_v61, %v9705_v44 }
 0x47c   : > { %v7066_v30 = vrot.slane %v7058_v12, %v9705_v44  ;;  %v6224_v8 = vrot.slane %v6196_v24, %v9705_v44  ;;  %v3616_v34 = vrot.slane %v12082_v55, %v9678_v51  ;;  %v3620_v42 = vrot.slane %v12082_v55, %v9681_v52 }
 0x47d   : > { %v7073_v18 = vrot.slane %v7059_v60, %v9705_v44  ;;  %v3624_v38 = vrot.slane %v12082_v55, %v9685_v56  ;;  %v3628_v15 = vrot.slane %v12082_v55, %v9688_v58  ;;  %v12083_v20 = vrot.slane %v10970_v14, %v9705_v44 }
 0x47e   : > { %v12084_v27 = vrot.slane %v10968_v21, %v9705_v44  ;;  %v6291_v29 = vcombine.low %v3600_v7, %v3604_v41  ;;  %v6292_v5 = vcombine.low %v3608_v0, %v3612_v25  ;;  %v3664_v33 = vrot.slane %v12085_v62, %v9663_v3 }
 0x47f   : > { %v7074_v4 = vcombine.low %v7066_v30, %v7073_v18  ;;  %v3668_v28 = vrot.slane %v12085_v62, %v9667_v43  ;;  %v3672_v17 = vrot.slane %v12085_v62, %v9670_v46  ;;  %v3676_v61 = vrot.slane %v12085_v62, %v9673_v47 }
 0x480   : > { %v5932_v63 = vcombine.low %v12084_v27, %v12083_v20  ;;  %v12086_v14 = vrot.slane %v10983_v54, %v9705_v44  ;;  %v12087_v21 = vrot.slane %v10981_v35, %v9705_v44  ;;  %v12088_v59 = vrot.slane %v10987_v50, %v9705_v44 }
 0x481   : > { %v12089_v23 = vrot.slane %v10985_v1, %v9705_v44  ;;  %v12090_v7 = vrot.slane %v10995_v13, %v9705_v44  ;;  %v12091_v12 = vrot.slane %v10993_v11, %v9705_v44  ;;  %v12092_v54 = vrot.slane %v10997_v19, %v9705_v44  ;;  %7725 = vperm.xlu0 %8627, %v7074_v4  }
 0x482   : > { %v6029_v24 = vcombine.low %v12087_v21, %v12086_v14  ;;  %v6225_v35 = vcombine.low %v6203_v16, %v6210_v10  ;;  %v6226_v25 = vcombine.low %v6217_v39, %v6224_v8  ;;  %v6293_v60 = vcombine.low %v3616_v34, %v3620_v42  ;;  %v12093_v10 = vld [vmem:[#allocation34_spill] sm:$0xff] }
 0x483   : > { %v6030_v55 = vcombine.low %v12089_v23, %v12088_v59  ;;  %v6127_v41 = vcombine.low %v12091_v12, %v12090_v7  ;;  %v6128_v0 = vcombine.low %v12092_v54, %v6126_v22  ;;  %v6294_v50 = vcombine.low %v3624_v38, %v3628_v15 }
 0x484   : > { %v6301_v30 = vrot.slane %v6291_v29, %v9705_v44  ;;  %v6308_v1 = vrot.slane %v6292_v5, %v9705_v44  ;;  %v3680_v13 = vrot.slane %v12085_v62, %v9678_v51  ;;  %v3684_v11 = vrot.slane %v12085_v62, %v9681_v52 }
 0x485   : > { %v3688_v18 = vrot.slane %v12085_v62, %v9685_v56  ;;  %v3692_v19 = vrot.slane %v12085_v62, %v9688_v58  ;;  %v6389_v22 = vcombine.low %v3664_v33, %v3668_v28  ;;  %v6390_v16 = vcombine.low %v3672_v17, %v3676_v61 }
 0x486   : > { %v2296_v39 = vadd.f32 %v9660_v36, %v12093_v10  ;;  %v5939_v8 = vrot.slane %v11007_v57, %v9705_v44  ;;  %v5946_v34 = vrot.slane %v5932_v63, %v9705_v44  ;;  %v6037_v42 = vrot.slane %v6029_v24, %v9705_v44  ;;  %v12094_v24 = vld [vmem:[#allocation31_spill] sm:$0xff] }
 0x487   : > { %v6044_v38 = vrot.slane %v6030_v55, %v9705_v44  ;;  %v6135_v15 = vrot.slane %v6127_v41, %v9705_v44  ;;  %v6142_v20 = vrot.slane %v6128_v0, %v9705_v44  ;;  %v6233_v27 = vrot.slane %v6225_v35, %v9705_v44 }
 0x488   : > { %v6240_v29 = vrot.slane %v6226_v25, %v9705_v44  ;;  %v6315_v5 = vrot.slane %v6293_v60, %v9705_v44  ;;  %v6322_v62 = vrot.slane %v6294_v50, %v9705_v44  ;;  %v11170_v33 = vcombine.low %v6301_v30, %v6308_v1 }
 0x489   : > { %v6391_v57 = vcombine.low %v3680_v13, %v3684_v11  ;;  %v6392_v63 = vcombine.low %v3688_v18, %v3692_v19  ;;  %v6399_v4 = vrot.slane %v6389_v22, %v9705_v44  ;;  %v6406_v28 = vrot.slane %v6390_v16, %v9705_v44  ;;  %2249 = vadd.xlane.f32.xlu1 %v12094_v24 }
 0x48a   : > { %v3760_v17 = vrot.slane %v2296_v39, %v9663_v3  ;;  %v3764_v61 = vrot.slane %v2296_v39, %v9667_v43  ;;  %v3768_v14 = vrot.slane %v2296_v39, %v9670_v46  ;;  %v3772_v21 = vrot.slane %v2296_v39, %v9673_v47 }
 0x48b   : > { %v3776_v59 = vrot.slane %v2296_v39, %v9678_v51  ;;  %v3780_v23 = vrot.slane %v2296_v39, %v9681_v52  ;;  %v3784_v55 = vrot.slane %v2296_v39, %v9685_v56  ;;  %v3788_v7 = vrot.slane %v2296_v39, %v9688_v58 }
 0x48c   : > { %v12095_v12 = vrot.slane %v10926_v9, %v9705_v44  ;;  %v12096_v41 = vrot.slane %v10924_v53, %v9705_v44  ;;  %v12097_v0 = vrot.slane %v10932_v37, %v9705_v44  ;;  %v12098_v35 = vrot.slane %v10928_v40, %v9705_v44 }
 0x48d   : > { %v11199_v60 = vcombine.low %v5939_v8, %v5946_v34  ;;  %v11201_v50 = vcombine.low %v6037_v42, %v6044_v38  ;;  %v7861_v30 = vadd.s32 4294967176, %v9947_v49  ;;  %v11204_v9 = vcombine.low %v6315_v5, %v6322_v62 }
 0x48e   : > { %v11189_v54 = vcombine.low %v12096_v41, %v12095_v12  ;;  %v11197_v25 = vcombine.low %v12098_v35, %v12097_v0  ;;  %v6413_v53 = vrot.slane %v6391_v57, %v9705_v44  ;;  %v6420_v1 = vrot.slane %v6392_v63, %v9705_v44 }
 0x48f   : > { %v11208_v13 = vcombine.low %v6135_v15, %v6142_v20  ;;  %v6421_v37 = vcombine.low %v6399_v4, %v6406_v28  ;;  %v6536_v11 = vcombine.low %v3760_v17, %v3764_v61  ;;  %v6537_v18 = vcombine.low %v3768_v14, %v3772_v21 }
 0x490   : > { %v11210_v40 = vcombine.low %v6233_v27, %v6240_v29  ;;  %v6331_v19 = vrot.slane %v11170_v33, %v9705_v44  ;;  %v6538_v22 = vcombine.low %v3776_v59, %v3780_v23  ;;  %v6539_v16 = vcombine.low %v3784_v55, %v3788_v7 }
 0x491   : > { %v3728_v10 = vrot.slane %v10882_v2, %v9663_v3  ;;  %v3732_v39 = vrot.slane %v10882_v2, %v9667_v43  ;;  %v3736_v8 = vrot.slane %v10882_v2, %v9670_v46  ;;  %v3740_v34 = vrot.slane %v10882_v2, %v9673_v47 }
 0x492   : > { %v2301_v42 = vadd.f32 %v9660_v36, %v10999_v48  ;;  %v11225_v38 = vsub.s32 %v7861_v30, %v9656_v31  ;;  %v6338_v15 = vrot.slane %v11204_v9, %v9705_v44  ;;  %v6422_v20 = vcombine.low %v6413_v53, %v6420_v1 }
 0x493   : > { %v2303_v27 = vadd.f32 %v9660_v36, %v11047_v45  ;;  %v6429_v29 = vrot.slane %v6421_v37, %v9705_v44  ;;  %v6546_v5 = vrot.slane %v6536_v11, %v9705_v44  ;;  %v6553_v62 = vrot.slane %v6537_v18, %v9705_v44 }
 0x494   : > { %v3744_v33 = vrot.slane %v10882_v2, %v9678_v51  ;;  %v3748_v48 = vrot.slane %v10882_v2, %v9681_v52  ;;  %v3752_v57 = vrot.slane %v10882_v2, %v9685_v56  ;;  %v3756_v63 = vrot.slane %v10882_v2, %v9688_v58 }
 0x495   : > { %v6560_v45 = vrot.slane %v6538_v22, %v9705_v44  ;;  %v6567_v4 = vrot.slane %v6539_v16, %v9705_v44  ;;  %v6487_v28 = vcombine.low %v3728_v10, %v3732_v39  ;;  %v6488_v17 = vcombine.low %v3736_v8, %v3740_v34  ;;  %v12099_v22 = vld [vmem:[#allocation12_spill] sm:$0xff] }
 0x496   : > { %v3920_v61 = vrot.slane %v2301_v42, %v9663_v3  ;;  %v3924_v14 = vrot.slane %v2301_v42, %v9667_v43  ;;  %v3928_v21 = vrot.slane %v2301_v42, %v9670_v46  ;;  %v3932_v24 = vrot.slane %v2301_v42, %v9673_v47 }
 0x497   : > { %v3936_v59 = vrot.slane %v2301_v42, %v9678_v51  ;;  %v3940_v23 = vrot.slane %v2301_v42, %v9681_v52  ;;  %v3944_v2 = vrot.slane %v2301_v42, %v9685_v56  ;;  %v3948_v55 = vrot.slane %v2301_v42, %v9688_v58 }
 0x498   : > { %v6436_v7 = vrot.slane %v6422_v20, %v9705_v44  ;;  %v11253_v12 = vcombine.low %v6546_v5, %v6553_v62  ;;  %v6489_v41 = vcombine.low %v3744_v33, %v3748_v48  ;;  %v6490_v0 = vcombine.low %v3752_v57, %v3756_v63  ;;  %v12100_v62 = vld [vmem:[#allocation8_spill] sm:$0xff] }
 0x499   : > { %v3984_v35 = vrot.slane %v2303_v27, %v9663_v3  ;;  %v3988_v30 = vrot.slane %v2303_v27, %v9667_v43  ;;  %v3992_v9 = vrot.slane %v2303_v27, %v9670_v46  ;;  %v3996_v53 = vrot.slane %v2303_v27, %v9673_v47 }
 0x49a   : > { %v11259_v1 = vcombine.low %v6560_v45, %v6567_v4  ;;  %v6497_v37 = vrot.slane %v6487_v28, %v9705_v44  ;;  %v6504_v11 = vrot.slane %v6488_v17, %v9705_v44  ;;  %v6781_v18 = vcombine.low %v3920_v61, %v3924_v14  ;;  %7614 = vperm.xlu1 %8626, %v12100_v62  }
 0x49b   : > { %v2298_v16 = vadd.f32 %v9660_v36, %v12099_v22  ;;  %v6782_v10 = vcombine.low %v3928_v21, %v3932_v24  ;;  %v6783_v39 = vcombine.low %v3936_v59, %v3940_v23  ;;  %v6784_v8 = vcombine.low %v3944_v2, %v3948_v55  ;;  %v2217_v24 = vpop.xlane.xlu0 %2216  ;;  %v12101_v23 = vld [vmem:[#allocation10_spill] sm:$0xff] }
 0x49c   : > { %v4000_v34 = vrot.slane %v2303_v27, %v9678_v51  ;;  %v4004_v42 = vrot.slane %v2303_v27, %v9681_v52  ;;  %v4008_v20 = vrot.slane %v2303_v27, %v9685_v56  ;;  %v4012_v5 = vrot.slane %v2303_v27, %v9688_v58 }
 0x49d   : > { %v6511_v33 = vrot.slane %v6489_v41, %v9705_v44  ;;  %v6518_v48 = vrot.slane %v6490_v0, %v9705_v44  ;;  %v6879_v57 = vcombine.low %v3984_v35, %v3988_v30  ;;  %v6880_v63 = vcombine.low %v3992_v9, %v3996_v53 }
 0x49e   : > { %v11272_v45 = vcombine.low %v6331_v19, %v6338_v15  ;;  %v11274_v4 = vcombine.low %v6429_v29, %v6436_v7  ;;  %v3824_v27 = vrot.slane %v2298_v16, %v9663_v3  ;;  %v3828_v61 = vrot.slane %v2298_v16, %v9667_v43  ;;  %7620 = vperm.xlu1 %8626, %v12101_v23   ;;  %v12102_v23 = vld [vmem:[#allocation14_spill] sm:$0xff] }
 0x49f   : > { %v6791_v14 = vrot.slane %v6781_v18, %v9705_v44  ;;  %v6798_v21 = vrot.slane %v6782_v10, %v9705_v44  ;;  %v6805_v19 = vrot.slane %v6783_v39, %v9705_v44  ;;  %v6812_v15 = vrot.slane %v6784_v8, %v9705_v44 }
 0x4a0   : > { %v11286_v29 = vcombine.low %v4000_v34, %v4004_v42  ;;  %v11288_v59 = vcombine.low %v4008_v20, %v4012_v5  ;;  %v11291_v2 = vcombine.low %v6497_v37, %v6504_v11  ;;  %v11293_v55 = vcombine.low %v6511_v33, %v6518_v48  ;;  %v11325_v5 = vpop.xlane.xlu0 %2222 }
 0x4a1   : > { %v6889_v7 = vrot.slane %v6879_v57, %v9705_v44  ;;  %v6896_v41 = vrot.slane %v6880_v63, %v9705_v44  ;;  %v3832_v0 = vrot.slane %v2298_v16, %v9670_v46  ;;  %v3836_v35 = vrot.slane %v2298_v16, %v9673_v47 }
 0x4a2   : > { %v3840_v30 = vrot.slane %v2298_v16, %v9678_v51  ;;  %v3844_v9 = vrot.slane %v2298_v16, %v9681_v52  ;;  %v3848_v53 = vrot.slane %v2298_v16, %v9685_v56  ;;  %v3852_v18 = vrot.slane %v2298_v16, %v9688_v58  ;;  %7626 = vperm.xlu1 %8626, %v10918_v6  }
 0x4a3   : > { %v11303_v37 = vcombine.low %v3824_v27, %v3828_v61  ;;  %v11305_v11 = vcombine.low %v6791_v14, %v6798_v21  ;;  %v11308_v22 = vadd.f32 %v9660_v36, %v2217_v24  ;;  %v11310_v10 = vcombine.low %v6805_v19, %v6812_v15  ;;  %v12103_v15 = vld [vmem:[#allocation11_spill] sm:$0xff] }
 0x4a4   : > { %v3792_v16 = vrot.slane %v10899_v26, %v9663_v3  ;;  %v3796_v34 = vrot.slane %v10899_v26, %v9667_v43  ;;  %v11323_v20 = vcombine.low %v6889_v7, %v6896_v41  ;;  %v11327_v62 = vcombine.low %v3832_v0, %v3836_v35  ;;  %v2226_v57 = vpop.xlane.xlu1 %2225  ;;  %v12104_v14 = vld [vmem:[#allocation15_spill] sm:$0xff] }
 0x4a5   : > { %v11329_v33 = vcombine.low %v3840_v30, %v3844_v9  ;;  %v11335_v63 = vcombine.low %v3848_v53, %v3852_v18  ;;  %v2308_v21 = vadd.f32 %v9660_v36, %v2226_v57  ;;  %v7840_v24 = vadd.s32 4294967200, %v9947_v49  ;;  %v7606_v30 = vpop.permute.xlu0 %7605 }
 0x4a6   : > { %7632 = vperm.xlu1 %8626, %v12102_v23   ;;  %v7851_v7 = vrot.slane %v7606_v30, %v12103_v15 }
 0x4a7   : > { %v4144_v9 = vrot.slane %v2308_v21, %v9663_v3  ;;  %v4148_v53 = vrot.slane %v2308_v21, %v9667_v43  ;;  %v4152_v18 = vrot.slane %v2308_v21, %v9670_v46  ;;  %v4156_v57 = vrot.slane %v2308_v21, %v9673_v47 }
 0x4a8   : > { %v2232_v23 = vpop.xlane.xlu1 %2231  ;;  %v4160_v28 = vrot.slane %v2308_v21, %v9678_v51  ;;  %v4164_v17 = vrot.slane %v2308_v21, %v9681_v52  ;;  %v4168_v39 = vrot.slane %v2308_v21, %v9685_v56  ;;  %v4172_v8 = vrot.slane %v2308_v21, %v9688_v58 }
 0x4a9   : > { %v2310_v27 = vadd.f32 %v9660_v36, %v2232_v23  ;;  %v11368_v35 = vsub.s32 %v7840_v24, %v9656_v31  ;;  %v7124_v41 = vcombine.low %v4144_v9, %v4148_v53  ;;  %v7125_v0 = vcombine.low %v4152_v18, %v4156_v57 }
 0x4aa   : > { %7638 = vperm.xlu1 %8626, %v12104_v14   ;;  %v7126_v19 = vcombine.low %v4160_v28, %v4164_v17  ;;  %v7127_v48 = vcombine.low %v4168_v39, %v4172_v8 }
 0x4ab   : > { %v7134_v61 = vrot.slane %v7124_v41, %v9705_v44  ;;  %v7141_v42 = vrot.slane %v7125_v0, %v9705_v44  ;;  %v4208_v21 = vrot.slane %v2310_v27, %v9663_v3  ;;  %v4212_v23 = vrot.slane %v2310_v27, %v9667_v43 }
 0x4ac   : > { %v7603_v6 = vpop.permute.xlu1 %7602  ;;  %v7148_v24 = vrot.slane %v7126_v19, %v9705_v44  ;;  %v7155_v9 = vrot.slane %v7127_v48, %v9705_v44  ;;  %v4216_v30 = vrot.slane %v2310_v27, %v9670_v46  ;;  %v4220_v14 = vrot.slane %v2310_v27, %v9673_v47 }
 0x4ad   : > { %v7844_v28 = vrot.slane %v7603_v6, %v11368_v35  ;;  %v7156_v17 = vcombine.low %v7134_v61, %v7141_v42  ;;  %v4224_v39 = vrot.slane %v2310_v27, %v9678_v51  ;;  %v4228_v41 = vrot.slane %v2310_v27, %v9681_v52 }
 0x4ae   : > { %7644 = vperm.xlu1 %8626, %v11189_v54   ;;  %v7157_v8 = vcombine.low %v7148_v24, %v7155_v9  ;;  %v4232_v0 = vrot.slane %v2310_v27, %v9685_v56  ;;  %v4236_v19 = vrot.slane %v2310_v27, %v9688_v58  ;;  %v7222_v18 = vcombine.low %v4208_v21, %v4212_v23 }
 0x4af   : > { %v7846_v48 = vsel %vm7845_vm14, %v7844_v28, %v11080_v32  ;;  %v7164_v53 = vrot.slane %v7156_v17, %v9705_v44  ;;  %v7223_v6 = vcombine.low %v4216_v30, %v4220_v14  ;;  %v7224_v61 = vcombine.low %v4224_v39, %v4228_v41 }
 0x4b0   : > { %v7171_v42 = vrot.slane %v7157_v8, %v9705_v44  ;;  %v7225_v57 = vcombine.low %v4232_v0, %v4236_v19  ;;  %v11391_v54 = vsel %vm7852_vm15, %v7851_v7, %v7846_v48  ;;  %v7232_v24 = vrot.slane %v7222_v18, %v9705_v44 }
 0x4b1   : > { %v7239_v9 = vrot.slane %v7223_v6, %v9705_v44  ;;  %v4068_v27 = vrot.slane %v11308_v22, %v9681_v52  ;;  %v4072_v32 = vrot.slane %v11308_v22, %v9685_v56  ;;  %v7246_v23 = vrot.slane %v7224_v61, %v9705_v44 }
 0x4b2   : > { %7650 = vperm.xlu1 %8626, %v11197_v25   ;;  %v7172_v21 = vcombine.low %v7164_v53, %v7171_v42  ;;  %v7253_v30 = vrot.slane %v7225_v57, %v9705_v44  ;;  %v4076_v7 = vrot.slane %v11308_v22, %v9688_v58  ;;  %v2307_v14 = vadd.f32 %v9660_v36, %v11325_v5 }
 0x4b3   : > { %v7254_v28 = vcombine.low %v7232_v24, %v7239_v9  ;;  %v6651_v17 = vrot.slane %v11327_v62, %v9705_v44  ;;  %v6585_v25 = vcombine.low %v3792_v16, %v3796_v34  ;;  %v6658_v8 = vrot.slane %v11329_v33, %v9705_v44 }
 0x4b4   : > { %7731 = vperm.xlu0 %8627, %v7172_v21   ;;  %v7255_v39 = vcombine.low %v7246_v23, %v7253_v30  ;;  %v12105_v41 = vrot.slane %v10899_v26, %v9673_v47  ;;  %v12106_v5 = vrot.slane %v10899_v26, %v9670_v46  ;;  %v12107_v62 = vrot.slane %v10899_v26, %v9681_v52 }
 0x4b5   : > { %v12108_v19 = vrot.slane %v10899_v26, %v9678_v51  ;;  %v7262_v16 = vrot.slane %v7254_v28, %v9705_v44  ;;  %v12109_v34 = vrot.slane %v10899_v26, %v9688_v58  ;;  %v12110_v33 = vrot.slane %v10899_v26, %v9685_v56 }
 0x4b6   : > { %v6586_v0 = vcombine.low %v12106_v5, %v12105_v41  ;;  %v12111_v18 = vrot.slane %v11308_v22, %v9667_v43  ;;  %v12112_v6 = vrot.slane %v11308_v22, %v9663_v3  ;;  %v12113_v61 = vrot.slane %v11308_v22, %v9673_v47  ;;  %7656 = vperm.xlu1 %8626, %v11199_v60  }
 0x4b7   : > { %v6587_v48 = vcombine.low %v12108_v19, %v12107_v62  ;;  %v6588_v53 = vcombine.low %v12110_v33, %v12109_v34  ;;  %v12114_v57 = vrot.slane %v11308_v22, %v9670_v46  ;;  %v7269_v9 = vrot.slane %v7255_v39, %v9705_v44 }
 0x4b8   : > { %v6977_v42 = vcombine.low %v12112_v6, %v12111_v18  ;;  %v6665_v26 = vrot.slane %v11335_v63, %v9705_v44  ;;  %v12115_v21 = vrot.slane %v11308_v22, %v9678_v51  ;;  %v6980_v30 = vcombine.low %v4072_v32, %v4076_v7 }
 0x4b9   : > { %v6978_v24 = vcombine.low %v12114_v57, %v12113_v61  ;;  %v4112_v28 = vrot.slane %v2307_v14, %v9663_v3  ;;  %v4116_v41 = vrot.slane %v2307_v14, %v9667_v43  ;;  %v4120_v5 = vrot.slane %v2307_v14, %v9670_v46 }
 0x4ba   : > { %v6979_v23 = vcombine.low %v12115_v21, %v4068_v27  ;;  %v4124_v62 = vrot.slane %v2307_v14, %v9673_v47  ;;  %v7270_v19 = vcombine.low %v7262_v16, %v7269_v9  ;;  %v6595_v60 = vrot.slane %v6585_v25, %v9705_v44  ;;  %7662 = vperm.xlu1 %8626, %v11201_v50  }
 0x4bb   : > { %v6602_v39 = vrot.slane %v6586_v0, %v9705_v44  ;;  %v6609_v63 = vrot.slane %v6587_v48, %v9705_v44  ;;  %v6616_v34 = vrot.slane %v6588_v53, %v9705_v44  ;;  %v6987_v22 = vrot.slane %v6977_v42, %v9705_v44 }
 0x4bc   : > { %v6994_v27 = vrot.slane %v6978_v24, %v9705_v44  ;;  %v4128_v32 = vrot.slane %v2307_v14, %v9678_v51  ;;  %7737 = vperm.xlu0 %8627, %v7270_v19   ;;  %v7001_v7 = vrot.slane %v6979_v23, %v9705_v44  ;;  %v7008_v16 = vrot.slane %v6980_v30, %v9705_v44 }
 0x4bd   : > { %v4132_v25 = vrot.slane %v2307_v14, %v9681_v52  ;;  %v4136_v0 = vrot.slane %v2307_v14, %v9685_v56  ;;  %v4140_v48 = vrot.slane %v2307_v14, %v9688_v58  ;;  %v7075_v33 = vcombine.low %v4112_v28, %v4116_v41 }
 0x4be   : > { %v7076_v53 = vcombine.low %v4120_v5, %v4124_v62  ;;  %v6527_v18 = vrot.slane %v11291_v2, %v9705_v44  ;;  %v6534_v6 = vrot.slane %v11293_v55, %v9705_v44  ;;  %v6821_v50 = vrot.slane %v11305_v11, %v9705_v44  ;;  %v2229_v55 = vpop.xlane.xlu0 %2228  ;;  %7668 = vperm.xlu1 %8626, %v11208_v13  }
 0x4bf   : > { %v6828_v42 = vrot.slane %v11310_v10, %v9705_v44  ;;  %v12116_v61 = vrot.slane %v11303_v37, %v9705_v44  ;;  %v6667_v24 = vcombine.low %v6658_v8, %v6665_v26  ;;  %v6617_v14 = vcombine.low %v6595_v60, %v6602_v39 }
 0x4c0   : > { %v12117_v9 = vrot.slane %v11288_v59, %v9705_v44  ;;  %v12118_v2 = vrot.slane %v11286_v29, %v9705_v44  ;;  %v6618_v11 = vcombine.low %v6609_v63, %v6616_v34  ;;  %v7009_v23 = vcombine.low %v6987_v22, %v6994_v27  ;;  %v12119_v59 = vld [vmem:[#allocation13_spill] sm:$0xff] }
 0x4c1   : > { %v6666_v57 = vcombine.low %v12116_v61, %v6651_v17  ;;  %v7010_v30 = vcombine.low %v7001_v7, %v7008_v16  ;;  %v7077_v10 = vcombine.low %v4128_v32, %v4132_v25  ;;  %v6919_v37 = vrot.slane %v11323_v20, %v9705_v44 }
 0x4c2   : > { %v6912_v21 = vcombine.low %v12118_v2, %v12117_v9  ;;  %v7078_v17 = vcombine.low %v4136_v0, %v4140_v48  ;;  %v7085_v8 = vrot.slane %v7075_v33, %v9705_v44  ;;  %v7092_v26 = vrot.slane %v7076_v53, %v9705_v44  ;;  %7674 = vperm.xlu1 %8626, %v11210_v40   ;;  %v2235_v16 = vpop.xlane.xlu0 %2234 }
 0x4c3   : > { %v3856_v28 = vrot.slane %v12119_v59, %v9663_v3  ;;  %v3860_v29 = vrot.slane %v12119_v59, %v9667_v43  ;;  %v3864_v13 = vrot.slane %v12119_v59, %v9670_v46  ;;  %v3868_v41 = vrot.slane %v12119_v59, %v9673_v47 }
 0x4c4   : > { %v6674_v5 = vrot.slane %v6666_v57, %v9705_v44  ;;  %v6681_v20 = vrot.slane %v6667_v24, %v9705_v44  ;;  %v6625_v62 = vrot.slane %v6617_v14, %v9705_v44  ;;  %v6926_v19 = vrot.slane %v6912_v21, %v9705_v44 }
 0x4c5   : > { %v6632_v60 = vrot.slane %v6618_v11, %v9705_v44  ;;  %v7017_v39 = vrot.slane %v7009_v23, %v9705_v44  ;;  %v7024_v63 = vrot.slane %v7010_v30, %v9705_v44  ;;  %v7099_v34 = vrot.slane %v7077_v10, %v9705_v44 }
 0x4c6   : > { %v7106_v22 = vrot.slane %v7078_v17, %v9705_v44  ;;  %v11511_v27 = vcombine.low %v7085_v8, %v7092_v26  ;;  %v3872_v32 = vrot.slane %v12119_v59, %v9678_v51  ;;  %v3876_v7 = vrot.slane %v12119_v59, %v9681_v52  ;;  %7680 = vperm.xlu1 %8626, %v11272_v45  }
 0x4c7   : > { %v3880_v40 = vrot.slane %v12119_v59, %v9685_v56  ;;  %v3884_v25 = vrot.slane %v12119_v59, %v9688_v58  ;;  %v6683_v0 = vcombine.low %v3856_v28, %v3860_v29  ;;  %v6684_v48 = vcombine.low %v3864_v13, %v3868_v41  ;;  %v11557_v29 = vpop.permute.xlu0 %7611 }
 0x4c8   : > { %v2309_v33 = vadd.f32 %v9660_v36, %v2229_v55  ;;  %v12120_v53 = vrot.slane %v11259_v1, %v9705_v44  ;;  %v12121_v61 = vrot.slane %v11253_v12, %v9705_v44  ;;  %v6535_v24 = vcombine.low %v6527_v18, %v6534_v6  ;;  %v12122_v18 = vld [vmem:[#allocation23_spill] sm:$0xff] }
 0x4c9   : > { %v11528_v14 = vcombine.low %v6821_v50, %v6828_v42  ;;  %v11531_v9 = vcombine.low %v6674_v5, %v6681_v20  ;;  %v11533_v2 = vcombine.low %v6625_v62, %v6632_v60  ;;  %v11535_v21 = vcombine.low %v6919_v37, %v6926_v19 }
 0x4ca   : > { %v6584_v57 = vcombine.low %v12121_v61, %v12120_v53  ;;  %v11537_v11 = vcombine.low %v7017_v39, %v7024_v63  ;;  %v2311_v55 = vadd.f32 %v9660_v36, %v2235_v16  ;;  %v7108_v1 = vcombine.low %v7099_v34, %v7106_v22  ;;  %7686 = vperm.xlu1 %8626, %v11274_v4  }
 0x4cb   : > { %v7115_v12 = vrot.slane %v11511_v27, %v9705_v44  ;;  %v6685_v23 = vcombine.low %v3872_v32, %v3876_v7  ;;  %v11544_v6 = vadd.f32 %v9660_v36, %v12122_v18  ;;  %v6686_v45 = vcombine.low %v3880_v40, %v3884_v25  ;;  %v2241_v40 = vpop.xlane.xlu0 %2240 }
 0x4cc   : > { %v6693_v50 = vrot.slane %v6683_v0, %v9705_v44  ;;  %v6700_v42 = vrot.slane %v6684_v48, %v9705_v44  ;;  %v4176_v30 = vrot.slane %v2309_v33, %v9663_v3  ;;  %v4180_v10 = vrot.slane %v2309_v33, %v9667_v43 }
 0x4cd   : > { %v4184_v37 = vrot.slane %v2309_v33, %v9670_v46  ;;  %v4188_v17 = vrot.slane %v2309_v33, %v9673_v47  ;;  %v4192_v8 = vrot.slane %v2309_v33, %v9678_v51  ;;  %v4196_v26 = vrot.slane %v2309_v33, %v9681_v52 }
 0x4ce   : > { %v4200_v59 = vrot.slane %v2309_v33, %v9685_v56  ;;  %v4204_v28 = vrot.slane %v2309_v33, %v9688_v58  ;;  %v4240_v13 = vrot.slane %v2311_v55, %v9663_v3  ;;  %v4244_v41 = vrot.slane %v2311_v55, %v9667_v43  ;;  %7695 = vperm.xlu1 %8626, %v6584_v57  }
 0x4cf   : > { %v4248_v5 = vrot.slane %v2311_v55, %v9670_v46  ;;  %v4252_v20 = vrot.slane %v2311_v55, %v9673_v47  ;;  %v4256_v4 = vrot.slane %v2311_v55, %v9678_v51  ;;  %v4260_v62 = vrot.slane %v2311_v55, %v9681_v52 }
 0x4d0   : > { %v4264_v19 = vrot.slane %v2311_v55, %v9685_v56  ;;  %v4268_v60 = vrot.slane %v2311_v55, %v9688_v58  ;;  %v7122_v39 = vrot.slane %v7108_v1, %v9705_v44  ;;  %v7173_v63 = vcombine.low %v4176_v30, %v4180_v10 }
 0x4d1   : > { %v7174_v34 = vcombine.low %v4184_v37, %v4188_v17  ;;  %v6707_v22 = vrot.slane %v6685_v23, %v9705_v44  ;;  %v6714_v27 = vrot.slane %v6686_v45, %v9705_v44  ;;  %v11570_v32 = vcombine.low %v6693_v50, %v6700_v42 }
 0x4d2   : > { %v3888_v7 = vrot.slane %v11544_v6, %v9663_v3  ;;  %v3892_v16 = vrot.slane %v11544_v6, %v9667_v43  ;;  %v7175_v25 = vcombine.low %v4192_v8, %v4196_v26  ;;  %v7176_v0 = vcombine.low %v4200_v59, %v4204_v28  ;;  %7692 = vperm.xlu1 %8626, %v6535_v24  }
 0x4d3   : > { %v3896_v48 = vrot.slane %v11544_v6, %v9670_v46  ;;  %v3900_v33 = vrot.slane %v11544_v6, %v9673_v47  ;;  %v7271_v53 = vcombine.low %v4240_v13, %v4244_v41  ;;  %v7272_v61 = vcombine.low %v4248_v5, %v4252_v20 }
 0x4d4   : > { %v7273_v57 = vcombine.low %v4256_v4, %v4260_v62  ;;  %v7274_v55 = vcombine.low %v4264_v19, %v4268_v60  ;;  %v7183_v1 = vrot.slane %v7173_v63, %v9705_v44  ;;  %v7190_v23 = vrot.slane %v7174_v34, %v9705_v44  ;;  %v2247_v4 = vpop.xlane.xlu0 %2246 }
 0x4d5   : > { %v3904_v18 = vrot.slane %v11544_v6, %v9678_v51  ;;  %v3908_v45 = vrot.slane %v11544_v6, %v9681_v52  ;;  %v2313_v50 = vadd.f32 %v9660_v36, %v2241_v40  ;;  %v11587_v42 = vcombine.low %v7115_v12, %v7122_v39 }
 0x4d6   : > { %v11589_v30 = vcombine.low %v6707_v22, %v6714_v27  ;;  %v7197_v37 = vrot.slane %v7175_v25, %v9705_v44  ;;  %v7204_v17 = vrot.slane %v7176_v0, %v9705_v44  ;;  %v3912_v8 = vrot.slane %v11544_v6, %v9685_v56  ;;  %7701 = vperm.xlu1 %8626, %v11531_v9  }
 0x4d7   : > { %v3916_v26 = vrot.slane %v11544_v6, %v9688_v58  ;;  %v7281_v59 = vrot.slane %v7271_v53, %v9705_v44  ;;  %v7288_v24 = vrot.slane %v7272_v61, %v9705_v44  ;;  %v7295_v12 = vrot.slane %v7273_v57, %v9705_v44 }
 0x4d8   : > { %v7302_v28 = vrot.slane %v7274_v55, %v9705_v44  ;;  %v11603_v13 = vcombine.low %v7183_v1, %v7190_v23  ;;  %v11605_v41 = vcombine.low %v3888_v7, %v3892_v16  ;;  %v11607_v5 = vcombine.low %v3896_v48, %v3900_v33 }
 0x4d9   : > { %v11609_v20 = vcombine.low %v3904_v18, %v3908_v45  ;;  %v4304_v6 = vrot.slane %v2313_v50, %v9663_v3  ;;  %v4308_v62 = vrot.slane %v2313_v50, %v9667_v43  ;;  %v4312_v19 = vrot.slane %v2313_v50, %v9670_v46 }
 0x4da   : > { %v4316_v60 = vrot.slane %v2313_v50, %v9673_v47  ;;  %v4320_v39 = vrot.slane %v2313_v50, %v9678_v51  ;;  %v4324_v63 = vrot.slane %v2313_v50, %v9681_v52  ;;  %v4328_v34 = vrot.slane %v2313_v50, %v9685_v56  ;;  %7698 = vperm.xlu1 %8626, %v11533_v2  }
 0x4db   : > { %v4332_v22 = vrot.slane %v2313_v50, %v9688_v58  ;;  %v11620_v27 = vcombine.low %v7197_v37, %v7204_v17  ;;  %v11622_v7 = vcombine.low %v7281_v59, %v7288_v24  ;;  %v11624_v9 = vcombine.low %v7295_v12, %v7302_v28 }
 0x4dc   : > { %v11626_v16 = vcombine.low %v3912_v8, %v3916_v26  ;;  %v11629_v40 = vadd.f32 %v9660_v36, %v2247_v4  ;;  %v7854_v25 = vadd.s32 4294967184, %v9947_v49  ;;  %v11641_v61 = vcombine.low %v4304_v6, %v4308_v62 }
 0x4dd   : > { %v11643_v57 = vcombine.low %v4312_v19, %v4316_v60  ;;  %v7865_v49 = vrot.slane %v11557_v29, %v11225_v38  ;;  %v7213_v55 = vrot.slane %v11603_v13, %v9705_v44  ;;  %v11649_v1 = vcombine.low %v4320_v39, %v4324_v63  ;;  %v2238_v37 = vpop.xlane.xlu1 %2237 }
 0x4de   : > { %v11651_v23 = vcombine.low %v4328_v34, %v4332_v22  ;;  %v7220_v2 = vrot.slane %v11620_v27, %v9705_v44  ;;  %v11662_v17 = vsub.s32 %v7854_v25, %v9656_v31  ;;  %v4368_v8 = vrot.slane %v11629_v40, %v9663_v3  ;;  %7710 = vperm.xlu1 %8626, %v11528_v14  }
 0x4df   : > { %v4372_v26 = vrot.slane %v11629_v40, %v9667_v43  ;;  %v2312_v59 = vadd.f32 %v9660_v36, %v2238_v37  ;;  %v4376_v31 = vrot.slane %v11629_v40, %v9670_v46  ;;  %v4380_v6 = vrot.slane %v11629_v40, %v9673_v47 }
 0x4e0   : > { %v4384_v14 = vrot.slane %v11629_v40, %v9678_v51  ;;  %v4388_v4 = vrot.slane %v11629_v40, %v9681_v52  ;;  %v4392_v18 = vrot.slane %v11629_v40, %v9685_v56  ;;  %v4396_v45 = vrot.slane %v11629_v40, %v9688_v58 }
 0x4e1   : > { %v4272_v62 = vrot.slane %v2312_v59, %v9663_v3  ;;  %v4276_v19 = vrot.slane %v2312_v59, %v9667_v43  ;;  %v4280_v60 = vrot.slane %v2312_v59, %v9670_v46  ;;  %v4284_v39 = vrot.slane %v2312_v59, %v9673_v47  ;;  %v2244_v63 = vpop.xlane.xlu1 %2243 }
 0x4e2   : > { %v4288_v34 = vrot.slane %v2312_v59, %v9678_v51  ;;  %v4292_v22 = vrot.slane %v2312_v59, %v9681_v52  ;;  %v4296_v25 = vrot.slane %v2312_v59, %v9685_v56  ;;  %v4300_v37 = vrot.slane %v2312_v59, %v9688_v58  ;;  %7716 = vperm.xlu1 %8626, %v11535_v21  }
 0x4e3   : > { %v2314_v10 = vadd.f32 %v9660_v36, %v2244_v63  ;;  %v7320_v0 = vcombine.low %v4272_v62, %v4276_v19  ;;  %v7321_v28 = vcombine.low %v4280_v60, %v4284_v39  ;;  %v7469_v29 = vcombine.low %v4384_v14, %v4388_v4 }
 0x4e4   : > { %v7322_v24 = vcombine.low %v4288_v34, %v4292_v22  ;;  %v7323_v12 = vcombine.low %v4296_v25, %v4300_v37  ;;  %v12127_v13 = vrot.slane %v11624_v9, %v9705_v44  ;;  %v12128_v27 = vrot.slane %v11622_v7, %v9705_v44 }
 0x4e5   : > { %v7330_v53 = vrot.slane %v7320_v0, %v9705_v44  ;;  %v7337_v59 = vrot.slane %v7321_v28, %v9705_v44  ;;  %v4336_v63 = vrot.slane %v2314_v10, %v9663_v3  ;;  %v4340_v21 = vrot.slane %v2314_v10, %v9667_v43  ;;  %v7609_v62 = vpop.permute.xlu1 %7608 }
 0x4e6   : > { %v7344_v19 = vrot.slane %v7322_v24, %v9705_v44  ;;  %v7351_v60 = vrot.slane %v7323_v12, %v9705_v44  ;;  %v4344_v39 = vrot.slane %v2314_v10, %v9670_v46  ;;  %v4348_v34 = vrot.slane %v2314_v10, %v9673_v47  ;;  %7722 = vperm.xlu1 %8626, %v11537_v11  }
 0x4e7   : > { %v7858_v22 = vrot.slane %v7609_v62, %v11662_v17  ;;  %v7352_v40 = vcombine.low %v7330_v53, %v7337_v59  ;;  %v4352_v0 = vrot.slane %v2314_v10, %v9678_v51  ;;  %v4356_v28 = vrot.slane %v2314_v10, %v9681_v52 }
 0x4e8   : > { %v7353_v25 = vcombine.low %v7344_v19, %v7351_v60  ;;  %v4360_v37 = vrot.slane %v2314_v10, %v9685_v56  ;;  %v4364_v24 = vrot.slane %v2314_v10, %v9688_v58  ;;  %v7418_v50 = vcombine.low %v4336_v63, %v4340_v21 }
 0x4e9   : > { %v7860_v12 = vsel %vm7859_vm0, %v7858_v22, %v11391_v54  ;;  %v7360_v48 = vrot.slane %v7352_v40, %v9705_v44  ;;  %v7419_v33 = vcombine.low %v4344_v39, %v4348_v34  ;;  %v7420_v62 = vcombine.low %v4352_v0, %v4356_v28 }
 0x4ea   : > { %v11721_v11 = vsel %vm7866_vm1, %v7865_v49, %v7860_v12  ;;  %v7367_v53 = vrot.slane %v7353_v25, %v9705_v44  ;;  %v7421_v59 = vcombine.low %v4360_v37, %v4364_v24  ;;  %v7428_v19 = vrot.slane %v7418_v50, %v9705_v44  ;;  %7728 = vperm.xlu1 %8626, %v11587_v42  }
 0x4eb   : > { %v7435_v10 = vrot.slane %v7419_v33, %v9705_v44  ;;  %v7442_v54 = vrot.slane %v7420_v62, %v9705_v44  ;;  %v7467_v63 = vcombine.low %v4368_v8, %v4372_v26  ;;  %v7468_v21 = vcombine.low %v4376_v31, %v4380_v6 }
 0x4ec   : > { %v7368_v60 = vcombine.low %v7360_v48, %v7367_v53  ;;  %v7449_v39 = vrot.slane %v7421_v59, %v9705_v44  ;;  %v7470_v34 = vcombine.low %v4392_v18, %v4396_v45  ;;  %v7221_v49 = vcombine.low %v7213_v55, %v7220_v2  ;;  %v7618_v59 = vpop.permute.xlu0 %7617 }
 0x4ed   : > { %v7450_v50 = vcombine.low %v7428_v19, %v7435_v10  ;;  %v12123_v42 = vrot.slane %v11607_v5, %v9705_v44  ;;  %v12124_v33 = vrot.slane %v11605_v41, %v9705_v44  ;;  %v12125_v48 = vrot.slane %v11626_v16, %v9705_v44 }
 0x4ee   : > { %v12126_v18 = vrot.slane %v11609_v20, %v9705_v44  ;;  %7743 = vperm.xlu0 %8627, %v7368_v60   ;;  %v7319_v55 = vcombine.low %v12128_v27, %v12127_v13  ;;  %v7451_v5 = vcombine.low %v7442_v54, %v7449_v39  ;;  %7734 = vperm.xlu1 %8626, %v7221_v49  }
 0x4ef   : > { %v6764_v8 = vcombine.low %v12124_v33, %v12123_v42  ;;  %v12129_v41 = vrot.slane %v11643_v57, %v9705_v44  ;;  %v12130_v16 = vrot.slane %v11641_v61, %v9705_v44  ;;  %v12131_v20 = vrot.slane %v11651_v23, %v9705_v44 }
 0x4f0   : > { %v6765_v45 = vcombine.low %v12126_v18, %v12125_v48  ;;  %v12132_v26 = vrot.slane %v11649_v1, %v9705_v44  ;;  %v7477_v31 = vrot.slane %v7467_v63, %v9705_v44  ;;  %v7484_v7 = vrot.slane %v7468_v21, %v9705_v44  ;;  %v7624_v19 = vpop.permute.xlu0 %7623 }
 0x4f1   : > { %v7401_v2 = vcombine.low %v12130_v16, %v12129_v41  ;;  %v7458_v4 = vrot.slane %v7450_v50, %v9705_v44  ;;  %v7465_v6 = vrot.slane %v7451_v5, %v9705_v44  ;;  %v7491_v57 = vrot.slane %v7469_v29, %v9705_v44  ;;  %v12138_v16 = vld [vmem:[#allocation33_spill] sm:$0xff] }
 0x4f2   : > { %v7402_v9 = vcombine.low %v12132_v26, %v12131_v20  ;;  %v7498_v61 = vrot.slane %v7470_v34, %v9705_v44  ;;  %v12133_v14 = vrot.slane %v11589_v30, %v9705_v44  ;;  %v12134_v23 = vrot.slane %v11570_v32, %v9705_v44  ;;  %7740 = vperm.xlu0 %8627, %v7319_v55   ;;  %v12137_v55 = vld [vmem:[#allocation32_spill] sm:$0xff] }
 0x4f3   : > { %v6772_v22 = vrot.slane %v6764_v8, %v9705_v44  ;;  %v6779_v40 = vrot.slane %v6765_v45, %v9705_v44  ;;  %v7409_v0 = vrot.slane %v7401_v2, %v9705_v44  ;;  %v7466_v28 = vcombine.low %v7458_v4, %v7465_v6  ;;  %v12135_v8 = vld [vmem:[#allocation29_spill] sm:$0xff] }
 0x4f4   : > { %v6731_v1 = vcombine.low %v12134_v23, %v12133_v14  ;;  %v7416_v25 = vrot.slane %v7402_v9, %v9705_v44  ;;  %v7499_v37 = vcombine.low %v7477_v31, %v7484_v7  ;;  %v7500_v24 = vcombine.low %v7491_v57, %v7498_v61  ;;  %v7630_v54 = vpop.permute.xlu0 %7629  ;;  %v12139_v57 = vld [vmem:[#allocation35_spill] sm:$0xff]  ;;  %v12140_v14 = vld [vmem:[#allocation36_spill] sm:$0xff] }
 0x4f5   : > { %v6780_v12 = vcombine.low %v6772_v22, %v6779_v40  ;;  %v7875_v48 = vrot.slane %v7618_v59, %v12135_v8  ;;  %v7885_v2 = vrot.slane %v7624_v19, %v12138_v16  ;;  %v7895_v23 = vrot.slane %v7630_v54, %v12140_v14  ;;  %v12144_v19 = vld [vmem:[#allocation19_spill] sm:$0xff] }
 0x4f6   : > { %7704 = vperm.xlu1 %8626, %v6731_v1   ;;  %7749 = vperm.xlu0 %8627, %v7466_v28   ;;  %v7417_v30 = vcombine.low %v7409_v0, %v7416_v25  ;;  %v7507_v32 = vrot.slane %v7499_v37, %v9705_v44  ;;  %v7514_v62 = vrot.slane %v7500_v24, %v9705_v44  ;;  %v12141_v28 = vld [vmem:[#allocation17_spill] sm:$0xff]  ;;  %v12142_v37 = vld [vmem:[#allocation7_spill] sm:$0xff] }
 0x4f8   : > { %v7515_v53 = vcombine.low %v7507_v32, %v7514_v62 }
 0x4fa   : > { %7707 = vperm.xlu1 %8626, %v6780_v12   ;;  %7746 = vperm.xlu0 %8627, %v7417_v30  }
 0x4fe   : > { %7752 = vperm.xlu0 %8627, %v7515_v53   ;;  %v12143_v53 = vld [vmem:[#allocation27_spill] sm:$0xff] }
 0x516   : > { %v2250_v10 = vpop.xlane.xlu1 %2249 }
 0x517   : > { %v2316_v63 = vadd.f32 %v9660_v36, %v2250_v10  ;;  %v12136_v36 = vld [vmem:[#allocation30_spill] sm:$0xff] }
 0x519   : > { %v4400_v21 = vrot.slane %v2316_v63, %v9663_v3  ;;  %v4404_v60 = vrot.slane %v2316_v63, %v9667_v43  ;;  %v4408_v39 = vrot.slane %v2316_v63, %v9670_v46  ;;  %v4412_v29 = vrot.slane %v2316_v63, %v9673_v47  ;;  %v7636_v46 = vpop.permute.xlu0 %7635 }
 0x51a   : > { %v7615_v34 = vpop.permute.xlu1 %7614  ;;  %v4416_v49 = vrot.slane %v2316_v63, %v9678_v51  ;;  %v4420_v50 = vrot.slane %v2316_v63, %v9681_v52  ;;  %v4424_v42 = vrot.slane %v2316_v63, %v9685_v56  ;;  %v4428_v33 = vrot.slane %v2316_v63, %v9688_v58 }
 0x51b   : > { %v7871_v18 = vrot.slane %v7615_v34, %v12136_v36  ;;  %v7516_v3 = vcombine.low %v4400_v21, %v4404_v60  ;;  %v7517_v45 = vcombine.low %v4408_v39, %v4412_v29  ;;  %v7905_v24 = vrot.slane %v7636_v46, %v12142_v37  ;;  %v12145_v39 = vld [vmem:[#allocation16_spill] sm:$0xff]  ;;  %v12146_v34 = vld [vmem:[#allocation21_spill] sm:$0xff] }
 0x51c   : > { %v7518_v43 = vcombine.low %v4416_v49, %v4420_v50  ;;  %v7519_v13 = vcombine.low %v4424_v42, %v4428_v33 }
 0x51d   : > { %v7876_v47 = vsel %vm7768_vm3, %v7875_v48, %v7871_v18  ;;  %v7526_v27 = vrot.slane %v7516_v3, %v9705_v44  ;;  %v7533_v51 = vrot.slane %v7517_v45, %v9705_v44  ;;  %v7642_v6 = vpop.permute.xlu0 %7641 }
 0x51e   : > { %v7621_v52 = vpop.permute.xlu1 %7620  ;;  %v7540_v56 = vrot.slane %v7518_v43, %v9705_v44  ;;  %v7547_v58 = vrot.slane %v7519_v13, %v9705_v44  ;;  %v7915_v10 = vrot.slane %v7642_v6, %v12144_v19 }
 0x51f   : > { %v7880_v5 = vrot.slane %v7621_v52, %v12137_v55  ;;  %v7548_v41 = vcombine.low %v7526_v27, %v7533_v51 }
 0x520   : > { %v7549_v20 = vcombine.low %v7540_v56, %v7547_v58 }
 0x521   : > { %v7881_v26 = vsel %vm7775_vm4, %v7880_v5, %v7876_v47  ;;  %v7556_v9 = vrot.slane %v7548_v41, %v9705_v44  ;;  %v7648_v12 = vpop.permute.xlu0 %7647 }
 0x522   : > { %v7627_v31 = vpop.permute.xlu1 %7626  ;;  %v7886_v7 = vsel %vm7782_vm5, %v7885_v2, %v7881_v26  ;;  %v7563_v4 = vrot.slane %v7549_v20, %v9705_v44  ;;  %v7925_v49 = vrot.slane %v7648_v12, %v12146_v34 }
 0x523   : > { %v7890_v61 = vrot.slane %v7627_v31, %v12139_v57 }
 0x524   : > { %v7564_v1 = vcombine.low %v7556_v9, %v7563_v4 }
 0x525   : > { %v7891_v22 = vsel %vm7789_vm6, %v7890_v61, %v7886_v7  ;;  %v7654_v60 = vpop.permute.xlu0 %7653 }
 0x526   : > { %7755 = vperm.xlu0 %8627, %v7564_v1   ;;  %v7633_v40 = vpop.permute.xlu1 %7632  ;;  %v7896_v0 = vsel %vm7796_vm7, %v7895_v23, %v7891_v22  ;;  %v7935_v18 = vrot.slane %v7654_v60, %v12103_v15 }
 0x527   : > { %v7900_v25 = vrot.slane %v7633_v40, %v12141_v28 }
 0x529   : > { %v7901_v30 = vsel %vm7803_vm8, %v7900_v25, %v7896_v0  ;;  %v7660_v3 = vpop.permute.xlu0 %7659 }
 0x52a   : > { %v7639_v32 = vpop.permute.xlu1 %7638  ;;  %v7906_v62 = vsel %vm7810_vm9, %v7905_v24, %v7901_v30  ;;  %v7945_v47 = vrot.slane %v7660_v3, %v11225_v38 }
 0x52b   : > { %v7910_v59 = vrot.slane %v7639_v32, %v12143_v53 }
 0x52d   : > { %v7911_v54 = vsel %vm7817_vm10, %v7910_v59, %v7906_v62  ;;  %v7666_v41 = vpop.permute.xlu0 %7665 }
 0x52e   : > { %v7645_v63 = vpop.permute.xlu1 %7644  ;;  %v7916_v21 = vsel %vm7824_vm11, %v7915_v10, %v7911_v54 }
 0x52f   : > { %v7920_v29 = vrot.slane %v7645_v63, %v12145_v39 }
 0x531   : > { %v7921_v50 = vsel %vm7831_vm12, %v7920_v29, %v7916_v21  ;;  %v7672_v20 = vpop.permute.xlu0 %7671  ;;  %v7954_v21 = vrot.slane %v7666_v41, %v12135_v8 }
 0x532   : > { %v7651_v42 = vpop.permute.xlu1 %7650  ;;  %v7926_v33 = vsel %vm7838_vm13, %v7925_v49, %v7921_v50 }
 0x533   : > { %v7930_v48 = vrot.slane %v7651_v42, %v11368_v35 }
 0x535   : > { %v7931_v45 = vsel %vm7845_vm14, %v7930_v48, %v7926_v33  ;;  %v7678_v9 = vpop.permute.xlu0 %7677 }
 0x536   : > { %v7657_v43 = vpop.permute.xlu1 %7656  ;;  %v7936_v13 = vsel %vm7852_vm15, %v7935_v18, %v7931_v45 }
 0x537   : > { %v7940_v46 = vrot.slane %v7657_v43, %v11662_v17 }
 0x539   : > { %v7941_v27 = vsel %vm7859_vm0, %v7940_v46, %v7936_v13  ;;  %v7684_v7 = vpop.permute.xlu0 %7683 }
 0x53a   : > { %v11829_v51 = vsel %vm7866_vm1, %v7945_v47, %v7941_v27  ;;  %v7663_v56 = vpop.permute.xlu1 %7662 }
 0x53b   : > { %v8105_v52 = vcombine.low %v11721_v11, %v11829_v51  ;;  %v7950_v54 = vrot.slane %v7663_v56, %v12136_v36  ;;  %v7974_v56 = vrot.slane %v7678_v9, %v12140_v14 }
 0x53d   : > { %v7690_v6 = vpop.permute.xlu0 %7689  ;;  %v7955_v33 = vsel %vm7768_vm3, %v7954_v21, %v7950_v54 }
 0x53e   : > { %v7669_v58 = vpop.permute.xlu1 %7668 }
 0x53f   : > { %v7959_v63 = vrot.slane %v7669_v58, %v12137_v55 }
 0x541   : > { %v7714_v23 = vpop.permute.xlu0 %7713  ;;  %v7960_v18 = vsel %vm7775_vm4, %v7959_v63, %v7955_v33 }
 0x542   : > { %v7675_v5 = vpop.permute.xlu1 %7674  ;;  %v8033_v10 = vrot.slane %v7714_v23, %v12135_v8 }
 0x545   : > { %v7720_v1 = vpop.permute.xlu0 %7719 }
 0x546   : > { %v7681_v2 = vpop.permute.xlu1 %7680  ;;  %v8043_v42 = vrot.slane %v7720_v1, %v12138_v16 }
 0x547   : > { %v7979_v27 = vrot.slane %v7681_v2, %v12141_v28 }
 0x549   : > { %v7726_v40 = vpop.permute.xlu0 %7725 }
 0x54a   : > { %v7687_v26 = vpop.permute.xlu1 %7686  ;;  %v8053_v43 = vrot.slane %v7726_v40, %v12140_v14  ;;  %v7984_v40 = vrot.slane %v7684_v7, %v12142_v37 }
 0x54b   : > { %v7989_v1 = vrot.slane %v7687_v26, %v12143_v53 }
 0x54d   : > { %v7732_v25 = vpop.permute.xlu0 %7731 }
 0x54e   : > { %v11833_v31 = vpop.permute.xlu1 %7695  ;;  %v8063_v41 = vrot.slane %v7732_v25, %v12142_v37 }
 0x551   : > { %v7738_v12 = vpop.permute.xlu0 %7737 }
 0x552   : > { %v7693_v4 = vpop.permute.xlu1 %7692  ;;  %v8073_v2 = vrot.slane %v7738_v12, %v12144_v19 }
 0x553   : > { %v7999_v25 = vrot.slane %v7693_v4, %v12145_v39 }
 0x556   : > { %v11835_v61 = vpop.permute.xlu1 %7701 }
 0x55a   : > { %v11837_v22 = vpop.permute.xlu1 %7698 }
 0x55b   : > { %v8009_v12 = vrot.slane %v11837_v22, %v11368_v35 }
 0x55e   : > { %v7711_v0 = vpop.permute.xlu1 %7710 }
 0x55f   : > { %v8029_v32 = vrot.slane %v7711_v0, %v12136_v36  ;;  %v7969_v36 = vrot.slane %v7675_v5, %v12139_v57 }
 0x561   : > { %v8034_v60 = vsel %vm7768_vm3, %v8033_v10, %v8029_v32 }
 0x562   : > { %v7717_v24 = vpop.permute.xlu1 %7716 }
 0x563   : > { %v8038_v59 = vrot.slane %v7717_v24, %v12137_v55  ;;  %v7964_v55 = vrot.slane %v7672_v20, %v12138_v16 }
 0x565   : > { %v8039_v49 = vsel %vm7775_vm4, %v8038_v59, %v8034_v60  ;;  %v7965_v13 = vsel %vm7782_vm5, %v7964_v55, %v7960_v18  ;;  %v8113_v18 = vrot.slane %v8105_v52, %v9705_v44  ;;  %v12147_v55 = vlaneseq }
 0x566   : > { %v7723_v30 = vpop.permute.xlu1 %7722  ;;  %v8044_v8 = vsel %vm7782_vm5, %v8043_v42, %v8039_v49  ;;  %v7970_v47 = vsel %vm7789_vm6, %v7969_v36, %v7965_v13 }
 0x567   : > { %v8048_v50 = vrot.slane %v7723_v30, %v12139_v57  ;;  %v7975_v20 = vsel %vm7796_vm7, %v7974_v56, %v7970_v47  ;;  %vm8132_vm2 = vcmp.lt.s32.totalorder %v12147_v55, 512 }
 0x568   : > { %v7980_v23 = vsel %vm7803_vm8, %v7979_v27, %v7975_v20 }
 0x569   : > { %v8049_v3 = vsel %vm7789_vm6, %v8048_v50, %v8044_v8  ;;  %v7985_v9 = vsel %vm7810_vm9, %v7984_v40, %v7980_v23 }
 0x56a   : > { %v7729_v29 = vpop.permute.xlu1 %7728  ;;  %v8054_v57 = vsel %vm7796_vm7, %v8053_v43, %v8049_v3  ;;  %v7990_v24 = vsel %vm7817_vm10, %v7989_v1, %v7985_v9 }
 0x56b   : > { %v8058_v45 = vrot.slane %v7729_v29, %v12141_v28 }
 0x56d   : > { %v7744_v62 = vpop.permute.xlu0 %7743  ;;  %v8059_v58 = vsel %vm7803_vm8, %v8058_v45, %v8054_v57 }
 0x56e   : > { %v7735_v46 = vpop.permute.xlu1 %7734  ;;  %v8064_v28 = vsel %vm7810_vm9, %v8063_v41, %v8059_v58  ;;  %v8083_v4 = vrot.slane %v7744_v62, %v12146_v34 }
 0x56f   : > { %v8068_v5 = vrot.slane %v7735_v46, %v12143_v53  ;;  %v7994_v53 = vrot.slane %v7690_v6, %v12144_v19 }
 0x571   : > { %v7741_v48 = vpop.permute.xlu0 %7740  ;;  %v8069_v14 = vsel %vm7817_vm10, %v8068_v5, %v8064_v28  ;;  %v7995_v26 = vsel %vm7824_vm11, %v7994_v53, %v7990_v24 }
 0x572   : > { %v8078_v30 = vrot.slane %v7741_v48, %v12145_v39  ;;  %v8074_v37 = vsel %vm7824_vm11, %v8073_v2, %v8069_v14  ;;  %v8000_v7 = vsel %vm7831_vm12, %v7999_v25, %v7995_v26  ;;  %v8004_v39 = vrot.slane %v11833_v31, %v12146_v34 }
 0x574   : > { %v8079_v59 = vsel %vm7831_vm12, %v8078_v30, %v8074_v37  ;;  %v8005_v54 = vsel %vm7838_vm13, %v8004_v39, %v8000_v7 }
 0x575   : > { %v7750_v16 = vpop.permute.xlu0 %7749  ;;  %v7705_v32 = vpop.permute.xlu1 %7704  ;;  %v8084_v63 = vsel %vm7838_vm13, %v8083_v4, %v8079_v59  ;;  %v8010_v21 = vsel %vm7845_vm14, %v8009_v12, %v8005_v54 }
 0x576   : > { %v8019_v60 = vrot.slane %v7705_v32, %v11662_v17  ;;  %v8093_v34 = vrot.slane %v7750_v16, %v12103_v15 }
 0x579   : > { %v7747_v0 = vpop.permute.xlu0 %7746  ;;  %v7708_v6 = vpop.permute.xlu1 %7707 }
 0x57a   : > { %v8088_v10 = vrot.slane %v7747_v0, %v11368_v35  ;;  %v8014_v35 = vrot.slane %v11835_v61, %v12103_v15  ;;  %v8024_v31 = vrot.slane %v7708_v6, %v11225_v38 }
 0x57c   : > { %v8089_v22 = vsel %vm7845_vm14, %v8088_v10, %v8084_v63  ;;  %v8015_v49 = vsel %vm7852_vm15, %v8014_v35, %v8010_v21 }
 0x57d   : > { %v7753_v19 = vpop.permute.xlu0 %7752  ;;  %v8094_v50 = vsel %vm7852_vm15, %v8093_v34, %v8089_v22  ;;  %v8020_v33 = vsel %vm7859_vm0, %v8019_v60, %v8015_v49 }
 0x57e   : > { %v8098_v29 = vrot.slane %v7753_v19, %v11662_v17  ;;  %v8025_v48 = vsel %vm7866_vm1, %v8024_v31, %v8020_v33 }
 0x580   : > { %v8099_v17 = vsel %vm7859_vm0, %v8098_v29, %v8094_v50 }
 0x5a5   : > { %v7756_v62 = vpop.permute.xlu0 %7755 }
 0x5a6   : > { %v8103_v42 = vrot.slane %v7756_v62, %v11225_v38 }
 0x5a8   : > { %v8104_v15 = vsel %vm7866_vm1, %v8103_v42, %v8099_v17 }
 0x5a9   : > { %v8106_v61 = vcombine.low %v8025_v48, %v8104_v15 }
 0x5ab   : > { %v8120_v36 = vrot.slane %v8106_v61, %v9705_v44 }
 0x5ad   : > { %v8121_v38 = vcombine.low %v8113_v18, %v8120_v36 }
 0x5af   : > { %v8128_v8 = vrot.slane %v8121_v38, %v9705_v44 }
 0x5b1   : > { %8134 = vst.msk [vmem:[%s316_s19] sm:$0xf] %vm8132_vm2, %v8128_v8 }
 0x5b2   : > { %8645 = shalt.err (!%p8642_p3)
}
 0x5b3   : > { %s8646_s24 = scalar_lea.hbm %s11916_s25, 64  ;;  %s8650_s18 = scalar_lea.hbm %s11966_s8, 128 }
 0x5b4   : > { %p8647_p4 = scmp.ne.s32.totalorder %s11916_s25, %s8646_s24  ;;  %p8651_p9 = scmp.lt.u32.totalorder %s11916_s25, %s11966_s8 }
 0x5b5   : > { %p8652_p10 = scmp.lt.u32.totalorder %s8650_s18, %s8646_s24  ;;  %p8654_p12 = scmp.lt.u32.totalorder %s8646_s24, %s11916_s25 }
 0x5b6   : > { %p8648_p7 = pnand %p8647_p4, %p8784_p5 }
 0x5b7   : > { %p8653_p11 = por %p8652_p10, %p8651_p9 }
 0x5b8   : > { %p8649_p8 = pneg %p8648_p7 }
 0x5b9   : > { %p8655_p13 = por %p8654_p12, %p8653_p11 }
 0x5bb   : > { %p8656_p0 = pnand %p8655_p13, %p8649_p8 }
 0x5bd   : > { %8659 = shalt.err (!%p8656_p0)
}
 0x5be   : > { %8583 = dma.vmem_to_hbm [thread:$0]  (%p8784_p5), %s11918_s21, 64, %s11916_s25, %s8136_s26  }
 0x5bf PF: > { %p8589_p1 = scmp.ge.s32.totalorder %s8694_s10, 2  ;;  %s8162_s22 = sand.u32 1, %s8682_s29  }
 0x5c0   : > { %s8163_s23 = scalar_lea.sflag [#allocation5], %s8162_s22 }
 0x5c1   : > { %p8586_p2 = pnand %p8589_p1, %p8788_p6 }
 0x5c3   : > { %8677 = dma.done.wait (!%p8586_p2), %s8163_s23, 64  }
 0x5c4   : > { %8679 = vsyncadd (!%p8586_p2), %s8163_s23, 4294967232  ;;  %p19_p3 = scmp.ge.s32.totalorder %s8772_s12, 4   ;;  %s12148_s29 = smov %s8686_s30 }
 0x5c5   : > { %s12149_s30 = smov %s8690_s9  ;;  %s12150_s9 = smov %s8782_s15 }
 0x5c6   : > { %s12151_s10 = smov %s8772_s12  ;;  %21 = sbr.rel (!%p19_p3) target bundleno = 5 (0x5), region = 90 }
 0x5cd   :  { %8168 = vsyncpa [#allocation5], 1 }
 0x5ce   :  { %8170 = vsyncpa [#allocation5 + $0x1], 1 }

</bundles_post_ra>
